<compile_context>
chip_gen: v6e
topology: v6e:2x2x1
jax: 0.10.0
libtpu: 0.0.40
codegen_flags: <defaults>
</compile_context>

<pallas_src>
import functools

import jax
import jax.numpy as jnp
import numpy as np
from jax.experimental import pallas as pl
from jax.experimental.pallas import tpu as pltpu

EPS = 1e-5
EXPANSION = 4
LANE = 128      # vreg lane width
SUBLANE = 16    # row-tile granularity (covers f32 (8) and packed bf16 (16))


# ------------------------------ small helpers -------------------------------

def _round_up(x, m):
    return (x + m - 1) // m * m


def _pad_last(a, target):
    pad = target - a.shape[-1]
    if pad == 0:
        return a
    return jnp.pad(a, [(0, 0)] * (a.ndim - 1) + [(0, pad)])


def _pad_rows(a, target):
    pad = target - a.shape[0]
    if pad == 0:
        return a
    return jnp.pad(a, [(0, pad)] + [(0, 0)] * (a.ndim - 1))


def _pick_tm(m, target=512):
    # row tile: multiple of 16, big enough to pipeline, never larger than M.
    return min(target, _round_up(m, SUBLANE))


def _pick_row_tile(ho, wo, target_rows=2048):
    for d in range(ho, 0, -1):
        if ho % d == 0 and d * wo <= target_rows:
            return d
    return 1


def _nbytes(shape, dtype):
    return int(np.prod(shape)) * jnp.dtype(dtype).itemsize


def _cparams(n_grid_dims, block_bytes):
    # Explicit VMEM budget: 2x for double buffering + headroom, clamped to the
    # 32 MiB scoped default (safe on v7x's 64 MiB physical VMEM as well).
    est = 2 * sum(block_bytes)
    vmem = int(min(32 * 2**20, max(16 * 2**20, 2 * est)))
    return pltpu.CompilerParams(
        dimension_semantics=("parallel",) * n_grid_dims,
        vmem_limit_bytes=vmem)


def _partial_stats(y):
    # one-pass BN statistics: per-tile (sum, sum-of-squares) -> shape (1, 2, C)
    return jnp.concatenate(
        [jnp.sum(y, axis=0, keepdims=True),
         jnp.sum(y * y, axis=0, keepdims=True)], axis=0)[None]


# ------------------------------- Pallas kernels ------------------------------

def _mm_stats_kernel(x_ref, w_ref, y_ref, st_ref):
    # x: (TM, Cin) bf16, w: (Cin, Cout) bf16 -> y (stored as y_ref.dtype) + BN
    # partials computed from the f32 MXU accumulator.
    y = jnp.dot(x_ref[...], w_ref[...], preferred_element_type=jnp.float32)
    y_ref[...] = y.astype(y_ref.dtype)
    st_ref[...] = _partial_stats(y)


def _bn_relu_mm_stats_kernel(yin_ref, a_ref, b_ref, w_ref, y_ref, st_ref,
                             *, m_true, mask_rows):
    # Fused: bn2-affine + relu on the input tile, bf16 cast, matmul, partials.
    x = jnp.maximum(yin_ref[...].astype(jnp.float32) * a_ref[...] + b_ref[...],
                    0.0)
    if mask_rows:  # zero the padded rows so they do not pollute the BN stats
        tm = x.shape[0]
        rows = pl.program_id(0) * tm + jax.lax.broadcasted_iota(
            jnp.int32, (tm, 1), 0)
        x = jnp.where(rows < m_true, x, 0.0)
    y = jnp.dot(x.astype(jnp.bfloat16), w_ref[...],
                preferred_element_type=jnp.float32)
    y_ref[...] = y.astype(y_ref.dtype)
    st_ref[...] = _partial_stats(y)


def _conv3x3_stats_kernel(ph_ref, w_ref, y_ref, st_ref, *, stride, th, wo):
    # ph_ref: (s*s, Hg, Wg, Cin) phase-split, spatially padded bn1 output of one
    # image, VMEM-resident across the row-tile grid axis.  Builds the nine 3x3
    # taps as contiguous pl.ds windows (no im2col in HBM) and runs nine
    # accumulated MXU matmuls.
    row0 = pl.program_id(1) * th
    c_in = ph_ref.shape[-1]
    acc = jnp.zeros((th * wo, w_ref.shape[-1]), jnp.float32)
    for kh in range(3):
        for kw in range(3):
            win = ph_ref[(kh % stride) * stride + (kw % stride),
                         pl.ds(row0 + kh // stride, th),
                         pl.ds(kw // stride, wo), :]
            acc = acc + jnp.dot(win.reshape(th * wo, c_in),
                                w_ref[kh * 3 + kw],
                                preferred_element_type=jnp.float32)
    y_ref[...] = acc.astype(y_ref.dtype)
    st_ref[...] = _partial_stats(acc)


def _bn_apply_kernel(y_ref, a_ref, b_ref, o_ref, *, relu):
    out = y_ref[...].astype(jnp.float32) * a_ref[...] + b_ref[...]
    if relu:
        out = jnp.maximum(out, 0.0)
    o_ref[...] = out.astype(o_ref.dtype)


def _bn_add_relu_kernel(y_ref, a_ref, b_ref, r_ref, ra_ref, rb_ref, o_ref):
    res = r_ref[...].astype(jnp.float32) * ra_ref[...] + rb_ref[...]
    out = jnp.maximum(y_ref[...].astype(jnp.float32) * a_ref[...] + b_ref[...]
                      + res, 0.0)
    o_ref[...] = out.astype(o_ref.dtype)


# ------------------------------ kernel wrappers ------------------------------

def _mm_stats(x2d, w2d, tm, out_dtype=jnp.float32):
    mp, cin = x2d.shape
    cout = w2d.shape[1]
    nt = mp // tm
    blocks = [_nbytes((tm, cin), x2d.dtype), _nbytes((cin, cout), w2d.dtype),
              _nbytes((tm, cout), out_dtype),
              _nbytes((1, 2, cout), jnp.float32)]
    return pl.pallas_call(
        _mm_stats_kernel,
        grid=(nt,),
        in_specs=[pl.BlockSpec((tm, cin), lambda i: (i, 0)),
                  pl.BlockSpec((cin, cout), lambda i: (0, 0))],
        out_specs=[pl.BlockSpec((tm, cout), lambda i: (i, 0)),
                   pl.BlockSpec((1, 2, cout), lambda i: (i, 0, 0))],
        out_shape=[jax.ShapeDtypeStruct((mp, cout), out_dtype),
                   jax.ShapeDtypeStruct((nt, 2, cout), jnp.float32)],
        compiler_params=_cparams(1, blocks),
    )(x2d, w2d)


def _bn_relu_mm_stats(y2d, a, b, w2d, tm, m_true, out_dtype=jnp.float32):
    mp, cin = y2d.shape
    cout = w2d.shape[1]
    nt = mp // tm
    blocks = [_nbytes((tm, cin), y2d.dtype), 2 * _nbytes((1, cin), jnp.float32),
              _nbytes((cin, cout), w2d.dtype), _nbytes((tm, cout), out_dtype),
              _nbytes((1, 2, cout), jnp.float32)]
    kern = functools.partial(_bn_relu_mm_stats_kernel,
                             m_true=m_true, mask_rows=(mp != m_true))
    return pl.pallas_call(
        kern,
        grid=(nt,),
        in_specs=[pl.BlockSpec((tm, cin), lambda i: (i, 0)),
                  pl.BlockSpec((1, cin), lambda i: (0, 0)),
                  pl.BlockSpec((1, cin), lambda i: (0, 0)),
                  pl.BlockSpec((cin, cout), lambda i: (0, 0))],
        out_specs=[pl.BlockSpec((tm, cout), lambda i: (i, 0)),
                   pl.BlockSpec((1, 2, cout), lambda i: (i, 0, 0))],
        out_shape=[jax.ShapeDtypeStruct((mp, cout), out_dtype),
                   jax.ShapeDtypeStruct((nt, 2, cout), jnp.float32)],
        compiler_params=_cparams(1, blocks),
    )(y2d, a, b, w2d)


def _conv3x3_stats(o1_nhwc, w2_9cc, stride, out_dtype=jnp.float32):
    n, h, w, c1 = o1_nhwc.shape
    c2 = w2_9cc.shape[-1]
    ho = (h + 2 - 3) // stride + 1
    wo = (w + 2 - 3) // stride + 1
    # conv padding (1 px) + pad up to a multiple of `stride`, then split each
    # spatial axis into (group, phase) so every tap/stride combination becomes a
    # *contiguous* pl.ds window inside the kernel (no strided in-kernel loads).
    hg = max(-(-(h + 2) // stride), ho + 2 // stride)
    wg = max(-(-(w + 2) // stride), wo + 2 // stride)
    xp = jnp.pad(o1_nhwc, ((0, 0), (1, hg * stride - h - 1),
                           (1, wg * stride - w - 1), (0, 0)))
    phases = xp.reshape(n, hg, stride, wg, stride, c1)
    phases = jnp.transpose(phases, (0, 2, 4, 1, 3, 5))
    phases = phases.reshape(n, stride * stride, hg, wg, c1)

    th = _pick_row_tile(ho, wo)
    nt = ho // th
    # TODO(synk): th*wo should be a multiple of 16 (true for the usual ResNet
    # stage shapes); otherwise the output block is sublane-padded.
    blocks = [_nbytes((stride * stride, hg, wg, c1), phases.dtype),
              _nbytes((9, c1, c2), w2_9cc.dtype),
              _nbytes((th * wo, c2), out_dtype),
              _nbytes((1, 2, c2), jnp.float32)]
    kern = functools.partial(_conv3x3_stats_kernel, stride=stride, th=th, wo=wo)
    y, st = pl.pallas_call(
        kern,
        grid=(n, nt),
        in_specs=[pl.BlockSpec((None, stride * stride, hg, wg, c1),
                               lambda nb, t: (nb, 0, 0, 0, 0)),
                  pl.BlockSpec((9, c1, c2), lambda nb, t: (0, 0, 0))],
        out_specs=[pl.BlockSpec((th * wo, c2),
                                lambda nb, t: (nb * nt + t, 0)),
                   pl.BlockSpec((1, 2, c2),
                                lambda nb, t: (nb * nt + t, 0, 0))],
        out_shape=[jax.ShapeDtypeStruct((n * ho * wo, c2), out_dtype),
                   jax.ShapeDtypeStruct((n * nt, 2, c2), jnp.float32)],
        compiler_params=_cparams(2, blocks),
    )(phases, w2_9cc)
    return y, st, ho, wo


def _bn_apply(y2d, a, b, tm, out_dtype, relu):
    mp, c = y2d.shape
    nt = mp // tm
    blocks = [_nbytes((tm, c), y2d.dtype), 2 * _nbytes((1, c), jnp.float32),
              _nbytes((tm, c), out_dtype)]
    return pl.pallas_call(
        functools.partial(_bn_apply_kernel, relu=relu),
        grid=(nt,),
        in_specs=[pl.BlockSpec((tm, c), lambda i: (i, 0)),
                  pl.BlockSpec((1, c), lambda i: (0, 0)),
                  pl.BlockSpec((1, c), lambda i: (0, 0))],
        out_specs=pl.BlockSpec((tm, c), lambda i: (i, 0)),
        out_shape=jax.ShapeDtypeStruct((mp, c), out_dtype),
        compiler_params=_cparams(1, blocks),
    )(y2d, a, b)


def _bn_add_relu(y2d, a, b, r2d, ra, rb, tm, out_dtype):
    mp, c = y2d.shape
    nt = mp // tm
    blocks = [_nbytes((tm, c), y2d.dtype), 4 * _nbytes((1, c), jnp.float32),
              _nbytes((tm, c), r2d.dtype), _nbytes((tm, c), out_dtype)]
    return pl.pallas_call(
        _bn_add_relu_kernel,
        grid=(nt,),
        in_specs=[pl.BlockSpec((tm, c), lambda i: (i, 0)),
                  pl.BlockSpec((1, c), lambda i: (0, 0)),
                  pl.BlockSpec((1, c), lambda i: (0, 0)),
                  pl.BlockSpec((tm, c), lambda i: (i, 0)),
                  pl.BlockSpec((1, c), lambda i: (0, 0)),
                  pl.BlockSpec((1, c), lambda i: (0, 0))],
        out_specs=pl.BlockSpec((tm, c), lambda i: (i, 0)),
        out_shape=jax.ShapeDtypeStruct((mp, c), out_dtype),
        compiler_params=_cparams(1, blocks),
    )(y2d, a, b, r2d, ra, rb)


def _bn_affine(partial_stats, count, gamma, beta, cpad):
    # Finalize training-mode BN from per-tile (sum, sumsq) partials and fold
    # gamma/beta into a single (scale, bias) pair.  Tiny (C,)-sized glue.
    g = _pad_last(gamma.astype(jnp.float32), cpad)
    b = _pad_last(beta.astype(jnp.float32), cpad)
    s = jnp.sum(partial_stats, axis=0)                        # (2, Cpad)
    mean = s[0] / count
    var = jnp.maximum(s[1] / count - mean * mean, 0.0)        # biased variance
    scale = g * jax.lax.rsqrt(var + EPS)
    bias = b - mean * scale
    return scale.reshape(1, cpad), bias.reshape(1, cpad)


# --------------------------------- Bottleneck --------------------------------

def init_bottleneck_params(key, in_planes, planes):
    out_planes = EXPANSION * planes
    ks = jax.random.split(key, 12)

    def conv_w(k, cout, cin, kh, kw):
        fan_in = cin * kh * kw
        return (jax.random.normal(k, (cout, cin, kh, kw), jnp.float32)
                * (2.0 / fan_in) ** 0.5)

    def bn_gb(kg, kb, c):
        return (1.0 + 0.1 * jax.random.normal(kg, (c,), jnp.float32),
                0.1 * jax.random.normal(kb, (c,), jnp.float32))

    p = {}
    p['w1'] = conv_w(ks[0], planes, in_planes, 1, 1)
    p['g1'], p['b1'] = bn_gb(ks[1], ks[2], planes)
    p['w2'] = conv_w(ks[3], planes, planes, 3, 3)
    p['g2'], p['b2'] = bn_gb(ks[4], ks[5], planes)
    p['w3'] = conv_w(ks[6], out_planes, planes, 1, 1)
    p['g3'], p['b3'] = bn_gb(ks[7], ks[8], out_planes)
    p['ws'] = conv_w(ks[9], out_planes, in_planes, 1, 1)
    p['gs'], p['bs'] = bn_gb(ks[10], ks[11], out_planes)
    return p


def bottleneck_forward(x_nchw, p, *, in_planes, planes, stride):
    out_planes = EXPANSION * planes
    n, _, h, w = x_nchw.shape
    x = jnp.transpose(x_nchw, (0, 2, 3, 1)).astype(jnp.float32)   # -> NHWC

    cip = _round_up(in_planes, LANE)          # lane-dense channel padding
    c1p = _round_up(planes, LANE)
    c3p = _round_up(out_planes, LANE)

    # ---- conv1 (1x1) + bn1 + relu ----
    m1 = n * h * w
    tm1 = _pick_tm(m1)
    m1p = _round_up(m1, tm1)
    x2d = _pad_rows(_pad_last(x.reshape(m1, in_planes), cip), m1p)
    x2d = x2d.astype(jnp.bfloat16)
    w1p = _pad_rows(_pad_last(p['w1'][:, :, 0, 0].T, c1p), cip)
    w1p = w1p.astype(jnp.bfloat16)
    # y1 stored bf16 (halved HBM traffic); BN stats come from the f32 MXU acc.
    y1, st1 = _mm_stats(x2d, w1p, tm1, jnp.bfloat16)
    a1, b1 = _bn_affine(st1, m1, p['g1'], p['b1'], c1p)
    o1 = _bn_apply(y1, a1, b1, tm1, jnp.bfloat16, relu=True)      # bf16 -> HBM
    o1 = o1[:m1].reshape(n, h, w, c1p)

    # ---- conv2 (3x3, stride, pad=1): stats pass, bn2+relu fused into conv3 ---
    w2p = jnp.transpose(p['w2'], (2, 3, 1, 0)).reshape(9, planes, planes)
    w2p = jnp.pad(w2p, ((0, 0), (0, c1p - planes), (0, c1p - planes)))
    w2p = w2p.astype(jnp.bfloat16)
    y2, st2, ho, wo = _conv3x3_stats(o1, w2p, stride, jnp.bfloat16)
    m2 = n * ho * wo
    a2, b2 = _bn_affine(st2, m2, p['g2'], p['b2'], c1p)

    tm2 = _pick_tm(m2)
    m2p = _round_up(m2, tm2)

    # ---- shortcut ----
    if stride != 1 or in_planes != out_planes:
        # TODO(synk): the strided spatial subsample could move into the kernel's
        # index_map / DMA instead of this wrapper-level slice.
        xs = x[:, ::stride, ::stride, :].reshape(m2, in_planes)
        xs = _pad_rows(_pad_last(xs, cip), m2p).astype(jnp.bfloat16)
        wsp = _pad_rows(_pad_last(p['ws'][:, :, 0, 0].T, c3p), cip)
        wsp = wsp.astype(jnp.bfloat16)
        ysc, stsc = _mm_stats(xs, wsp, tm2, jnp.bfloat16)
        asc, bsc = _bn_affine(stsc, m2, p['gs'], p['bs'], c3p)
    else:
        ysc = _pad_rows(_pad_last(x.reshape(m1, in_planes), c3p), m2p)
        asc = jnp.ones((1, c3p), jnp.float32)
        bsc = jnp.zeros((1, c3p), jnp.float32)

    # ---- conv3 (1x1) with fused bn2+relu input, then bn3 + shortcut + relu ---
    w3p = _pad_rows(_pad_last(p['w3'][:, :, 0, 0].T, c3p), c1p)
    w3p = w3p.astype(jnp.bfloat16)
    y3, st3 = _bn_relu_mm_stats(_pad_rows(y2, m2p), a2, b2, w3p, tm2, m2,
                                jnp.float32)
    a3, b3 = _bn_affine(st3, m2, p['g3'], p['b3'], c3p)
    out2d = _bn_add_relu(y3, a3, b3, ysc, asc, bsc, tm2, jnp.float32)

    out = out2d[:m2, :out_planes].reshape(n, ho, wo, out_planes)
    return jnp.transpose(out, (0, 3, 1, 2))                       # -> NCHW


# ----------------------------- pure-JAX reference ----------------------------

def reference_forward(x, p, *, in_planes, planes, stride):
    def conv(x, w, s, pad):
        return jax.lax.conv_general_dilated(
            x, w, (s, s), [(pad, pad), (pad, pad)],
            dimension_numbers=('NCHW', 'OIHW', 'NCHW'))

    def bn(y, g, b):
        m = jnp.mean(y, axis=(0, 2, 3), keepdims=True)
        v = jnp.mean((y - m) ** 2, axis=(0, 2, 3), keepdims=True)
        return ((y - m) * jax.lax.rsqrt(v + EPS) * g.reshape(1, -1, 1, 1)
                + b.reshape(1, -1, 1, 1))

    out = jax.nn.relu(bn(conv(x, p['w1'], 1, 0), p['g1'], p['b1']))
    out = jax.nn.relu(bn(conv(out, p['w2'], stride, 1), p['g2'], p['b2']))
    out = bn(conv(out, p['w3'], 1, 0), p['g3'], p['b3'])
    if stride != 1 or in_planes != EXPANSION * planes:
        sc = bn(conv(x, p['ws'], stride, 0), p['gs'], p['bs'])
    else:
        sc = x
    return jax.nn.relu(out + sc)


# ------------------------------------ main -----------------------------------

if __name__ == "__main__":
    in_planes, planes, stride = 8, 4, 2
    key = jax.random.PRNGKey(0)
    kx, kp = jax.random.split(key)
    x = jax.random.normal(kx, (2, in_planes, 16, 16), jnp.float32)   # NCHW
    params = init_bottleneck_params(kp, in_planes, planes)

    fwd = jax.jit(functools.partial(bottleneck_forward, in_planes=in_planes,
                                    planes=planes, stride=stride))
    out = jax.block_until_ready(fwd(x, params))

    ref = jax.block_until_ready(
        reference_forward(x, params, in_planes=in_planes,
                          planes=planes, stride=stride))

    assert out.shape == (2, EXPANSION * planes, 8, 8), out.shape
    # bf16 MXU operands + bf16 HBM intermediates -> looser tolerance than f32.
    np.testing.assert_allclose(np.asarray(out), np.asarray(ref),
                               rtol=5e-2, atol=5e-2)
    print("KERNEL_OK")
</pallas_src>

<mosaic_0001>
module attributes {stable_mosaic.version = 11 : i64} {
  func.func @_mm_stats_kernel(%arg0: i32, %arg1: memref<512x128xbf16, #tpu.memory_space<vmem>>, %arg2: memref<128x128xbf16, #tpu.memory_space<vmem>>, %arg3: memref<512x128xbf16, #tpu.memory_space<vmem>>, %arg4: memref<1x2x128xf32, #tpu.memory_space<vmem>>) attributes {dimension_semantics = [#tpu.dimension_semantics<parallel>], iteration_bounds = array<i64: 1>, scalar_prefetch = 0 : i64, scratch_operands = 0 : i64, tpu.core_type = #tpu.core_type<tc>, window_params = [{transform_indices = @transform_0, window_bounds = array<i64: 512, 128>}, {pipeline_mode = #tpu.pipeline_mode<synchronous>, transform_indices = @transform_1, window_bounds = array<i64: 128, 128>}, {transform_indices = @transform_2, window_bounds = array<i64: 512, 128>}, {transform_indices = @transform_3, window_bounds = array<i64: 1, 2, 128>}]} {
    %c0 = arith.constant 0 : index
    %c0_0 = arith.constant 0 : index
    %0 = vector.load %arg1[%c0, %c0_0] : memref<512x128xbf16, #tpu.memory_space<vmem>>, vector<512x128xbf16>
    %c0_1 = arith.constant 0 : index
    %c0_2 = arith.constant 0 : index
    %1 = vector.load %arg2[%c0_1, %c0_2] : memref<128x128xbf16, #tpu.memory_space<vmem>>, vector<128x128xbf16>
    %cst = arith.constant dense<0.000000e+00> : vector<512x128xf32>
    %2 = tpu.matmul %0, %1, %cst {dimension_numbers = #tpu.dot_dimension_numbers<[1], [0], [0], [1], [0, 0, 1, 1], [], []>} : vector<512x128xbf16>, vector<128x128xbf16>, vector<512x128xf32> -> vector<512x128xf32>
    %3 = arith.truncf %2 : vector<512x128xf32> to vector<512x128xbf16>
    %c0_3 = arith.constant 0 : index
    %c0_4 = arith.constant 0 : index
    %4 = vector.load %arg3[%c0_3, %c0_4] : memref<512x128xbf16, #tpu.memory_space<vmem>>, vector<512x128xbf16>
    tpu.vector_store %arg3[%c0_3, %c0_4], %3 {strides = array<i32>} : memref<512x128xbf16, #tpu.memory_space<vmem>>, vector<512x128xbf16>,
    %cst_5 = arith.constant dense<0.000000e+00> : vector<128xf32>
    %5 = vector.multi_reduction <add>, %2, %cst_5 [0] : vector<512x128xf32> to vector<128xf32>
    %6 = vector.shape_cast %5 : vector<128xf32> to vector<1x128xf32>
    %7 = arith.mulf %2, %2 : vector<512x128xf32>
    %cst_6 = arith.constant dense<0.000000e+00> : vector<128xf32>
    %8 = vector.multi_reduction <add>, %7, %cst_6 [0] : vector<512x128xf32> to vector<128xf32>
    %9 = vector.shape_cast %8 : vector<128xf32> to vector<1x128xf32>
    %10 = tpu.concatenate %6, %9 in 0 : vector<1x128xf32>, vector<1x128xf32> -> vector<2x128xf32>
    %11 = vector.shape_cast %10 : vector<2x128xf32> to vector<1x2x128xf32>
    %c0_7 = arith.constant 0 : index
    %c0_8 = arith.constant 0 : index
    %c0_9 = arith.constant 0 : index
    %12 = vector.load %arg4[%c0_7, %c0_8, %c0_9] : memref<1x2x128xf32, #tpu.memory_space<vmem>>, vector<1x2x128xf32>
    tpu.vector_store %arg4[%c0_7, %c0_8, %c0_9], %11 {strides = array<i32>} : memref<1x2x128xf32, #tpu.memory_space<vmem>>, vector<1x2x128xf32>,
    return
  }
  func.func @transform_0(%arg0: i32) -> (i32, i32) {
    %c0_i32 = arith.constant 0 : i32
    %c0_i32_0 = arith.constant 0 : i32
    return %arg0, %c0_i32 : i32, i32
  }
  func.func @transform_1(%arg0: i32) -> (i32, i32) {
    %c0_i32 = arith.constant 0 : i32
    %c0_i32_0 = arith.constant 0 : i32
    %c0_i32_1 = arith.constant 0 : i32
    return %c0_i32, %c0_i32_0 : i32, i32
  }
  func.func @transform_2(%arg0: i32) -> (i32, i32) {
    %c0_i32 = arith.constant 0 : i32
    %c0_i32_0 = arith.constant 0 : i32
    return %arg0, %c0_i32 : i32, i32
  }
  func.func @transform_3(%arg0: i32) -> (i32, i32, i32) {
    %c0_i32 = arith.constant 0 : i32
    %c0_i32_0 = arith.constant 0 : i32
    %c0_i32_1 = arith.constant 0 : i32
    return %arg0, %c0_i32, %c0_i32_0 : i32, i32, i32
  }
}

module attributes {stable_mosaic.version = 11 : i64} {
  func.func @_bn_apply_kernel(%arg0: i32, %arg1: memref<512x128xbf16, #tpu.memory_space<vmem>>, %arg2: memref<1x128xf32, #tpu.memory_space<vmem>>, %arg3: memref<1x128xf32, #tpu.memory_space<vmem>>, %arg4: memref<512x128xbf16, #tpu.memory_space<vmem>>) attributes {dimension_semantics = [#tpu.dimension_semantics<parallel>], iteration_bounds = array<i64: 1>, scalar_prefetch = 0 : i64, scratch_operands = 0 : i64, tpu.core_type = #tpu.core_type<tc>, window_params = [{transform_indices = @transform_0, window_bounds = array<i64: 512, 128>}, {pipeline_mode = #tpu.pipeline_mode<synchronous>, transform_indices = @transform_1, window_bounds = array<i64: 1, 128>}, {pipeline_mode = #tpu.pipeline_mode<synchronous>, transform_indices = @transform_2, window_bounds = array<i64: 1, 128>}, {transform_indices = @transform_3, window_bounds = array<i64: 512, 128>}]} {
    %c0 = arith.constant 0 : index
    %c0_0 = arith.constant 0 : index
    %0 = vector.load %arg1[%c0, %c0_0] : memref<512x128xbf16, #tpu.memory_space<vmem>>, vector<512x128xbf16>
    %1 = arith.extf %0 : vector<512x128xbf16> to vector<512x128xf32>
    %c0_1 = arith.constant 0 : index
    %c0_2 = arith.constant 0 : index
    %2 = vector.load %arg2[%c0_1, %c0_2] : memref<1x128xf32, #tpu.memory_space<vmem>>, vector<1x128xf32>
    %3 = vector.broadcast %2 : vector<1x128xf32> to vector<512x128xf32>
    %4 = arith.mulf %1, %3 : vector<512x128xf32>
    %c0_3 = arith.constant 0 : index
    %c0_4 = arith.constant 0 : index
    %5 = vector.load %arg3[%c0_3, %c0_4] : memref<1x128xf32, #tpu.memory_space<vmem>>, vector<1x128xf32>
    %6 = vector.broadcast %5 : vector<1x128xf32> to vector<512x128xf32>
    %7 = arith.addf %4, %6 : vector<512x128xf32>
    %cst = arith.constant 0.000000e+00 : f32
    %8 = vector.broadcast %cst : f32 to vector<512x128xf32>
    %9 = arith.maximumf %7, %8 : vector<512x128xf32>
    %10 = arith.truncf %9 : vector<512x128xf32> to vector<512x128xbf16>
    %c0_5 = arith.constant 0 : index
    %c0_6 = arith.constant 0 : index
    %11 = vector.load %arg4[%c0_5, %c0_6] : memref<512x128xbf16, #tpu.memory_space<vmem>>, vector<512x128xbf16>
    tpu.vector_store %arg4[%c0_5, %c0_6], %10 {strides = array<i32>} : memref<512x128xbf16, #tpu.memory_space<vmem>>, vector<512x128xbf16>,
    return
  }
  func.func @transform_0(%arg0: i32) -> (i32, i32) {
    %c0_i32 = arith.constant 0 : i32
    %c0_i32_0 = arith.constant 0 : i32
    return %arg0, %c0_i32 : i32, i32
  }
  func.func @transform_1(%arg0: i32) -> (i32, i32) {
    %c0_i32 = arith.constant 0 : i32
    %c0_i32_0 = arith.constant 0 : i32
    %c0_i32_1 = arith.constant 0 : i32
    return %c0_i32, %c0_i32_0 : i32, i32
  }
  func.func @transform_2(%arg0: i32) -> (i32, i32) {
    %c0_i32 = arith.constant 0 : i32
    %c0_i32_0 = arith.constant 0 : i32
    %c0_i32_1 = arith.constant 0 : i32
    return %c0_i32, %c0_i32_0 : i32, i32
  }
  func.func @transform_3(%arg0: i32) -> (i32, i32) {
    %c0_i32 = arith.constant 0 : i32
    %c0_i32_0 = arith.constant 0 : i32
    return %arg0, %c0_i32 : i32, i32
  }
}

module attributes {stable_mosaic.version = 11 : i64} {
  func.func @_bn_relu_mm_stats_kernel(%arg0: i32, %arg1: memref<128x128xbf16, #tpu.memory_space<vmem>>, %arg2: memref<1x128xf32, #tpu.memory_space<vmem>>, %arg3: memref<1x128xf32, #tpu.memory_space<vmem>>, %arg4: memref<128x128xbf16, #tpu.memory_space<vmem>>, %arg5: memref<128x128xf32, #tpu.memory_space<vmem>>, %arg6: memref<1x2x128xf32, #tpu.memory_space<vmem>>) attributes {dimension_semantics = [#tpu.dimension_semantics<parallel>], iteration_bounds = array<i64: 1>, scalar_prefetch = 0 : i64, scratch_operands = 0 : i64, tpu.core_type = #tpu.core_type<tc>, window_params = [{transform_indices = @transform_0, window_bounds = array<i64: 128, 128>}, {pipeline_mode = #tpu.pipeline_mode<synchronous>, transform_indices = @transform_1, window_bounds = array<i64: 1, 128>}, {pipeline_mode = #tpu.pipeline_mode<synchronous>, transform_indices = @transform_2, window_bounds = array<i64: 1, 128>}, {pipeline_mode = #tpu.pipeline_mode<synchronous>, transform_indices = @transform_3, window_bounds = array<i64: 128, 128>}, {transform_indices = @transform_4, window_bounds = array<i64: 128, 128>}, {transform_indices = @transform_5, window_bounds = array<i64: 1, 2, 128>}]} {
    %c0 = arith.constant 0 : index
    %c0_0 = arith.constant 0 : index
    %0 = vector.load %arg1[%c0, %c0_0] : memref<128x128xbf16, #tpu.memory_space<vmem>>, vector<128x128xbf16>
    %1 = arith.extf %0 : vector<128x128xbf16> to vector<128x128xf32>
    %c0_1 = arith.constant 0 : index
    %c0_2 = arith.constant 0 : index
    %2 = vector.load %arg2[%c0_1, %c0_2] : memref<1x128xf32, #tpu.memory_space<vmem>>, vector<1x128xf32>
    %3 = vector.broadcast %2 : vector<1x128xf32> to vector<128x128xf32>
    %4 = arith.mulf %1, %3 : vector<128x128xf32>
    %c0_3 = arith.constant 0 : index
    %c0_4 = arith.constant 0 : index
    %5 = vector.load %arg3[%c0_3, %c0_4] : memref<1x128xf32, #tpu.memory_space<vmem>>, vector<1x128xf32>
    %6 = vector.broadcast %5 : vector<1x128xf32> to vector<128x128xf32>
    %7 = arith.addf %4, %6 : vector<128x128xf32>
    %cst = arith.constant 0.000000e+00 : f32
    %8 = vector.broadcast %cst : f32 to vector<128x128xf32>
    %9 = arith.maximumf %7, %8 : vector<128x128xf32>
    %10 = arith.truncf %9 : vector<128x128xf32> to vector<128x128xbf16>
    %c0_5 = arith.constant 0 : index
    %c0_6 = arith.constant 0 : index
    %11 = vector.load %arg4[%c0_5, %c0_6] : memref<128x128xbf16, #tpu.memory_space<vmem>>, vector<128x128xbf16>
    %cst_7 = arith.constant dense<0.000000e+00> : vector<128x128xf32>
    %12 = tpu.matmul %10, %11, %cst_7 {dimension_numbers = #tpu.dot_dimension_numbers<[1], [0], [0], [1], [0, 0, 1, 1], [], []>} : vector<128x128xbf16>, vector<128x128xbf16>, vector<128x128xf32> -> vector<128x128xf32>
    %c0_8 = arith.constant 0 : index
    %c0_9 = arith.constant 0 : index
    %13 = vector.load %arg5[%c0_8, %c0_9] : memref<128x128xf32, #tpu.memory_space<vmem>>, vector<128x128xf32>
    tpu.vector_store %arg5[%c0_8, %c0_9], %12 {strides = array<i32>} : memref<128x128xf32, #tpu.memory_space<vmem>>, vector<128x128xf32>,
    %cst_10 = arith.constant dense<0.000000e+00> : vector<128xf32>
    %14 = vector.multi_reduction <add>, %12, %cst_10 [0] : vector<128x128xf32> to vector<128xf32>
    %15 = vector.shape_cast %14 : vector<128xf32> to vector<1x128xf32>
    %16 = arith.mulf %12, %12 : vector<128x128xf32>
    %cst_11 = arith.constant dense<0.000000e+00> : vector<128xf32>
    %17 = vector.multi_reduction <add>, %16, %cst_11 [0] : vector<128x128xf32> to vector<128xf32>
    %18 = vector.shape_cast %17 : vector<128xf32> to vector<1x128xf32>
    %19 = tpu.concatenate %15, %18 in 0 : vector<1x128xf32>, vector<1x128xf32> -> vector<2x128xf32>
    %20 = vector.shape_cast %19 : vector<2x128xf32> to vector<1x2x128xf32>
    %c0_12 = arith.constant 0 : index
    %c0_13 = arith.constant 0 : index
    %c0_14 = arith.constant 0 : index
    %21 = vector.load %arg6[%c0_12, %c0_13, %c0_14] : memref<1x2x128xf32, #tpu.memory_space<vmem>>, vector<1x2x128xf32>
    tpu.vector_store %arg6[%c0_12, %c0_13, %c0_14], %20 {strides = array<i32>} : memref<1x2x128xf32, #tpu.memory_space<vmem>>, vector<1x2x128xf32>,
    return
  }
  func.func @transform_0(%arg0: i32) -> (i32, i32) {
    %c0_i32 = arith.constant 0 : i32
    %c0_i32_0 = arith.constant 0 : i32
    return %arg0, %c0_i32 : i32, i32
  }
  func.func @transform_1(%arg0: i32) -> (i32, i32) {
    %c0_i32 = arith.constant 0 : i32
    %c0_i32_0 = arith.constant 0 : i32
    %c0_i32_1 = arith.constant 0 : i32
    return %c0_i32, %c0_i32_0 : i32, i32
  }
  func.func @transform_2(%arg0: i32) -> (i32, i32) {
    %c0_i32 = arith.constant 0 : i32
    %c0_i32_0 = arith.constant 0 : i32
    %c0_i32_1 = arith.constant 0 : i32
    return %c0_i32, %c0_i32_0 : i32, i32
  }
  func.func @transform_3(%arg0: i32) -> (i32, i32) {
    %c0_i32 = arith.constant 0 : i32
    %c0_i32_0 = arith.constant 0 : i32
    %c0_i32_1 = arith.constant 0 : i32
    return %c0_i32, %c0_i32_0 : i32, i32
  }
  func.func @transform_4(%arg0: i32) -> (i32, i32) {
    %c0_i32 = arith.constant 0 : i32
    %c0_i32_0 = arith.constant 0 : i32
    return %arg0, %c0_i32 : i32, i32
  }
  func.func @transform_5(%arg0: i32) -> (i32, i32, i32) {
    %c0_i32 = arith.constant 0 : i32
    %c0_i32_0 = arith.constant 0 : i32
    %c0_i32_1 = arith.constant 0 : i32
    return %arg0, %c0_i32, %c0_i32_0 : i32, i32, i32
  }
}

module attributes {stable_mosaic.version = 11 : i64} {
  func.func @_bn_add_relu_kernel(%arg0: i32, %arg1: memref<128x128xf32, #tpu.memory_space<vmem>>, %arg2: memref<1x128xf32, #tpu.memory_space<vmem>>, %arg3: memref<1x128xf32, #tpu.memory_space<vmem>>, %arg4: memref<128x128xbf16, #tpu.memory_space<vmem>>, %arg5: memref<1x128xf32, #tpu.memory_space<vmem>>, %arg6: memref<1x128xf32, #tpu.memory_space<vmem>>, %arg7: memref<128x128xf32, #tpu.memory_space<vmem>>) attributes {dimension_semantics = [#tpu.dimension_semantics<parallel>], iteration_bounds = array<i64: 1>, scalar_prefetch = 0 : i64, scratch_operands = 0 : i64, tpu.core_type = #tpu.core_type<tc>, window_params = [{transform_indices = @transform_0, window_bounds = array<i64: 128, 128>}, {pipeline_mode = #tpu.pipeline_mode<synchronous>, transform_indices = @transform_1, window_bounds = array<i64: 1, 128>}, {pipeline_mode = #tpu.pipeline_mode<synchronous>, transform_indices = @transform_2, window_bounds = array<i64: 1, 128>}, {transform_indices = @transform_3, window_bounds = array<i64: 128, 128>}, {pipeline_mode = #tpu.pipeline_mode<synchronous>, transform_indices = @transform_4, window_bounds = array<i64: 1, 128>}, {pipeline_mode = #tpu.pipeline_mode<synchronous>, transform_indices = @transform_5, window_bounds = array<i64: 1, 128>}, {transform_indices = @transform_6, window_bounds = array<i64: 128, 128>}]} {
    %c0 = arith.constant 0 : index
    %c0_0 = arith.constant 0 : index
    %0 = vector.load %arg4[%c0, %c0_0] : memref<128x128xbf16, #tpu.memory_space<vmem>>, vector<128x128xbf16>
    %1 = arith.extf %0 : vector<128x128xbf16> to vector<128x128xf32>
    %c0_1 = arith.constant 0 : index
    %c0_2 = arith.constant 0 : index
    %2 = vector.load %arg5[%c0_1, %c0_2] : memref<1x128xf32, #tpu.memory_space<vmem>>, vector<1x128xf32>
    %3 = vector.broadcast %2 : vector<1x128xf32> to vector<128x128xf32>
    %4 = arith.mulf %1, %3 : vector<128x128xf32>
    %c0_3 = arith.constant 0 : index
    %c0_4 = arith.constant 0 : index
    %5 = vector.load %arg6[%c0_3, %c0_4] : memref<1x128xf32, #tpu.memory_space<vmem>>, vector<1x128xf32>
    %6 = vector.broadcast %5 : vector<1x128xf32> to vector<128x128xf32>
    %7 = arith.addf %4, %6 : vector<128x128xf32>
    %c0_5 = arith.constant 0 : index
    %c0_6 = arith.constant 0 : index
    %8 = vector.load %arg1[%c0_5, %c0_6] : memref<128x128xf32, #tpu.memory_space<vmem>>, vector<128x128xf32>
    %c0_7 = arith.constant 0 : index
    %c0_8 = arith.constant 0 : index
    %9 = vector.load %arg2[%c0_7, %c0_8] : memref<1x128xf32, #tpu.memory_space<vmem>>, vector<1x128xf32>
    %10 = vector.broadcast %9 : vector<1x128xf32> to vector<128x128xf32>
    %11 = arith.mulf %8, %10 : vector<128x128xf32>
    %c0_9 = arith.constant 0 : index
    %c0_10 = arith.constant 0 : index
    %12 = vector.load %arg3[%c0_9, %c0_10] : memref<1x128xf32, #tpu.memory_space<vmem>>, vector<1x128xf32>
    %13 = vector.broadcast %12 : vector<1x128xf32> to vector<128x128xf32>
    %14 = arith.addf %11, %13 : vector<128x128xf32>
    %15 = arith.addf %14, %7 : vector<128x128xf32>
    %cst = arith.constant 0.000000e+00 : f32
    %16 = vector.broadcast %cst : f32 to vector<128x128xf32>
    %17 = arith.maximumf %15, %16 : vector<128x128xf32>
    %c0_11 = arith.constant 0 : index
    %c0_12 = arith.constant 0 : index
    %18 = vector.load %arg7[%c0_11, %c0_12] : memref<128x128xf32, #tpu.memory_space<vmem>>, vector<128x128xf32>
    tpu.vector_store %arg7[%c0_11, %c0_12], %17 {strides = array<i32>} : memref<128x128xf32, #tpu.memory_space<vmem>>, vector<128x128xf32>,
    return
  }
  func.func @transform_0(%arg0: i32) -> (i32, i32) {
    %c0_i32 = arith.constant 0 : i32
    %c0_i32_0 = arith.constant 0 : i32
    return %arg0, %c0_i32 : i32, i32
  }
  func.func @transform_1(%arg0: i32) -> (i32, i32) {
    %c0_i32 = arith.constant 0 : i32
    %c0_i32_0 = arith.constant 0 : i32
    %c0_i32_1 = arith.constant 0 : i32
    return %c0_i32, %c0_i32_0 : i32, i32
  }
  func.func @transform_2(%arg0: i32) -> (i32, i32) {
    %c0_i32 = arith.constant 0 : i32
    %c0_i32_0 = arith.constant 0 : i32
    %c0_i32_1 = arith.constant 0 : i32
    return %c0_i32, %c0_i32_0 : i32, i32
  }
  func.func @transform_3(%arg0: i32) -> (i32, i32) {
    %c0_i32 = arith.constant 0 : i32
    %c0_i32_0 = arith.constant 0 : i32
    return %arg0, %c0_i32 : i32, i32
  }
  func.func @transform_4(%arg0: i32) -> (i32, i32) {
    %c0_i32 = arith.constant 0 : i32
    %c0_i32_0 = arith.constant 0 : i32
    %c0_i32_1 = arith.constant 0 : i32
    return %c0_i32, %c0_i32_0 : i32, i32
  }
  func.func @transform_5(%arg0: i32) -> (i32, i32) {
    %c0_i32 = arith.constant 0 : i32
    %c0_i32_0 = arith.constant 0 : i32
    %c0_i32_1 = arith.constant 0 : i32
    return %c0_i32, %c0_i32_0 : i32, i32
  }
  func.func @transform_6(%arg0: i32) -> (i32, i32) {
    %c0_i32 = arith.constant 0 : i32
    %c0_i32_0 = arith.constant 0 : i32
    return %arg0, %c0_i32 : i32, i32
  }
}

module attributes {stable_mosaic.version = 11 : i64} {
  func.func @_mm_stats_kernel(%arg0: i32, %arg1: memref<128x128xbf16, #tpu.memory_space<vmem>>, %arg2: memref<128x128xbf16, #tpu.memory_space<vmem>>, %arg3: memref<128x128xbf16, #tpu.memory_space<vmem>>, %arg4: memref<1x2x128xf32, #tpu.memory_space<vmem>>) attributes {dimension_semantics = [#tpu.dimension_semantics<parallel>], iteration_bounds = array<i64: 1>, scalar_prefetch = 0 : i64, scratch_operands = 0 : i64, tpu.core_type = #tpu.core_type<tc>, window_params = [{transform_indices = @transform_0, window_bounds = array<i64: 128, 128>}, {pipeline_mode = #tpu.pipeline_mode<synchronous>, transform_indices = @transform_1, window_bounds = array<i64: 128, 128>}, {transform_indices = @transform_2, window_bounds = array<i64: 128, 128>}, {transform_indices = @transform_3, window_bounds = array<i64: 1, 2, 128>}]} {
    %c0 = arith.constant 0 : index
    %c0_0 = arith.constant 0 : index
    %0 = vector.load %arg1[%c0, %c0_0] : memref<128x128xbf16, #tpu.memory_space<vmem>>, vector<128x128xbf16>
    %c0_1 = arith.constant 0 : index
    %c0_2 = arith.constant 0 : index
    %1 = vector.load %arg2[%c0_1, %c0_2] : memref<128x128xbf16, #tpu.memory_space<vmem>>, vector<128x128xbf16>
    %cst = arith.constant dense<0.000000e+00> : vector<128x128xf32>
    %2 = tpu.matmul %0, %1, %cst {dimension_numbers = #tpu.dot_dimension_numbers<[1], [0], [0], [1], [0, 0, 1, 1], [], []>} : vector<128x128xbf16>, vector<128x128xbf16>, vector<128x128xf32> -> vector<128x128xf32>
    %3 = arith.truncf %2 : vector<128x128xf32> to vector<128x128xbf16>
    %c0_3 = arith.constant 0 : index
    %c0_4 = arith.constant 0 : index
    %4 = vector.load %arg3[%c0_3, %c0_4] : memref<128x128xbf16, #tpu.memory_space<vmem>>, vector<128x128xbf16>
    tpu.vector_store %arg3[%c0_3, %c0_4], %3 {strides = array<i32>} : memref<128x128xbf16, #tpu.memory_space<vmem>>, vector<128x128xbf16>,
    %cst_5 = arith.constant dense<0.000000e+00> : vector<128xf32>
    %5 = vector.multi_reduction <add>, %2, %cst_5 [0] : vector<128x128xf32> to vector<128xf32>
    %6 = vector.shape_cast %5 : vector<128xf32> to vector<1x128xf32>
    %7 = arith.mulf %2, %2 : vector<128x128xf32>
    %cst_6 = arith.constant dense<0.000000e+00> : vector<128xf32>
    %8 = vector.multi_reduction <add>, %7, %cst_6 [0] : vector<128x128xf32> to vector<128xf32>
    %9 = vector.shape_cast %8 : vector<128xf32> to vector<1x128xf32>
    %10 = tpu.concatenate %6, %9 in 0 : vector<1x128xf32>, vector<1x128xf32> -> vector<2x128xf32>
    %11 = vector.shape_cast %10 : vector<2x128xf32> to vector<1x2x128xf32>
    %c0_7 = arith.constant 0 : index
    %c0_8 = arith.constant 0 : index
    %c0_9 = arith.constant 0 : index
    %12 = vector.load %arg4[%c0_7, %c0_8, %c0_9] : memref<1x2x128xf32, #tpu.memory_space<vmem>>, vector<1x2x128xf32>
    tpu.vector_store %arg4[%c0_7, %c0_8, %c0_9], %11 {strides = array<i32>} : memref<1x2x128xf32, #tpu.memory_space<vmem>>, vector<1x2x128xf32>,
    return
  }
  func.func @transform_0(%arg0: i32) -> (i32, i32) {
    %c0_i32 = arith.constant 0 : i32
    %c0_i32_0 = arith.constant 0 : i32
    return %arg0, %c0_i32 : i32, i32
  }
  func.func @transform_1(%arg0: i32) -> (i32, i32) {
    %c0_i32 = arith.constant 0 : i32
    %c0_i32_0 = arith.constant 0 : i32
    %c0_i32_1 = arith.constant 0 : i32
    return %c0_i32, %c0_i32_0 : i32, i32
  }
  func.func @transform_2(%arg0: i32) -> (i32, i32) {
    %c0_i32 = arith.constant 0 : i32
    %c0_i32_0 = arith.constant 0 : i32
    return %arg0, %c0_i32 : i32, i32
  }
  func.func @transform_3(%arg0: i32) -> (i32, i32, i32) {
    %c0_i32 = arith.constant 0 : i32
    %c0_i32_0 = arith.constant 0 : i32
    %c0_i32_1 = arith.constant 0 : i32
    return %arg0, %c0_i32, %c0_i32_0 : i32, i32, i32
  }
}

module attributes {stable_mosaic.version = 11 : i64} {
  func.func @_conv3x3_stats_kernel(%arg0: i32, %arg1: i32, %arg2: memref<1x4x9x9x128xbf16, #tpu.memory_space<vmem>>, %arg3: memref<9x128x128xbf16, #tpu.memory_space<vmem>>, %arg4: memref<64x128xbf16, #tpu.memory_space<vmem>>, %arg5: memref<1x2x128xf32, #tpu.memory_space<vmem>>) attributes {dimension_semantics = [#tpu.dimension_semantics<parallel>, #tpu.dimension_semantics<parallel>], iteration_bounds = array<i64: 2, 1>, scalar_prefetch = 0 : i64, scratch_operands = 0 : i64, tpu.core_type = #tpu.core_type<tc>, window_params = [{transform_indices = @transform_0, window_bounds = array<i64: 1, 4, 9, 9, 128>}, {pipeline_mode = #tpu.pipeline_mode<synchronous>, transform_indices = @transform_1, window_bounds = array<i64: 9, 128, 128>}, {transform_indices = @transform_2, window_bounds = array<i64: 64, 128>}, {transform_indices = @transform_3, window_bounds = array<i64: 1, 2, 128>}]} {
    %c8_i32 = arith.constant 8 : i32
    %0 = arith.muli %arg1, %c8_i32 : i32
    %cst = arith.constant 0.000000e+00 : f32
    %1 = vector.broadcast %cst : f32 to vector<64x128xf32>
    %c0_i32 = arith.constant 0 : i32
    %2 = arith.addi %0, %c0_i32 : i32
    %c0 = arith.constant 0 : index
    %c0_0 = arith.constant 0 : index
    %3 = arith.index_cast %2 : i32 to index
    %c0_1 = arith.constant 0 : index
    %c0_2 = arith.constant 0 : index
    %4 = vector.load %arg2[%c0, %c0_0, %3, %c0_1, %c0_2] : memref<1x4x9x9x128xbf16, #tpu.memory_space<vmem>>, vector<1x1x8x8x128xbf16>
    %5 = vector.shape_cast %4 : vector<1x1x8x8x128xbf16> to vector<8x8x128xbf16>
    %6 = vector.shape_cast %5 : vector<8x8x128xbf16> to vector<64x128xbf16>
    %c0_3 = arith.constant 0 : index
    %c0_4 = arith.constant 0 : index
    %c0_5 = arith.constant 0 : index
    %7 = vector.load %arg3[%c0_3, %c0_4, %c0_5] : memref<9x128x128xbf16, #tpu.memory_space<vmem>>, vector<1x128x128xbf16>
    %8 = vector.shape_cast %7 : vector<1x128x128xbf16> to vector<128x128xbf16>
    %cst_6 = arith.constant dense<0.000000e+00> : vector<64x128xf32>
    %9 = tpu.matmul %6, %8, %cst_6 {dimension_numbers = #tpu.dot_dimension_numbers<[1], [0], [0], [1], [0, 0, 1, 1], [], []>} : vector<64x128xbf16>, vector<128x128xbf16>, vector<64x128xf32> -> vector<64x128xf32>
    %10 = arith.addf %1, %9 : vector<64x128xf32>
    %c0_i32_7 = arith.constant 0 : i32
    %11 = arith.addi %0, %c0_i32_7 : i32
    %c0_8 = arith.constant 0 : index
    %c1 = arith.constant 1 : index
    %12 = arith.index_cast %11 : i32 to index
    %c0_9 = arith.constant 0 : index
    %c0_10 = arith.constant 0 : index
    %13 = vector.load %arg2[%c0_8, %c1, %12, %c0_9, %c0_10] : memref<1x4x9x9x128xbf16, #tpu.memory_space<vmem>>, vector<1x1x8x8x128xbf16>
    %14 = vector.shape_cast %13 : vector<1x1x8x8x128xbf16> to vector<8x8x128xbf16>
    %15 = vector.shape_cast %14 : vector<8x8x128xbf16> to vector<64x128xbf16>
    %c1_11 = arith.constant 1 : index
    %c0_12 = arith.constant 0 : index
    %c0_13 = arith.constant 0 : index
    %16 = vector.load %arg3[%c1_11, %c0_12, %c0_13] : memref<9x128x128xbf16, #tpu.memory_space<vmem>>, vector<1x128x128xbf16>
    %17 = vector.shape_cast %16 : vector<1x128x128xbf16> to vector<128x128xbf16>
    %cst_14 = arith.constant dense<0.000000e+00> : vector<64x128xf32>
    %18 = tpu.matmul %15, %17, %cst_14 {dimension_numbers = #tpu.dot_dimension_numbers<[1], [0], [0], [1], [0, 0, 1, 1], [], []>} : vector<64x128xbf16>, vector<128x128xbf16>, vector<64x128xf32> -> vector<64x128xf32>
    %19 = arith.addf %10, %18 : vector<64x128xf32>
    %c0_i32_15 = arith.constant 0 : i32
    %20 = arith.addi %0, %c0_i32_15 : i32
    %c0_16 = arith.constant 0 : index
    %c0_17 = arith.constant 0 : index
    %21 = arith.index_cast %20 : i32 to index
    %c1_18 = arith.constant 1 : index
    %c0_19 = arith.constant 0 : index
    %22 = vector.load %arg2[%c0_16, %c0_17, %21, %c1_18, %c0_19] : memref<1x4x9x9x128xbf16, #tpu.memory_space<vmem>>, vector<1x1x8x8x128xbf16>
    %23 = vector.shape_cast %22 : vector<1x1x8x8x128xbf16> to vector<8x8x128xbf16>
    %24 = vector.shape_cast %23 : vector<8x8x128xbf16> to vector<64x128xbf16>
    %c2 = arith.constant 2 : index
    %c0_20 = arith.constant 0 : index
    %c0_21 = arith.constant 0 : index
    %25 = vector.load %arg3[%c2, %c0_20, %c0_21] : memref<9x128x128xbf16, #tpu.memory_space<vmem>>, vector<1x128x128xbf16>
    %26 = vector.shape_cast %25 : vector<1x128x128xbf16> to vector<128x128xbf16>
    %cst_22 = arith.constant dense<0.000000e+00> : vector<64x128xf32>
    %27 = tpu.matmul %24, %26, %cst_22 {dimension_numbers = #tpu.dot_dimension_numbers<[1], [0], [0], [1], [0, 0, 1, 1], [], []>} : vector<64x128xbf16>, vector<128x128xbf16>, vector<64x128xf32> -> vector<64x128xf32>
    %28 = arith.addf %19, %27 : vector<64x128xf32>
    %c0_i32_23 = arith.constant 0 : i32
    %29 = arith.addi %0, %c0_i32_23 : i32
    %c0_24 = arith.constant 0 : index
    %c2_25 = arith.constant 2 : index
    %30 = arith.index_cast %29 : i32 to index
    %c0_26 = arith.constant 0 : index
    %c0_27 = arith.constant 0 : index
    %31 = vector.load %arg2[%c0_24, %c2_25, %30, %c0_26, %c0_27] : memref<1x4x9x9x128xbf16, #tpu.memory_space<vmem>>, vector<1x1x8x8x128xbf16>
    %32 = vector.shape_cast %31 : vector<1x1x8x8x128xbf16> to vector<8x8x128xbf16>
    %33 = vector.shape_cast %32 : vector<8x8x128xbf16> to vector<64x128xbf16>
    %c3 = arith.constant 3 : index
    %c0_28 = arith.constant 0 : index
    %c0_29 = arith.constant 0 : index
    %34 = vector.load %arg3[%c3, %c0_28, %c0_29] : memref<9x128x128xbf16, #tpu.memory_space<vmem>>, vector<1x128x128xbf16>
    %35 = vector.shape_cast %34 : vector<1x128x128xbf16> to vector<128x128xbf16>
    %cst_30 = arith.constant dense<0.000000e+00> : vector<64x128xf32>
    %36 = tpu.matmul %33, %35, %cst_30 {dimension_numbers = #tpu.dot_dimension_numbers<[1], [0], [0], [1], [0, 0, 1, 1], [], []>} : vector<64x128xbf16>, vector<128x128xbf16>, vector<64x128xf32> -> vector<64x128xf32>
    %37 = arith.addf %28, %36 : vector<64x128xf32>
    %c0_i32_31 = arith.constant 0 : i32
    %38 = arith.addi %0, %c0_i32_31 : i32
    %c0_32 = arith.constant 0 : index
    %c3_33 = arith.constant 3 : index
    %39 = arith.index_cast %38 : i32 to index
    %c0_34 = arith.constant 0 : index
    %c0_35 = arith.constant 0 : index
    %40 = vector.load %arg2[%c0_32, %c3_33, %39, %c0_34, %c0_35] : memref<1x4x9x9x128xbf16, #tpu.memory_space<vmem>>, vector<1x1x8x8x128xbf16>
    %41 = vector.shape_cast %40 : vector<1x1x8x8x128xbf16> to vector<8x8x128xbf16>
    %42 = vector.shape_cast %41 : vector<8x8x128xbf16> to vector<64x128xbf16>
    %c4 = arith.constant 4 : index
    %c0_36 = arith.constant 0 : index
    %c0_37 = arith.constant 0 : index
    %43 = vector.load %arg3[%c4, %c0_36, %c0_37] : memref<9x128x128xbf16, #tpu.memory_space<vmem>>, vector<1x128x128xbf16>
    %44 = vector.shape_cast %43 : vector<1x128x128xbf16> to vector<128x128xbf16>
    %cst_38 = arith.constant dense<0.000000e+00> : vector<64x128xf32>
    %45 = tpu.matmul %42, %44, %cst_38 {dimension_numbers = #tpu.dot_dimension_numbers<[1], [0], [0], [1], [0, 0, 1, 1], [], []>} : vector<64x128xbf16>, vector<128x128xbf16>, vector<64x128xf32> -> vector<64x128xf32>
    %46 = arith.addf %37, %45 : vector<64x128xf32>
    %c0_i32_39 = arith.constant 0 : i32
    %47 = arith.addi %0, %c0_i32_39 : i32
    %c0_40 = arith.constant 0 : index
    %c2_41 = arith.constant 2 : index
    %48 = arith.index_cast %47 : i32 to index
    %c1_42 = arith.constant 1 : index
    %c0_43 = arith.constant 0 : index
    %49 = vector.load %arg2[%c0_40, %c2_41, %48, %c1_42, %c0_43] : memref<1x4x9x9x128xbf16, #tpu.memory_space<vmem>>, vector<1x1x8x8x128xbf16>
    %50 = vector.shape_cast %49 : vector<1x1x8x8x128xbf16> to vector<8x8x128xbf16>
    %51 = vector.shape_cast %50 : vector<8x8x128xbf16> to vector<64x128xbf16>
    %c5 = arith.constant 5 : index
    %c0_44 = arith.constant 0 : index
    %c0_45 = arith.constant 0 : index
    %52 = vector.load %arg3[%c5, %c0_44, %c0_45] : memref<9x128x128xbf16, #tpu.memory_space<vmem>>, vector<1x128x128xbf16>
    %53 = vector.shape_cast %52 : vector<1x128x128xbf16> to vector<128x128xbf16>
    %cst_46 = arith.constant dense<0.000000e+00> : vector<64x128xf32>
    %54 = tpu.matmul %51, %53, %cst_46 {dimension_numbers = #tpu.dot_dimension_numbers<[1], [0], [0], [1], [0, 0, 1, 1], [], []>} : vector<64x128xbf16>, vector<128x128xbf16>, vector<64x128xf32> -> vector<64x128xf32>
    %55 = arith.addf %46, %54 : vector<64x128xf32>
    %c1_i32 = arith.constant 1 : i32
    %56 = arith.addi %0, %c1_i32 : i32
    %c0_47 = arith.constant 0 : index
    %c0_48 = arith.constant 0 : index
    %57 = arith.index_cast %56 : i32 to index
    %c0_49 = arith.constant 0 : index
    %c0_50 = arith.constant 0 : index
    %58 = vector.load %arg2[%c0_47, %c0_48, %57, %c0_49, %c0_50] : memref<1x4x9x9x128xbf16, #tpu.memory_space<vmem>>, vector<1x1x8x8x128xbf16>
    %59 = vector.shape_cast %58 : vector<1x1x8x8x128xbf16> to vector<8x8x128xbf16>
    %60 = vector.shape_cast %59 : vector<8x8x128xbf16> to vector<64x128xbf16>
    %c6 = arith.constant 6 : index
    %c0_51 = arith.constant 0 : index
    %c0_52 = arith.constant 0 : index
    %61 = vector.load %arg3[%c6, %c0_51, %c0_52] : memref<9x128x128xbf16, #tpu.memory_space<vmem>>, vector<1x128x128xbf16>
    %62 = vector.shape_cast %61 : vector<1x128x128xbf16> to vector<128x128xbf16>
    %cst_53 = arith.constant dense<0.000000e+00> : vector<64x128xf32>
    %63 = tpu.matmul %60, %62, %cst_53 {dimension_numbers = #tpu.dot_dimension_numbers<[1], [0], [0], [1], [0, 0, 1, 1], [], []>} : vector<64x128xbf16>, vector<128x128xbf16>, vector<64x128xf32> -> vector<64x128xf32>
    %64 = arith.addf %55, %63 : vector<64x128xf32>
    %c1_i32_54 = arith.constant 1 : i32
    %65 = arith.addi %0, %c1_i32_54 : i32
    %c0_55 = arith.constant 0 : index
    %c1_56 = arith.constant 1 : index
    %66 = arith.index_cast %65 : i32 to index
    %c0_57 = arith.constant 0 : index
    %c0_58 = arith.constant 0 : index
    %67 = vector.load %arg2[%c0_55, %c1_56, %66, %c0_57, %c0_58] : memref<1x4x9x9x128xbf16, #tpu.memory_space<vmem>>, vector<1x1x8x8x128xbf16>
    %68 = vector.shape_cast %67 : vector<1x1x8x8x128xbf16> to vector<8x8x128xbf16>
    %69 = vector.shape_cast %68 : vector<8x8x128xbf16> to vector<64x128xbf16>
    %c7 = arith.constant 7 : index
    %c0_59 = arith.constant 0 : index
    %c0_60 = arith.constant 0 : index
    %70 = vector.load %arg3[%c7, %c0_59, %c0_60] : memref<9x128x128xbf16, #tpu.memory_space<vmem>>, vector<1x128x128xbf16>
    %71 = vector.shape_cast %70 : vector<1x128x128xbf16> to vector<128x128xbf16>
    %cst_61 = arith.constant dense<0.000000e+00> : vector<64x128xf32>
    %72 = tpu.matmul %69, %71, %cst_61 {dimension_numbers = #tpu.dot_dimension_numbers<[1], [0], [0], [1], [0, 0, 1, 1], [], []>} : vector<64x128xbf16>, vector<128x128xbf16>, vector<64x128xf32> -> vector<64x128xf32>
    %73 = arith.addf %64, %72 : vector<64x128xf32>
    %c1_i32_62 = arith.constant 1 : i32
    %74 = arith.addi %0, %c1_i32_62 : i32
    %c0_63 = arith.constant 0 : index
    %c0_64 = arith.constant 0 : index
    %75 = arith.index_cast %74 : i32 to index
    %c1_65 = arith.constant 1 : index
    %c0_66 = arith.constant 0 : index
    %76 = vector.load %arg2[%c0_63, %c0_64, %75, %c1_65, %c0_66] : memref<1x4x9x9x128xbf16, #tpu.memory_space<vmem>>, vector<1x1x8x8x128xbf16>
    %77 = vector.shape_cast %76 : vector<1x1x8x8x128xbf16> to vector<8x8x128xbf16>
    %78 = vector.shape_cast %77 : vector<8x8x128xbf16> to vector<64x128xbf16>
    %c8 = arith.constant 8 : index
    %c0_67 = arith.constant 0 : index
    %c0_68 = arith.constant 0 : index
    %79 = vector.load %arg3[%c8, %c0_67, %c0_68] : memref<9x128x128xbf16, #tpu.memory_space<vmem>>, vector<1x128x128xbf16>
    %80 = vector.shape_cast %79 : vector<1x128x128xbf16> to vector<128x128xbf16>
    %cst_69 = arith.constant dense<0.000000e+00> : vector<64x128xf32>
    %81 = tpu.matmul %78, %80, %cst_69 {dimension_numbers = #tpu.dot_dimension_numbers<[1], [0], [0], [1], [0, 0, 1, 1], [], []>} : vector<64x128xbf16>, vector<128x128xbf16>, vector<64x128xf32> -> vector<64x128xf32>
    %82 = arith.addf %73, %81 : vector<64x128xf32>
    %83 = arith.truncf %82 : vector<64x128xf32> to vector<64x128xbf16>
    %c0_70 = arith.constant 0 : index
    %c0_71 = arith.constant 0 : index
    %84 = vector.load %arg4[%c0_70, %c0_71] : memref<64x128xbf16, #tpu.memory_space<vmem>>, vector<64x128xbf16>
    tpu.vector_store %arg4[%c0_70, %c0_71], %83 {strides = array<i32>} : memref<64x128xbf16, #tpu.memory_space<vmem>>, vector<64x128xbf16>,
    %cst_72 = arith.constant dense<0.000000e+00> : vector<128xf32>
    %85 = vector.multi_reduction <add>, %82, %cst_72 [0] : vector<64x128xf32> to vector<128xf32>
    %86 = vector.shape_cast %85 : vector<128xf32> to vector<1x128xf32>
    %87 = arith.mulf %82, %82 : vector<64x128xf32>
    %cst_73 = arith.constant dense<0.000000e+00> : vector<128xf32>
    %88 = vector.multi_reduction <add>, %87, %cst_73 [0] : vector<64x128xf32> to vector<128xf32>
    %89 = vector.shape_cast %88 : vector<128xf32> to vector<1x128xf32>
    %90 = tpu.concatenate %86, %89 in 0 : vector<1x128xf32>, vector<1x128xf32> -> vector<2x128xf32>
    %91 = vector.shape_cast %90 : vector<2x128xf32> to vector<1x2x128xf32>
    %c0_74 = arith.constant 0 : index
    %c0_75 = arith.constant 0 : index
    %c0_76 = arith.constant 0 : index
    %92 = vector.load %arg5[%c0_74, %c0_75, %c0_76] : memref<1x2x128xf32, #tpu.memory_space<vmem>>, vector<1x2x128xf32>
    tpu.vector_store %arg5[%c0_74, %c0_75, %c0_76], %91 {strides = array<i32>} : memref<1x2x128xf32, #tpu.memory_space<vmem>>, vector<1x2x128xf32>,
    return
  }
  func.func @transform_0(%arg0: i32, %arg1: i32) -> (i32, i32, i32, i32, i32) {
    %c0_i32 = arith.constant 0 : i32
    %c0_i32_0 = arith.constant 0 : i32
    %c0_i32_1 = arith.constant 0 : i32
    %c0_i32_2 = arith.constant 0 : i32
    %c0_i32_3 = arith.constant 0 : i32
    return %arg0, %c0_i32, %c0_i32_0, %c0_i32_1, %c0_i32_2 : i32, i32, i32, i32, i32
  }
  func.func @transform_1(%arg0: i32, %arg1: i32) -> (i32, i32, i32) {
    %c0_i32 = arith.constant 0 : i32
    %c0_i32_0 = arith.constant 0 : i32
    %c0_i32_1 = arith.constant 0 : i32
    %c0_i32_2 = arith.constant 0 : i32
    return %c0_i32, %c0_i32_0, %c0_i32_1 : i32, i32, i32
  }
  func.func @transform_2(%arg0: i32, %arg1: i32) -> (i32, i32) {
    %c1_i32 = arith.constant 1 : i32
    %0 = arith.muli %arg0, %c1_i32 : i32
    %1 = arith.addi %0, %arg1 : i32
    %c0_i32 = arith.constant 0 : i32
    %c0_i32_0 = arith.constant 0 : i32
    return %1, %c0_i32 : i32, i32
  }
  func.func @transform_3(%arg0: i32, %arg1: i32) -> (i32, i32, i32) {
    %c1_i32 = arith.constant 1 : i32
    %0 = arith.muli %arg0, %c1_i32 : i32
    %1 = arith.addi %0, %arg1 : i32
    %c0_i32 = arith.constant 0 : i32
    %c0_i32_0 = arith.constant 0 : i32
    %c0_i32_1 = arith.constant 0 : i32
    return %1, %c0_i32, %c0_i32_0 : i32, i32, i32
  }
}

</mosaic_0001>

<bundles_post_ra>
// kernel: bottleneck_forward.7
= control target key start
LH: loop header
LB: loop body
LE: loop exit
PB: predicated region body
PF: predicated region fallthrough
CT: control target
= control target key end

     0   :  { %s1502_s0 = inlined_call_operand.vmem [shape: bf16[512,128], index: 0, kind: input, shape index: {}]   ;;  %s1503_s1 = inlined_call_operand.vmem [shape: f32[1,128], index: 1, kind: input, shape index: {}]   ;;  %s1504_s2 = inlined_call_operand.vmem [shape: f32[1,128], index: 2, kind: input, shape index: {}]   ;;  %s1505_s3 = inlined_call_operand.vmem [shape: bf16[512,128], index: 3, kind: output, shape index: {}]  }
   0x1   :  { %v803_v0 = vld [vmem:[%s1502_s0] sm:$0xff]   ;;  %v1090_v4 = vld [vmem:[%s1502_s0 + $0x8] sm:$0xff]   ;;  %v1091_v5 = vld [vmem:[%s1502_s0 + $0x10] sm:$0xff]  }
   0x2   :  { %v1178_v1 = vld [vmem:[%s1503_s1] ss:$0 sm:$0xff]  ;;  %v804_v2 = vunpack.c.l.bf16 %v803_v0  ;;  %v805_v3 = vunpack.c.h.bf16 %v803_v0  ;;  %v1092_v6 = vld [vmem:[%s1502_s0 + $0x18] sm:$0xff]   ;;  %v808_v8 = vunpack.c.l.bf16 %v1090_v4  ;;  %v809_v9 = vunpack.c.h.bf16 %v1090_v4  ;;  %v1094_v33 = vld [vmem:[%s1502_s0 + $0x28] sm:$0xff]  }
   0x3   :  { %v1192_v7 = vld [vmem:[%s1504_s2] ss:$0 sm:$0xff]  ;;  %v812_v10 = vunpack.c.l.bf16 %v1091_v5  ;;  %v813_v11 = vunpack.c.h.bf16 %v1091_v5  ;;  %v816_v14 = vunpack.c.l.bf16 %v1092_v6  ;;  %v817_v15 = vunpack.c.h.bf16 %v1092_v6  ;;  %v1095_v38 = vld [vmem:[%s1502_s0 + $0x30] sm:$0xff]   ;;  %v1096_v43 = vld [vmem:[%s1502_s0 + $0x38] sm:$0xff]  }
   0x4   :  { %v149_v12 = vmul.f32 %v804_v2, %v1178_v1  ;;  %v150_v13 = vmul.f32 %v805_v3, %v1178_v1  ;;  %v151_v16 = vmul.f32 %v808_v8, %v1178_v1  ;;  %v152_v17 = vmul.f32 %v809_v9, %v1178_v1  ;;  %v1093_v28 = vld [vmem:[%s1502_s0 + $0x20] sm:$0xff]  }
   0x5   :  { %v153_v18 = vmul.f32 %v812_v10, %v1178_v1  ;;  %v154_v19 = vmul.f32 %v813_v11, %v1178_v1  ;;  %v155_v22 = vmul.f32 %v816_v14, %v1178_v1  ;;  %v156_v23 = vmul.f32 %v817_v15, %v1178_v1  ;;  %v1097_v0 = vld [vmem:[%s1502_s0 + $0x40] sm:$0xff]   ;;  %v1098_v11 = vld [vmem:[%s1502_s0 + $0x48] sm:$0xff]  }
   0x6   :  { %v220_v20 = vadd.f32 %v1192_v7, %v149_v12  ;;  %v221_v21 = vadd.f32 %v1192_v7, %v150_v13  ;;  %v222_v24 = vadd.f32 %v1192_v7, %v151_v16  ;;  %v223_v25 = vadd.f32 %v1192_v7, %v152_v17  ;;  %v1099_v16 = vld [vmem:[%s1502_s0 + $0x50] sm:$0xff]  }
   0x7   :  { %v224_v26 = vadd.f32 %v1192_v7, %v153_v18  ;;  %v225_v27 = vadd.f32 %v1192_v7, %v154_v19  ;;  %v226_v31 = vadd.f32 %v1192_v7, %v155_v22  ;;  %v227_v32 = vadd.f32 %v1192_v7, %v156_v23 }
   0x8   :  { %v284_v29 = vmax.f32 %v220_v20, 0.0  ;;  %v285_v30 = vmax.f32 %v221_v21, 0.0  ;;  %v286_v34 = vmax.f32 %v222_v24, 0.0  ;;  %v287_v35 = vmax.f32 %v223_v25, 0.0  ;;  %v1100_v25 = vld [vmem:[%s1502_s0 + $0x58] sm:$0xff]  }
   0x9   :  { %v288_v36 = vmax.f32 %v224_v26, 0.0  ;;  %v289_v37 = vmax.f32 %v225_v27, 0.0  ;;  %v290_v40 = vmax.f32 %v226_v31, 0.0  ;;  %v291_v41 = vmax.f32 %v227_v32, 0.0 }
   0xa   :  { %v933_v39 = vpack.c.bf16 %v285_v30, %v284_v29  ;;  %v820_v42 = vunpack.c.l.bf16 %v1093_v28  ;;  %v938_v44 = vpack.c.bf16 %v287_v35, %v286_v34  ;;  %v821_v46 = vunpack.c.h.bf16 %v1093_v28 }
   0xb   :  { %v943_v45 = vpack.c.bf16 %v289_v37, %v288_v36  ;;  %v824_v47 = vunpack.c.l.bf16 %v1094_v33  ;;  %v948_v48 = vpack.c.bf16 %v291_v41, %v290_v40  ;;  %v825_v50 = vunpack.c.h.bf16 %v1094_v33 }
   0xc   :  { %934 = vst [vmem:[%s1505_s3] sm:$0xff] %v933_v39   ;;  %v157_v49 = vmul.f32 %v820_v42, %v1178_v1  ;;  %v828_v51 = vunpack.c.l.bf16 %v1095_v38  ;;  %1121 = vst [vmem:[%s1505_s3 + $0x8] sm:$0xff] %v938_v44   ;;  %v158_v52 = vmul.f32 %v821_v46, %v1178_v1  ;;  %v829_v54 = vunpack.c.h.bf16 %v1095_v38  ;;  %v1101_v38 = vld [vmem:[%s1502_s0 + $0x60] sm:$0xff]  }
   0xd   :  { %1122 = vst [vmem:[%s1505_s3 + $0x10] sm:$0xff] %v943_v45   ;;  %v159_v53 = vmul.f32 %v824_v47, %v1178_v1  ;;  %v832_v55 = vunpack.c.l.bf16 %v1096_v43  ;;  %1123 = vst [vmem:[%s1505_s3 + $0x18] sm:$0xff] %v948_v48   ;;  %v160_v57 = vmul.f32 %v825_v50, %v1178_v1  ;;  %v833_v59 = vunpack.c.h.bf16 %v1096_v43 }
   0xe   :  { %v228_v56 = vadd.f32 %v1192_v7, %v157_v49  ;;  %v161_v58 = vmul.f32 %v828_v51, %v1178_v1  ;;  %v229_v60 = vadd.f32 %v1192_v7, %v158_v52  ;;  %v162_v62 = vmul.f32 %v829_v54, %v1178_v1  ;;  %v1102_v51 = vld [vmem:[%s1502_s0 + $0x68] sm:$0xff]  }
   0xf   :  { %v230_v61 = vadd.f32 %v1192_v7, %v159_v53  ;;  %v163_v63 = vmul.f32 %v832_v55, %v1178_v1  ;;  %v231_v3 = vadd.f32 %v1192_v7, %v160_v57  ;;  %v164_v5 = vmul.f32 %v833_v59, %v1178_v1 }
  0x10   :  { %v292_v2 = vmax.f32 %v228_v56, 0.0  ;;  %v232_v4 = vadd.f32 %v1192_v7, %v161_v58  ;;  %v293_v6 = vmax.f32 %v229_v60, 0.0  ;;  %v233_v9 = vadd.f32 %v1192_v7, %v162_v62  ;;  %v1103_v60 = vld [vmem:[%s1502_s0 + $0x70] sm:$0xff]  }
  0x11   :  { %v294_v8 = vmax.f32 %v230_v61, 0.0  ;;  %v234_v10 = vadd.f32 %v1192_v7, %v163_v63  ;;  %v295_v12 = vmax.f32 %v231_v3, 0.0  ;;  %v235_v14 = vadd.f32 %v1192_v7, %v164_v5 }
  0x12   :  { %v296_v13 = vmax.f32 %v232_v4, 0.0  ;;  %v836_v15 = vunpack.c.l.bf16 %v1097_v0  ;;  %v953_v17 = vpack.c.bf16 %v293_v6, %v292_v2  ;;  %v297_v18 = vmax.f32 %v233_v9, 0.0  ;;  %v1104_v2 = vld [vmem:[%s1502_s0 + $0x78] sm:$0xff]  }
  0x13   :  { %v298_v19 = vmax.f32 %v234_v10, 0.0  ;;  %v837_v20 = vunpack.c.h.bf16 %v1097_v0  ;;  %v958_v21 = vpack.c.bf16 %v295_v12, %v294_v8  ;;  %v299_v22 = vmax.f32 %v235_v14, 0.0  ;;  %v1105_v12 = vld [vmem:[%s1502_s0 + $0x80] sm:$0xff]  }
  0x14   :  { %v165_v23 = vmul.f32 %v836_v15, %v1178_v1  ;;  %v840_v24 = vunpack.c.l.bf16 %v1098_v11  ;;  %1124 = vst [vmem:[%s1505_s3 + $0x20] sm:$0xff] %v953_v17   ;;  %v963_v26 = vpack.c.bf16 %v297_v18, %v296_v13  ;;  %v841_v28 = vunpack.c.h.bf16 %v1098_v11 }
  0x15   :  { %v166_v27 = vmul.f32 %v837_v20, %v1178_v1  ;;  %v844_v29 = vunpack.c.l.bf16 %v1099_v16  ;;  %1125 = vst [vmem:[%s1505_s3 + $0x28] sm:$0xff] %v958_v21   ;;  %v968_v30 = vpack.c.bf16 %v299_v22, %v298_v19  ;;  %v845_v33 = vunpack.c.h.bf16 %v1099_v16 }
  0x16   :  { %v236_v31 = vadd.f32 %v1192_v7, %v165_v23  ;;  %v167_v32 = vmul.f32 %v840_v24, %v1178_v1  ;;  %1126 = vst [vmem:[%s1505_s3 + $0x30] sm:$0xff] %v963_v26   ;;  %v168_v35 = vmul.f32 %v841_v28, %v1178_v1  ;;  %v848_v37 = vunpack.c.l.bf16 %v1100_v25 }
  0x17   :  { %v237_v34 = vadd.f32 %v1192_v7, %v166_v27  ;;  %v169_v36 = vmul.f32 %v844_v29, %v1178_v1  ;;  %1127 = vst [vmem:[%s1505_s3 + $0x38] sm:$0xff] %v968_v30   ;;  %v170_v41 = vmul.f32 %v845_v33, %v1178_v1  ;;  %v849_v42 = vunpack.c.h.bf16 %v1100_v25  ;;  %v1106_v29 = vld [vmem:[%s1502_s0 + $0x88] sm:$0xff]  }
  0x18   :  { %v300_v39 = vmax.f32 %v236_v31, 0.0  ;;  %v238_v40 = vadd.f32 %v1192_v7, %v167_v32  ;;  %v239_v44 = vadd.f32 %v1192_v7, %v168_v35  ;;  %v171_v46 = vmul.f32 %v848_v37, %v1178_v1 }
  0x19   :  { %v301_v43 = vmax.f32 %v237_v34, 0.0  ;;  %v240_v45 = vadd.f32 %v1192_v7, %v169_v36  ;;  %v241_v48 = vadd.f32 %v1192_v7, %v170_v41  ;;  %v172_v49 = vmul.f32 %v849_v42, %v1178_v1  ;;  %v1107_v34 = vld [vmem:[%s1502_s0 + $0x90] sm:$0xff]  }
  0x1a   :  { %v302_v47 = vmax.f32 %v238_v40, 0.0  ;;  %v852_v50 = vunpack.c.l.bf16 %v1101_v38  ;;  %v303_v53 = vmax.f32 %v239_v44, 0.0  ;;  %v242_v55 = vadd.f32 %v1192_v7, %v171_v46 }
  0x1b   :  { %v973_v52 = vpack.c.bf16 %v301_v43, %v300_v39  ;;  %v304_v54 = vmax.f32 %v240_v45, 0.0  ;;  %v305_v56 = vmax.f32 %v241_v48, 0.0  ;;  %v243_v57 = vadd.f32 %v1192_v7, %v172_v49  ;;  %v1108_v43 = vld [vmem:[%s1502_s0 + $0x98] sm:$0xff]  }
  0x1c   :  { %v853_v58 = vunpack.c.h.bf16 %v1101_v38  ;;  %v173_v59 = vmul.f32 %v852_v50, %v1178_v1  ;;  %v978_v61 = vpack.c.bf16 %v303_v53, %v302_v47  ;;  %v306_v62 = vmax.f32 %v242_v55, 0.0 }
  0x1d   :  { %1128 = vst [vmem:[%s1505_s3 + $0x40] sm:$0xff] %v973_v52   ;;  %v856_v63 = vunpack.c.l.bf16 %v1102_v51  ;;  %v857_v0 = vunpack.c.h.bf16 %v1102_v51  ;;  %v983_v3 = vpack.c.bf16 %v305_v56, %v304_v54  ;;  %v307_v4 = vmax.f32 %v243_v57, 0.0  ;;  %v1109_v56 = vld [vmem:[%s1502_s0 + $0xa0] sm:$0xff]  }
  0x1e   :  { %v174_v5 = vmul.f32 %v853_v58, %v1178_v1  ;;  %v244_v6 = vadd.f32 %v1192_v7, %v173_v59  ;;  %1129 = vst [vmem:[%s1505_s3 + $0x48] sm:$0xff] %v978_v61   ;;  %v860_v10 = vunpack.c.l.bf16 %v1103_v60  ;;  %v861_v11 = vunpack.c.h.bf16 %v1103_v60 }
  0x1f   :  { %v175_v8 = vmul.f32 %v856_v63, %v1178_v1  ;;  %v176_v9 = vmul.f32 %v857_v0, %v1178_v1  ;;  %1130 = vst [vmem:[%s1505_s3 + $0x50] sm:$0xff] %v983_v3   ;;  %v988_v13 = vpack.c.bf16 %v307_v4, %v306_v62  ;;  %v864_v16 = vunpack.c.l.bf16 %v1104_v2 }
  0x20   :  { %v245_v14 = vadd.f32 %v1192_v7, %v174_v5  ;;  %v308_v15 = vmax.f32 %v244_v6, 0.0  ;;  %v177_v19 = vmul.f32 %v860_v10, %v1178_v1  ;;  %v178_v20 = vmul.f32 %v861_v11, %v1178_v1 }
  0x21   :  { %v246_v17 = vadd.f32 %v1192_v7, %v175_v8  ;;  %v247_v18 = vadd.f32 %v1192_v7, %v176_v9  ;;  %1131 = vst [vmem:[%s1505_s3 + $0x58] sm:$0xff] %v988_v13   ;;  %v865_v22 = vunpack.c.h.bf16 %v1104_v2  ;;  %v179_v23 = vmul.f32 %v864_v16, %v1178_v1  ;;  %v1110_v2 = vld [vmem:[%s1502_s0 + $0xa8] sm:$0xff]   ;;  %v1111_v16 = vld [vmem:[%s1502_s0 + $0xb0] sm:$0xff]  }
  0x22   :  { %v309_v21 = vmax.f32 %v245_v14, 0.0  ;;  %v868_v24 = vunpack.c.l.bf16 %v1105_v12  ;;  %v248_v27 = vadd.f32 %v1192_v7, %v177_v19  ;;  %v249_v28 = vadd.f32 %v1192_v7, %v178_v20 }
  0x23   :  { %v310_v25 = vmax.f32 %v246_v17, 0.0  ;;  %v311_v26 = vmax.f32 %v247_v18, 0.0  ;;  %v180_v31 = vmul.f32 %v865_v22, %v1178_v1  ;;  %v250_v32 = vadd.f32 %v1192_v7, %v179_v23 }
  0x24   :  { %v993_v30 = vpack.c.bf16 %v309_v21, %v308_v15  ;;  %v869_v33 = vunpack.c.h.bf16 %v1105_v12  ;;  %v312_v36 = vmax.f32 %v248_v27, 0.0  ;;  %v313_v37 = vmax.f32 %v249_v28, 0.0  ;;  %v1112_v21 = vld [vmem:[%s1502_s0 + $0xb8] sm:$0xff]  }
  0x25   :  { %v998_v35 = vpack.c.bf16 %v311_v26, %v310_v25  ;;  %v181_v38 = vmul.f32 %v868_v24, %v1178_v1  ;;  %v251_v39 = vadd.f32 %v1192_v7, %v180_v31  ;;  %v314_v40 = vmax.f32 %v250_v32, 0.0 }
  0x26   :  { %1132 = vst [vmem:[%s1505_s3 + $0x60] sm:$0xff] %v993_v30   ;;  %v182_v41 = vmul.f32 %v869_v33, %v1178_v1  ;;  %v872_v42 = vunpack.c.l.bf16 %v1106_v29  ;;  %v1003_v44 = vpack.c.bf16 %v313_v37, %v312_v36  ;;  %v873_v46 = vunpack.c.h.bf16 %v1106_v29 }
  0x27   :  { %1133 = vst [vmem:[%s1505_s3 + $0x68] sm:$0xff] %v998_v35   ;;  %v252_v45 = vadd.f32 %v1192_v7, %v181_v38  ;;  %v876_v47 = vunpack.c.l.bf16 %v1107_v34  ;;  %v315_v48 = vmax.f32 %v251_v39, 0.0  ;;  %v877_v51 = vunpack.c.h.bf16 %v1107_v34  ;;  %v1113_v34 = vld [vmem:[%s1502_s0 + $0xc0] sm:$0xff]  }
  0x28   :  { %v253_v49 = vadd.f32 %v1192_v7, %v182_v41  ;;  %v183_v50 = vmul.f32 %v872_v42, %v1178_v1  ;;  %1134 = vst [vmem:[%s1505_s3 + $0x70] sm:$0xff] %v1003_v44   ;;  %v184_v53 = vmul.f32 %v873_v46, %v1178_v1  ;;  %v880_v55 = vunpack.c.l.bf16 %v1108_v43 }
  0x29   :  { %v316_v52 = vmax.f32 %v252_v45, 0.0  ;;  %v185_v54 = vmul.f32 %v876_v47, %v1178_v1  ;;  %v1008_v57 = vpack.c.bf16 %v315_v48, %v314_v40  ;;  %v186_v60 = vmul.f32 %v877_v51, %v1178_v1  ;;  %v1114_v47 = vld [vmem:[%s1502_s0 + $0xc8] sm:$0xff]  }
  0x2a   :  { %v317_v58 = vmax.f32 %v253_v49, 0.0  ;;  %v254_v59 = vadd.f32 %v1192_v7, %v183_v50  ;;  %v255_v61 = vadd.f32 %v1192_v7, %v184_v53  ;;  %v881_v63 = vunpack.c.h.bf16 %v1108_v43 }
  0x2b   :  { %v256_v62 = vadd.f32 %v1192_v7, %v185_v54  ;;  %v187_v0 = vmul.f32 %v880_v55, %v1178_v1  ;;  %1135 = vst [vmem:[%s1505_s3 + $0x78] sm:$0xff] %v1008_v57   ;;  %v257_v5 = vadd.f32 %v1192_v7, %v186_v60  ;;  %v884_v6 = vunpack.c.l.bf16 %v1109_v56 }
  0x2c   :  { %v1013_v3 = vpack.c.bf16 %v317_v58, %v316_v52  ;;  %v318_v4 = vmax.f32 %v254_v59, 0.0  ;;  %v319_v8 = vmax.f32 %v255_v61, 0.0  ;;  %v188_v10 = vmul.f32 %v881_v63, %v1178_v1  ;;  %v1115_v52 = vld [vmem:[%s1502_s0 + $0xd0] sm:$0xff]   ;;  %v1116_v61 = vld [vmem:[%s1502_s0 + $0xd8] sm:$0xff]  }
  0x2d   :  { %v320_v9 = vmax.f32 %v256_v62, 0.0  ;;  %v258_v11 = vadd.f32 %v1192_v7, %v187_v0  ;;  %v321_v12 = vmax.f32 %v257_v5, 0.0  ;;  %v885_v13 = vunpack.c.h.bf16 %v1109_v56 }
  0x2e   :  { %1136 = vst [vmem:[%s1505_s3 + $0x80] sm:$0xff] %v1013_v3   ;;  %v189_v14 = vmul.f32 %v884_v6, %v1178_v1  ;;  %v888_v15 = vunpack.c.l.bf16 %v1110_v2  ;;  %v1018_v17 = vpack.c.bf16 %v319_v8, %v318_v4  ;;  %v259_v18 = vadd.f32 %v1192_v7, %v188_v10 }
  0x2f   :  { %v322_v19 = vmax.f32 %v258_v11, 0.0  ;;  %v889_v20 = vunpack.c.h.bf16 %v1110_v2  ;;  %v1023_v22 = vpack.c.bf16 %v321_v12, %v320_v9  ;;  %v190_v23 = vmul.f32 %v885_v13, %v1178_v1  ;;  %v1117_v12 = vld [vmem:[%s1502_s0 + $0xe0] sm:$0xff]  }
  0x30   :  { %v260_v24 = vadd.f32 %v1192_v7, %v189_v14  ;;  %v191_v25 = vmul.f32 %v888_v15, %v1178_v1  ;;  %1137 = vst [vmem:[%s1505_s3 + $0x88] sm:$0xff] %v1018_v17   ;;  %v323_v26 = vmax.f32 %v259_v18, 0.0  ;;  %v892_v28 = vunpack.c.l.bf16 %v1111_v16 }
  0x31   :  { %v192_v27 = vmul.f32 %v889_v20, %v1178_v1  ;;  %v893_v29 = vunpack.c.h.bf16 %v1111_v16  ;;  %1138 = vst [vmem:[%s1505_s3 + $0x90] sm:$0xff] %v1023_v22   ;;  %v261_v30 = vadd.f32 %v1192_v7, %v190_v23  ;;  %v896_v33 = vunpack.c.l.bf16 %v1112_v21 }
  0x32   :  { %v324_v31 = vmax.f32 %v260_v24, 0.0  ;;  %v262_v32 = vadd.f32 %v1192_v7, %v191_v25  ;;  %v1028_v35 = vpack.c.bf16 %v323_v26, %v322_v19  ;;  %v193_v37 = vmul.f32 %v892_v28, %v1178_v1 }
  0x33   :  { %v263_v36 = vadd.f32 %v1192_v7, %v192_v27  ;;  %v194_v38 = vmul.f32 %v893_v29, %v1178_v1  ;;  %v325_v39 = vmax.f32 %v261_v30, 0.0  ;;  %v897_v41 = vunpack.c.h.bf16 %v1112_v21  ;;  %v1118_v21 = vld [vmem:[%s1502_s0 + $0xe8] sm:$0xff]  }
  0x34   :  { %v326_v40 = vmax.f32 %v262_v32, 0.0  ;;  %v195_v42 = vmul.f32 %v896_v33, %v1178_v1  ;;  %1139 = vst [vmem:[%s1505_s3 + $0x98] sm:$0xff] %v1028_v35   ;;  %v264_v44 = vadd.f32 %v1192_v7, %v193_v37  ;;  %v900_v46 = vunpack.c.l.bf16 %v1113_v34 }
  0x35   :  { %v327_v43 = vmax.f32 %v263_v36, 0.0  ;;  %v265_v45 = vadd.f32 %v1192_v7, %v194_v38  ;;  %v1033_v48 = vpack.c.bf16 %v325_v39, %v324_v31  ;;  %v196_v49 = vmul.f32 %v897_v41, %v1178_v1  ;;  %v1120_v39 = vld [vmem:[%s1502_s0 + $0xf8] sm:$0xff]  }
  0x36   :  { %v266_v50 = vadd.f32 %v1192_v7, %v195_v42  ;;  %v901_v51 = vunpack.c.h.bf16 %v1113_v34  ;;  %v328_v54 = vmax.f32 %v264_v44, 0.0  ;;  %v197_v56 = vmul.f32 %v900_v46, %v1178_v1  ;;  %v1119_v34 = vld [vmem:[%s1502_s0 + $0xf0] sm:$0xff]  }
  0x37   :  { %v1038_v53 = vpack.c.bf16 %v327_v43, %v326_v40  ;;  %v329_v55 = vmax.f32 %v265_v45, 0.0  ;;  %1140 = vst [vmem:[%s1505_s3 + $0xa0] sm:$0xff] %v1033_v48   ;;  %v267_v57 = vadd.f32 %v1192_v7, %v196_v49  ;;  %v904_v60 = vunpack.c.l.bf16 %v1114_v47 }
  0x38   :  { %v330_v58 = vmax.f32 %v266_v50, 0.0  ;;  %v198_v59 = vmul.f32 %v901_v51, %v1178_v1  ;;  %v268_v63 = vadd.f32 %v1192_v7, %v197_v56  ;;  %v905_v0 = vunpack.c.h.bf16 %v1114_v47 }
  0x39   :  { %1141 = vst [vmem:[%s1505_s3 + $0xa8] sm:$0xff] %v1038_v53   ;;  %v1043_v62 = vpack.c.bf16 %v329_v55, %v328_v54  ;;  %v908_v2 = vunpack.c.l.bf16 %v1115_v52  ;;  %v331_v3 = vmax.f32 %v267_v57, 0.0  ;;  %v199_v5 = vmul.f32 %v904_v60, %v1178_v1 }
  0x3a   :  { %v269_v4 = vadd.f32 %v1192_v7, %v198_v59  ;;  %v909_v6 = vunpack.c.h.bf16 %v1115_v52  ;;  %v332_v8 = vmax.f32 %v268_v63, 0.0  ;;  %v200_v9 = vmul.f32 %v905_v0, %v1178_v1 }
  0x3b   :  { %1142 = vst [vmem:[%s1505_s3 + $0xb0] sm:$0xff] %v1043_v62   ;;  %v201_v10 = vmul.f32 %v908_v2, %v1178_v1  ;;  %v912_v11 = vunpack.c.l.bf16 %v1116_v61  ;;  %v1048_v13 = vpack.c.bf16 %v331_v3, %v330_v58  ;;  %v270_v15 = vadd.f32 %v1192_v7, %v199_v5 }
  0x3c   :  { %v333_v14 = vmax.f32 %v269_v4, 0.0  ;;  %v202_v16 = vmul.f32 %v909_v6, %v1178_v1  ;;  %v271_v17 = vadd.f32 %v1192_v7, %v200_v9  ;;  %v913_v19 = vunpack.c.h.bf16 %v1116_v61 }
  0x3d   :  { %v272_v18 = vadd.f32 %v1192_v7, %v201_v10  ;;  %v203_v20 = vmul.f32 %v912_v11, %v1178_v1  ;;  %1143 = vst [vmem:[%s1505_s3 + $0xb8] sm:$0xff] %v1048_v13   ;;  %v334_v23 = vmax.f32 %v270_v15, 0.0  ;;  %v916_v25 = vunpack.c.l.bf16 %v1117_v12 }
  0x3e   :  { %v1053_v22 = vpack.c.bf16 %v333_v14, %v332_v8  ;;  %v273_v24 = vadd.f32 %v1192_v7, %v202_v16  ;;  %v335_v26 = vmax.f32 %v271_v17, 0.0  ;;  %v204_v28 = vmul.f32 %v913_v19, %v1178_v1 }
  0x3f   :  { %v336_v27 = vmax.f32 %v272_v18, 0.0  ;;  %v274_v29 = vadd.f32 %v1192_v7, %v203_v20  ;;  %v917_v31 = vunpack.c.h.bf16 %v1117_v12  ;;  %v205_v32 = vmul.f32 %v916_v25, %v1178_v1 }
  0x40   :  { %1144 = vst [vmem:[%s1505_s3 + $0xc0] sm:$0xff] %v1053_v22   ;;  %v337_v30 = vmax.f32 %v273_v24, 0.0  ;;  %v920_v33 = vunpack.c.l.bf16 %v1118_v21  ;;  %v1058_v35 = vpack.c.bf16 %v335_v26, %v334_v23  ;;  %v275_v36 = vadd.f32 %v1192_v7, %v204_v28 }
  0x41   :  { %v338_v37 = vmax.f32 %v274_v29, 0.0  ;;  %v921_v38 = vunpack.c.h.bf16 %v1118_v21  ;;  %v206_v41 = vmul.f32 %v917_v31, %v1178_v1  ;;  %v276_v42 = vadd.f32 %v1192_v7, %v205_v32 }
  0x42   :  { %v1063_v40 = vpack.c.bf16 %v337_v30, %v336_v27  ;;  %v207_v43 = vmul.f32 %v920_v33, %v1178_v1  ;;  %1145 = vst [vmem:[%s1505_s3 + $0xc8] sm:$0xff] %v1058_v35   ;;  %v339_v44 = vmax.f32 %v275_v36, 0.0  ;;  %v924_v46 = vunpack.c.l.bf16 %v1119_v34 }
  0x43   :  { %v208_v45 = vmul.f32 %v921_v38, %v1178_v1  ;;  %v925_v47 = vunpack.c.h.bf16 %v1119_v34  ;;  %v277_v48 = vadd.f32 %v1192_v7, %v206_v41  ;;  %v340_v49 = vmax.f32 %v276_v42, 0.0 }
  0x44   :  { %1146 = vst [vmem:[%s1505_s3 + $0xd0] sm:$0xff] %v1063_v40   ;;  %v278_v50 = vadd.f32 %v1192_v7, %v207_v43  ;;  %v928_v51 = vunpack.c.l.bf16 %v1120_v39  ;;  %v1068_v52 = vpack.c.bf16 %v339_v44, %v338_v37  ;;  %v209_v54 = vmul.f32 %v924_v46, %v1178_v1 }
  0x45   :  { %v279_v53 = vadd.f32 %v1192_v7, %v208_v45  ;;  %v210_v55 = vmul.f32 %v925_v47, %v1178_v1  ;;  %v341_v56 = vmax.f32 %v277_v48, 0.0  ;;  %v929_v58 = vunpack.c.h.bf16 %v1120_v39 }
  0x46   :  { %v342_v57 = vmax.f32 %v278_v50, 0.0  ;;  %v211_v59 = vmul.f32 %v928_v51, %v1178_v1  ;;  %1147 = vst [vmem:[%s1505_s3 + $0xd8] sm:$0xff] %v1068_v52   ;;  %v280_v61 = vadd.f32 %v1192_v7, %v209_v54 }
  0x47   :  { %v343_v60 = vmax.f32 %v279_v53, 0.0  ;;  %v281_v62 = vadd.f32 %v1192_v7, %v210_v55  ;;  %v1073_v63 = vpack.c.bf16 %v341_v56, %v340_v49  ;;  %v212_v0 = vmul.f32 %v929_v58, %v1178_v1 }
  0x48   :  { %v282_v2 = vadd.f32 %v1192_v7, %v211_v59  ;;  %v344_v4 = vmax.f32 %v280_v61, 0.0 }
  0x49   :  { %v1078_v3 = vpack.c.bf16 %v343_v60, %v342_v57  ;;  %v345_v5 = vmax.f32 %v281_v62, 0.0  ;;  %1148 = vst [vmem:[%s1505_s3 + $0xe0] sm:$0xff] %v1073_v63   ;;  %v283_v6 = vadd.f32 %v1192_v7, %v212_v0 }
  0x4a   :  { %v346_v8 = vmax.f32 %v282_v2, 0.0 }
  0x4b   :  { %1149 = vst [vmem:[%s1505_s3 + $0xe8] sm:$0xff] %v1078_v3   ;;  %v1083_v9 = vpack.c.bf16 %v345_v5, %v344_v4  ;;  %v347_v10 = vmax.f32 %v283_v6, 0.0 }
  0x4d   :  { %1150 = vst [vmem:[%s1505_s3 + $0xf0] sm:$0xff] %v1083_v9   ;;  %v1088_v1 = vpack.c.bf16 %v347_v10, %v346_v8 }
  0x4f   :  { %1151 = vst [vmem:[%s1505_s3 + $0xf8] sm:$0xff] %v1088_v1  }

// kernel: bottleneck_forward.6
= control target key start
LH: loop header
LB: loop body
LE: loop exit
PB: predicated region body
PF: predicated region fallthrough
CT: control target
= control target key end

     0   :  { %vm1145_vm0 = vcmask 1040384   ;;  %s2122_s1 = inlined_call_operand.vmem [shape: bf16[128,128], index: 1, kind: input, shape index: {}]   ;;  %s2123_s0 = inlined_call_operand.vmem [shape: bf16[512,128], index: 0, kind: input, shape index: {}]   ;;  %s2124_s2 = inlined_call_operand.vmem [shape: bf16[512,128], index: 2, kind: output, shape index: {0}]   ;;  %s2125_s3 = inlined_call_operand.vmem [shape: f32[1,2,128], index: 3, kind: output, shape index: {1}]  }
   0x1   :  { %v1651_v0 = vld [vmem:[%s2122_s1 + $0x38] sm:$0xff]   ;;  %v1652_v1 = vld [vmem:[%s2122_s1 + $0x30] sm:$0xff]   ;;  %v1653_v2 = vld [vmem:[%s2122_s1 + $0x28] sm:$0xff]  }
   0x2   :  { %1555 = vmatprep.subr.bf16.mxu0 %v1651_v0  ;;  %1635 = vmatprep.subr.bf16.mxu1 %v1651_v0  ;;  %v1654_v3 = vld [vmem:[%s2122_s1 + $0x20] sm:$0xff]   ;;  %v1655_v5 = vld [vmem:[%s2122_s1 + $0x18] sm:$0xff]   ;;  %v1656_v6 = vld [vmem:[%s2122_s1 + $0x10] sm:$0xff]  }
   0x3   :  { %1556 = vmatpush3.bf16.msra.mxu0 %v1651_v0  ;;  %1643 = vmatpush3.bf16.msra.mxu1 %v1651_v0  ;;  %v1659_v4 = vld [vmem:[%s2123_s0] sm:$0xff]   ;;  %v1657_v7 = vld [vmem:[%s2122_s1 + $0x8] sm:$0xff]   ;;  %v1661_v11 = vld [vmem:[%s2123_s0 + $0x10] sm:$0xff]  }
   0x4   :  { %1557 = vmatprep.subr.bf16.mxu0 %v1652_v1  ;;  %1636 = vmatprep.subr.bf16.mxu1 %v1652_v1  ;;  %v1658_v8 = vld [vmem:[%s2122_s1] sm:$0xff]   ;;  %v1660_v10 = vld [vmem:[%s2123_s0 + $0x8] sm:$0xff]   ;;  %v1677_v13 = vld [vmem:[%s2123_s0 + $0x90] sm:$0xff]  }
   0x5   :  { %1571 = vmatprep.mubr.bf16.mxu0 %v1659_v4  ;;  %v1675_v9 = vld [vmem:[%s2123_s0 + $0x80] sm:$0xff]   ;;  %v1676_v12 = vld [vmem:[%s2123_s0 + $0x88] sm:$0xff]   ;;  %v1662_v14 = vld [vmem:[%s2123_s0 + $0x18] sm:$0xff]  }
   0x6   :  { %1603 = vmatprep.mubr.bf16.mxu1 %v1675_v9  ;;  %v1663_v15 = vld [vmem:[%s2123_s0 + $0x20] sm:$0xff]   ;;  %v1678_v16 = vld [vmem:[%s2123_s0 + $0x98] sm:$0xff]   ;;  %v1664_v18 = vld [vmem:[%s2123_s0 + $0x28] sm:$0xff]  }
   0x7   :  { %1558 = vmatpush3.bf16.msra.mxu0 %v1652_v1  ;;  %1644 = vmatpush3.bf16.msra.mxu1 %v1652_v1  ;;  %v1679_v17 = vld [vmem:[%s2123_s0 + $0xa0] sm:$0xff]   ;;  %v1680_v19 = vld [vmem:[%s2123_s0 + $0xa8] sm:$0xff]   ;;  %v1665_v20 = vld [vmem:[%s2123_s0 + $0x30] sm:$0xff]  }
   0x8   :  { %1559 = vmatprep.subr.bf16.mxu0 %v1653_v2  ;;  %1637 = vmatprep.subr.bf16.mxu1 %v1653_v2  ;;  %v1681_v21 = vld [vmem:[%s2123_s0 + $0xb0] sm:$0xff]   ;;  %v1666_v22 = vld [vmem:[%s2123_s0 + $0x38] sm:$0xff]   ;;  %v1667_v24 = vld [vmem:[%s2123_s0 + $0x40] sm:$0xff]  }
   0x9   :  { %v1682_v23 = vld [vmem:[%s2123_s0 + $0xb8] sm:$0xff]   ;;  %v1683_v25 = vld [vmem:[%s2123_s0 + $0xc0] sm:$0xff]   ;;  %v1668_v26 = vld [vmem:[%s2123_s0 + $0x48] sm:$0xff]  }
   0xa   :  { %v1684_v27 = vld [vmem:[%s2123_s0 + $0xc8] sm:$0xff]   ;;  %v1669_v28 = vld [vmem:[%s2123_s0 + $0x50] sm:$0xff]   ;;  %v1670_v30 = vld [vmem:[%s2123_s0 + $0x58] sm:$0xff]  }
   0xb   :  { %1560 = vmatpush3.bf16.msra.mxu0 %v1653_v2  ;;  %1645 = vmatpush3.bf16.msra.mxu1 %v1653_v2  ;;  %v1685_v29 = vld [vmem:[%s2123_s0 + $0xd0] sm:$0xff]   ;;  %v1686_v31 = vld [vmem:[%s2123_s0 + $0xd8] sm:$0xff]   ;;  %v1671_v32 = vld [vmem:[%s2123_s0 + $0x60] sm:$0xff]  }
   0xc   :  { %1561 = vmatprep.subr.bf16.mxu0 %v1654_v3  ;;  %1638 = vmatprep.subr.bf16.mxu1 %v1654_v3  ;;  %v1687_v33 = vld [vmem:[%s2123_s0 + $0xe0] sm:$0xff]   ;;  %v1672_v34 = vld [vmem:[%s2123_s0 + $0x68] sm:$0xff]   ;;  %v1673_v36 = vld [vmem:[%s2123_s0 + $0x70] sm:$0xff]  }
   0xd   :  { %v1688_v35 = vld [vmem:[%s2123_s0 + $0xe8] sm:$0xff]   ;;  %v1689_v37 = vld [vmem:[%s2123_s0 + $0xf0] sm:$0xff]   ;;  %v1674_v38 = vld [vmem:[%s2123_s0 + $0x78] sm:$0xff]  }
   0xe   :  { %v1690_v39 = vld [vmem:[%s2123_s0 + $0xf8] sm:$0xff]  }
   0xf   :  { %1562 = vmatpush3.bf16.msra.mxu0 %v1654_v3  ;;  %1646 = vmatpush3.bf16.msra.mxu1 %v1654_v3 }
  0x10   :  { %1563 = vmatprep.subr.bf16.mxu0 %v1655_v5  ;;  %1639 = vmatprep.subr.bf16.mxu1 %v1655_v5 }
  0x13   :  { %1564 = vmatpush3.bf16.msra.mxu0 %v1655_v5  ;;  %1647 = vmatpush3.bf16.msra.mxu1 %v1655_v5 }
  0x14   :  { %1565 = vmatprep.subr.bf16.mxu0 %v1656_v6  ;;  %1640 = vmatprep.subr.bf16.mxu1 %v1656_v6 }
  0x17   :  { %1566 = vmatpush3.bf16.msra.mxu0 %v1656_v6  ;;  %1648 = vmatpush3.bf16.msra.mxu1 %v1656_v6 }
  0x18   :  { %1567 = vmatprep.subr.bf16.mxu0 %v1657_v7  ;;  %1641 = vmatprep.subr.bf16.mxu1 %v1657_v7 }
  0x1b   :  { %1568 = vmatpush3.bf16.msra.mxu0 %v1657_v7  ;;  %1649 = vmatpush3.bf16.msra.mxu1 %v1657_v7 }
  0x1c   :  { %1569 = vmatprep.subr.bf16.mxu0 %v1658_v8  ;;  %1642 = vmatprep.subr.bf16.mxu1 %v1658_v8 }
  0x1f   :  { %1570 = vmatpush3.bf16.msra.mxu0 %v1658_v8  ;;  %1650 = vmatpush3.bf16.msra.mxu1 %v1658_v8 }
  0x22   :  { %1572 = vmatmul.mubr.bf16.vlgmr.msra.gmra.mxu0 %v1660_v10  ;;  %1604 = vmatmul.mubr.bf16.vlgmr.msra.gmra.mxu1 %v1676_v12 }
  0x23   :  { %1575 = vmatprep.mubr.bf16.mxu0 %v1661_v11  ;;  %1607 = vmatprep.mubr.bf16.mxu1 %v1677_v13 }
  0x2a   :  { %1576 = vmatmul.mubr.bf16.gmra.mxu0 %v1662_v14  ;;  %1608 = vmatmul.mubr.bf16.gmra.mxu1 %v1678_v16 }
  0x2b   :  { %1579 = vmatprep.mubr.bf16.mxu0 %v1663_v15  ;;  %1611 = vmatprep.mubr.bf16.mxu1 %v1679_v17 }
  0x32   :  { %1580 = vmatmul.mubr.bf16.gmra.mxu0 %v1664_v18  ;;  %1612 = vmatmul.mubr.bf16.gmra.mxu1 %v1680_v19 }
  0x33   :  { %1583 = vmatprep.mubr.bf16.mxu0 %v1665_v20  ;;  %1615 = vmatprep.mubr.bf16.mxu1 %v1681_v21 }
  0x3a   :  { %1584 = vmatmul.mubr.bf16.gmra.mxu0 %v1666_v22  ;;  %1616 = vmatmul.mubr.bf16.gmra.mxu1 %v1682_v23 }
  0x3b   :  { %1587 = vmatprep.mubr.bf16.mxu0 %v1667_v24  ;;  %1619 = vmatprep.mubr.bf16.mxu1 %v1683_v25 }
  0x42   :  { %1588 = vmatmul.mubr.bf16.gmra.mxu0 %v1668_v26  ;;  %1620 = vmatmul.mubr.bf16.gmra.mxu1 %v1684_v27 }
  0x43   :  { %1591 = vmatprep.mubr.bf16.mxu0 %v1669_v28  ;;  %1623 = vmatprep.mubr.bf16.mxu1 %v1685_v29 }
  0x4a   :  { %1592 = vmatmul.mubr.bf16.gmra.mxu0 %v1670_v30  ;;  %1624 = vmatmul.mubr.bf16.gmra.mxu1 %v1686_v31 }
  0x4b   :  { %1595 = vmatprep.mubr.bf16.mxu0 %v1671_v32  ;;  %1627 = vmatprep.mubr.bf16.mxu1 %v1687_v33 }
  0x52   :  { %1596 = vmatmul.mubr.bf16.gmra.mxu0 %v1672_v34  ;;  %1628 = vmatmul.mubr.bf16.gmra.mxu1 %v1688_v35 }
  0x53   :  { %1599 = vmatprep.mubr.bf16.mxu0 %v1673_v36  ;;  %1631 = vmatprep.mubr.bf16.mxu1 %v1689_v37 }
  0x5a   :  { %1600 = vmatmul.mubr.bf16.gmra.mxu0 %v1674_v38  ;;  %1632 = vmatmul.mubr.bf16.gmra.mxu1 %v1690_v39 }
  0xe2   :  { %v1573_v40 = vpop.f32.mrf.mxu0  ;;  %v1831_v41 = vpop.f32.mrf.mxu1 }
  0xe3   :  { %v1014_v57 = vmul.f32 %v1573_v40, %v1573_v40 }
  0xe4   :  { %v368_v42 = vpop.f32.mrf.mxu0  ;;  %v1833_v43 = vpop.f32.mrf.mxu1 }
  0xe5   :  { %v1012_v48 = vmul.f32 %v368_v42, %v368_v42 }
  0xe6   :  { %v1574_v44 = vpop.f32.mrf.mxu0  ;;  %v1835_v45 = vpop.f32.mrf.mxu1 }
  0xe7   :  { %v1332_v46 = vpack.c.bf16 %v1574_v44, %v1573_v40  ;;  %v1412_v47 = vpack.c.bf16 %v1835_v45, %v1831_v41  ;;  %v1015_v62 = vmul.f32 %v1574_v44, %v1574_v44 }
  0xe8   :  { %v371_v49 = vpop.f32.mrf.mxu0  ;;  %v1839_v50 = vpop.f32.mrf.mxu1 }
  0xe9   :  { %1484 = vst [vmem:[%s2124_s2 + $0x8] sm:$0xff] %v1332_v46   ;;  %v1327_v51 = vpack.c.bf16 %v371_v49, %v368_v42  ;;  %v943_v52 = vadd.f32 %v371_v49, %v368_v42  ;;  %v1013_v53 = vmul.f32 %v371_v49, %v371_v49  ;;  %1500 = vst [vmem:[%s2124_s2 + $0x88] sm:$0xff] %v1412_v47  }
  0xea   :  { %v1407_v54 = vpack.c.bf16 %v1839_v50, %v1833_v43  ;;  %v1577_v55 = vpop.f32.mrf.mxu0  ;;  %v1849_v56 = vpop.f32.mrf.mxu1 }
  0xeb   :  { %1328 = vst [vmem:[%s2124_s2] sm:$0xff] %v1327_v51   ;;  %v944_v58 = vadd.f32 %v1573_v40, %v943_v52  ;;  %v1076_v59 = vadd.f32 %v1013_v53, %v1012_v48  ;;  %v1018_v17 = vmul.f32 %v1577_v55, %v1577_v55 }
  0xec   :  { %1499 = vst [vmem:[%s2124_s2 + $0x80] sm:$0xff] %v1407_v54   ;;  %v384_v60 = vpop.f32.mrf.mxu0  ;;  %v1857_v61 = vpop.f32.mrf.mxu1 }
  0xed   :  { %v1077_v63 = vadd.f32 %v1076_v59, %v1014_v57  ;;  %v945_v0 = vadd.f32 %v1574_v44, %v944_v58  ;;  %v1016_v4 = vmul.f32 %v384_v60, %v384_v60 }
  0xee   :  { %v1578_v1 = vpop.f32.mrf.mxu0  ;;  %v1859_v2 = vpop.f32.mrf.mxu1 }
  0xef   :  { %v946_v3 = vadd.f32 %v945_v0, %v384_v60  ;;  %v1078_v5 = vadd.f32 %v1077_v63, %v1015_v62  ;;  %v1342_v6 = vpack.c.bf16 %v1578_v1, %v1577_v55  ;;  %v1422_v8 = vpack.c.bf16 %v1859_v2, %v1849_v56 }
  0xf0   :  { %v387_v7 = vpop.f32.mrf.mxu0  ;;  %v1863_v9 = vpop.f32.mrf.mxu1  ;;  %v1019_v22 = vmul.f32 %v1578_v1, %v1578_v1 }
  0xf1   :  { %v1079_v10 = vadd.f32 %v1078_v5, %v1016_v4  ;;  %1486 = vst [vmem:[%s2124_s2 + $0x18] sm:$0xff] %v1342_v6   ;;  %v1337_v11 = vpack.c.bf16 %v387_v7, %v384_v60  ;;  %v947_v12 = vadd.f32 %v946_v3, %v387_v7  ;;  %v1017_v13 = vmul.f32 %v387_v7, %v387_v7 }
  0xf2   :  { %v1581_v14 = vpop.f32.mrf.mxu0  ;;  %1502 = vst [vmem:[%s2124_s2 + $0x98] sm:$0xff] %v1422_v8   ;;  %v1417_v15 = vpack.c.bf16 %v1863_v9, %v1857_v61  ;;  %v1873_v16 = vpop.f32.mrf.mxu1 }
  0xf3   :  { %1485 = vst [vmem:[%s2124_s2 + $0x10] sm:$0xff] %v1337_v11   ;;  %v948_v18 = vadd.f32 %v1577_v55, %v947_v12  ;;  %v1080_v19 = vadd.f32 %v1079_v10, %v1017_v13  ;;  %v1022_v42 = vmul.f32 %v1581_v14, %v1581_v14 }
  0xf4   :  { %v400_v20 = vpop.f32.mrf.mxu0  ;;  %1501 = vst [vmem:[%s2124_s2 + $0x90] sm:$0xff] %v1417_v15   ;;  %v1881_v21 = vpop.f32.mrf.mxu1 }
  0xf5   :  { %v1081_v23 = vadd.f32 %v1080_v19, %v1018_v17  ;;  %v949_v24 = vadd.f32 %v1578_v1, %v948_v18  ;;  %v1020_v28 = vmul.f32 %v400_v20, %v400_v20 }
  0xf6   :  { %v1582_v25 = vpop.f32.mrf.mxu0  ;;  %v1883_v26 = vpop.f32.mrf.mxu1 }
  0xf7   :  { %v950_v27 = vadd.f32 %v949_v24, %v400_v20  ;;  %v1082_v29 = vadd.f32 %v1081_v23, %v1019_v22  ;;  %v1352_v30 = vpack.c.bf16 %v1582_v25, %v1581_v14  ;;  %v1432_v32 = vpack.c.bf16 %v1883_v26, %v1873_v16 }
  0xf8   :  { %v403_v31 = vpop.f32.mrf.mxu0  ;;  %v1887_v33 = vpop.f32.mrf.mxu1  ;;  %v1023_v49 = vmul.f32 %v1582_v25, %v1582_v25 }
  0xf9   :  { %v1083_v34 = vadd.f32 %v1082_v29, %v1020_v28  ;;  %1488 = vst [vmem:[%s2124_s2 + $0x28] sm:$0xff] %v1352_v30   ;;  %v1347_v35 = vpack.c.bf16 %v403_v31, %v400_v20  ;;  %v951_v36 = vadd.f32 %v950_v27, %v403_v31  ;;  %v1021_v37 = vmul.f32 %v403_v31, %v403_v31 }
  0xfa   :  { %v1585_v38 = vpop.f32.mrf.mxu0  ;;  %1504 = vst [vmem:[%s2124_s2 + $0xa8] sm:$0xff] %v1432_v32   ;;  %v1427_v39 = vpack.c.bf16 %v1887_v33, %v1881_v21  ;;  %v1897_v40 = vpop.f32.mrf.mxu1 }
  0xfb   :  { %1487 = vst [vmem:[%s2124_s2 + $0x20] sm:$0xff] %v1347_v35   ;;  %v952_v44 = vadd.f32 %v1581_v14, %v951_v36  ;;  %v1084_v46 = vadd.f32 %v1083_v34, %v1021_v37  ;;  %v1026_v8 = vmul.f32 %v1585_v38, %v1585_v38 }
  0xfc   :  { %v416_v47 = vpop.f32.mrf.mxu0  ;;  %1503 = vst [vmem:[%s2124_s2 + $0xa0] sm:$0xff] %v1427_v39   ;;  %v1905_v48 = vpop.f32.mrf.mxu1 }
  0xfd   :  { %v1085_v51 = vadd.f32 %v1084_v46, %v1022_v42  ;;  %v953_v52 = vadd.f32 %v1582_v25, %v952_v44  ;;  %v1024_v57 = vmul.f32 %v416_v47, %v416_v47 }
  0xfe   :  { %v1586_v53 = vpop.f32.mrf.mxu0  ;;  %v1907_v54 = vpop.f32.mrf.mxu1 }
  0xff   :  { %v954_v55 = vadd.f32 %v953_v52, %v416_v47  ;;  %v1086_v58 = vadd.f32 %v1085_v51, %v1023_v49  ;;  %v1362_v59 = vpack.c.bf16 %v1586_v53, %v1585_v38  ;;  %v1442_v62 = vpack.c.bf16 %v1907_v54, %v1897_v40 }
 0x100   :  { %v419_v60 = vpop.f32.mrf.mxu0  ;;  %v1911_v63 = vpop.f32.mrf.mxu1  ;;  %v1027_v14 = vmul.f32 %v1586_v53, %v1586_v53 }
 0x101   :  { %v1087_v0 = vadd.f32 %v1086_v58, %v1024_v57  ;;  %1490 = vst [vmem:[%s2124_s2 + $0x38] sm:$0xff] %v1362_v59   ;;  %v1357_v1 = vpack.c.bf16 %v419_v60, %v416_v47  ;;  %v955_v3 = vadd.f32 %v954_v55, %v419_v60  ;;  %v1025_v4 = vmul.f32 %v419_v60, %v419_v60 }
 0x102   :  { %v1589_v5 = vpop.f32.mrf.mxu0  ;;  %1506 = vst [vmem:[%s2124_s2 + $0xb8] sm:$0xff] %v1442_v62   ;;  %v1437_v6 = vpack.c.bf16 %v1911_v63, %v1905_v48  ;;  %v1921_v7 = vpop.f32.mrf.mxu1 }
 0x103   :  { %1489 = vst [vmem:[%s2124_s2 + $0x30] sm:$0xff] %v1357_v1   ;;  %v956_v10 = vadd.f32 %v1585_v38, %v955_v3  ;;  %v1088_v11 = vadd.f32 %v1087_v0, %v1025_v4  ;;  %v1030_v37 = vmul.f32 %v1589_v5, %v1589_v5 }
 0x104   :  { %v432_v12 = vpop.f32.mrf.mxu0  ;;  %1505 = vst [vmem:[%s2124_s2 + $0xb0] sm:$0xff] %v1437_v6   ;;  %v1929_v13 = vpop.f32.mrf.mxu1 }
 0x105   :  { %v1089_v15 = vadd.f32 %v1088_v11, %v1026_v8  ;;  %v957_v17 = vadd.f32 %v1586_v53, %v956_v10  ;;  %v1028_v22 = vmul.f32 %v432_v12, %v432_v12 }
 0x106   :  { %v1590_v18 = vpop.f32.mrf.mxu0  ;;  %v1931_v19 = vpop.f32.mrf.mxu1 }
 0x107   :  { %v958_v20 = vadd.f32 %v957_v17, %v432_v12  ;;  %v1090_v23 = vadd.f32 %v1089_v15, %v1027_v14  ;;  %v1372_v24 = vpack.c.bf16 %v1590_v18, %v1589_v5  ;;  %v1452_v27 = vpack.c.bf16 %v1931_v19, %v1921_v7 }
 0x108   :  { %v435_v25 = vpop.f32.mrf.mxu0  ;;  %v1935_v28 = vpop.f32.mrf.mxu1  ;;  %v1031_v46 = vmul.f32 %v1590_v18, %v1590_v18 }
 0x109   :  { %v1091_v29 = vadd.f32 %v1090_v23, %v1028_v22  ;;  %1492 = vst [vmem:[%s2124_s2 + $0x48] sm:$0xff] %v1372_v24   ;;  %v1367_v30 = vpack.c.bf16 %v435_v25, %v432_v12  ;;  %v959_v31 = vadd.f32 %v958_v20, %v435_v25  ;;  %v1029_v32 = vmul.f32 %v435_v25, %v435_v25 }
 0x10a   :  { %v1593_v34 = vpop.f32.mrf.mxu0  ;;  %1508 = vst [vmem:[%s2124_s2 + $0xc8] sm:$0xff] %v1452_v27   ;;  %v1447_v35 = vpack.c.bf16 %v1935_v28, %v1929_v13  ;;  %v1945_v36 = vpop.f32.mrf.mxu1 }
 0x10b   :  { %1491 = vst [vmem:[%s2124_s2 + $0x40] sm:$0xff] %v1367_v30   ;;  %v960_v38 = vadd.f32 %v1589_v5, %v959_v31  ;;  %v1092_v39 = vadd.f32 %v1091_v29, %v1029_v32  ;;  %v1034_v10 = vmul.f32 %v1593_v34, %v1593_v34 }
 0x10c   :  { %v448_v42 = vpop.f32.mrf.mxu0  ;;  %1507 = vst [vmem:[%s2124_s2 + $0xc0] sm:$0xff] %v1447_v35   ;;  %v1953_v44 = vpop.f32.mrf.mxu1 }
 0x10d   :  { %v1093_v47 = vadd.f32 %v1092_v39, %v1030_v37  ;;  %v961_v49 = vadd.f32 %v1590_v18, %v960_v38  ;;  %v1032_v55 = vmul.f32 %v448_v42, %v448_v42 }
 0x10e   :  { %v1594_v51 = vpop.f32.mrf.mxu0  ;;  %v1955_v52 = vpop.f32.mrf.mxu1 }
 0x10f   :  { %v962_v53 = vadd.f32 %v961_v49, %v448_v42  ;;  %v1094_v57 = vadd.f32 %v1093_v47, %v1031_v46  ;;  %v1382_v58 = vpack.c.bf16 %v1594_v51, %v1593_v34  ;;  %v1462_v60 = vpack.c.bf16 %v1955_v52, %v1945_v36 }
 0x110   :  { %v451_v59 = vpop.f32.mrf.mxu0  ;;  %v1959_v62 = vpop.f32.mrf.mxu1  ;;  %v1035_v17 = vmul.f32 %v1594_v51, %v1594_v51 }
 0x111   :  { %v1095_v0 = vadd.f32 %v1094_v57, %v1032_v55  ;;  %1494 = vst [vmem:[%s2124_s2 + $0x58] sm:$0xff] %v1382_v58   ;;  %v1377_v1 = vpack.c.bf16 %v451_v59, %v448_v42  ;;  %v963_v3 = vadd.f32 %v962_v53, %v451_v59  ;;  %v1033_v4 = vmul.f32 %v451_v59, %v451_v59 }
 0x112   :  { %v1597_v5 = vpop.f32.mrf.mxu0  ;;  %1510 = vst [vmem:[%s2124_s2 + $0xd8] sm:$0xff] %v1462_v60   ;;  %v1457_v6 = vpack.c.bf16 %v1959_v62, %v1953_v44  ;;  %v1969_v8 = vpop.f32.mrf.mxu1 }
 0x113   :  { %1493 = vst [vmem:[%s2124_s2 + $0x50] sm:$0xff] %v1377_v1   ;;  %v964_v11 = vadd.f32 %v1593_v34, %v963_v3  ;;  %v1096_v12 = vadd.f32 %v1095_v0, %v1033_v4  ;;  %v1038_v47 = vmul.f32 %v1597_v5, %v1597_v5 }
 0x114   :  { %v464_v14 = vpop.f32.mrf.mxu0  ;;  %1509 = vst [vmem:[%s2124_s2 + $0xd0] sm:$0xff] %v1457_v6   ;;  %v1977_v15 = vpop.f32.mrf.mxu1 }
 0x115   :  { %v1097_v18 = vadd.f32 %v1096_v12, %v1034_v10  ;;  %v965_v20 = vadd.f32 %v1594_v51, %v964_v11  ;;  %v1036_v25 = vmul.f32 %v464_v14, %v464_v14 }
 0x116   :  { %v1598_v22 = vpop.f32.mrf.mxu0  ;;  %v1979_v23 = vpop.f32.mrf.mxu1 }
 0x117   :  { %v966_v24 = vadd.f32 %v965_v20, %v464_v14  ;;  %v1098_v27 = vadd.f32 %v1097_v18, %v1035_v17  ;;  %v1392_v29 = vpack.c.bf16 %v1598_v22, %v1597_v5  ;;  %v1472_v31 = vpack.c.bf16 %v1979_v23, %v1969_v8 }
 0x118   :  { %v467_v30 = vpop.f32.mrf.mxu0  ;;  %v1983_v32 = vpop.f32.mrf.mxu1  ;;  %v1039_v57 = vmul.f32 %v1598_v22, %v1598_v22 }
 0x119   :  { %v1099_v34 = vadd.f32 %v1098_v27, %v1036_v25  ;;  %1496 = vst [vmem:[%s2124_s2 + $0x68] sm:$0xff] %v1392_v29   ;;  %v1387_v35 = vpack.c.bf16 %v467_v30, %v464_v14  ;;  %v967_v37 = vadd.f32 %v966_v24, %v467_v30  ;;  %v1037_v38 = vmul.f32 %v467_v30, %v467_v30 }
 0x11a   :  { %v1601_v39 = vpop.f32.mrf.mxu0  ;;  %1512 = vst [vmem:[%s2124_s2 + $0xe8] sm:$0xff] %v1472_v31   ;;  %v1467_v42 = vpack.c.bf16 %v1983_v32, %v1977_v15  ;;  %v1993_v46 = vpop.f32.mrf.mxu1  ;;  %v1044_v31 = vmul.f32 %v1833_v43, %v1833_v43 }
 0x11b   :  { %1495 = vst [vmem:[%s2124_s2 + $0x60] sm:$0xff] %v1387_v35   ;;  %v968_v49 = vadd.f32 %v1597_v5, %v967_v37  ;;  %v1100_v51 = vadd.f32 %v1099_v34, %v1037_v38  ;;  %v1045_v38 = vmul.f32 %v1839_v50, %v1839_v50 }
 0x11c   :  { %v480_v53 = vpop.f32.mrf.mxu0  ;;  %1511 = vst [vmem:[%s2124_s2 + $0xe0] sm:$0xff] %v1467_v42   ;;  %v2001_v55 = vpop.f32.mrf.mxu1  ;;  %v1046_v42 = vmul.f32 %v1831_v41, %v1831_v41 }
 0x11d   :  { %v1101_v58 = vadd.f32 %v1100_v51, %v1038_v47  ;;  %v969_v59 = vadd.f32 %v1598_v22, %v968_v49  ;;  %v1040_v3 = vmul.f32 %v480_v53, %v480_v53  ;;  %v1042_v22 = vmul.f32 %v1601_v39, %v1601_v39 }
 0x11e   :  { %v1602_v60 = vpop.f32.mrf.mxu0  ;;  %v2003_v0 = vpop.f32.mrf.mxu1  ;;  %v1047_v51 = vmul.f32 %v1835_v45, %v1835_v45 }
 0x11f   :  { %v970_v1 = vadd.f32 %v969_v59, %v480_v53  ;;  %v1102_v4 = vadd.f32 %v1101_v58, %v1039_v57  ;;  %v1402_v6 = vpack.c.bf16 %v1602_v60, %v1601_v39  ;;  %v1482_v5 = vpack.c.bf16 %v2003_v0, %v1993_v46 }
 0x120   :  { %v483_v10 = vpop.f32.mrf.mxu0  ;;  %v2007_v11 = vpop.f32.mrf.mxu1  ;;  %v1043_v27 = vmul.f32 %v1602_v60, %v1602_v60  ;;  %v1048_v58 = vmul.f32 %v1857_v61, %v1857_v61 }
 0x121   :  { %v1103_v12 = vadd.f32 %v1102_v4, %v1040_v3  ;;  %1498 = vst [vmem:[%s2124_s2 + $0x78] sm:$0xff] %v1402_v6   ;;  %v1397_v14 = vpack.c.bf16 %v483_v10, %v480_v53  ;;  %v971_v17 = vadd.f32 %v970_v1, %v483_v10  ;;  %v1041_v18 = vmul.f32 %v483_v10, %v483_v10 }
 0x122   :  { %1514 = vst [vmem:[%s2124_s2 + $0xf8] sm:$0xff] %v1482_v5   ;;  %v1477_v20 = vpack.c.bf16 %v2007_v11, %v2001_v55  ;;  %v1049_v1 = vmul.f32 %v1863_v9, %v1863_v9  ;;  %v1052_v5 = vmul.f32 %v1881_v21, %v1881_v21 }
 0x123   :  { %1497 = vst [vmem:[%s2124_s2 + $0x70] sm:$0xff] %v1397_v14   ;;  %v972_v24 = vadd.f32 %v1601_v39, %v971_v17  ;;  %v1104_v25 = vadd.f32 %v1103_v12, %v1041_v18  ;;  %v1053_v17 = vmul.f32 %v1887_v33, %v1887_v33 }
 0x124   :  { %1513 = vst [vmem:[%s2124_s2 + $0xf0] sm:$0xff] %v1477_v20  }
 0x125   :  { %v973_v29 = vadd.f32 %v1602_v60, %v972_v24  ;;  %v1105_v30 = vadd.f32 %v1104_v25, %v1042_v22  ;;  %v1056_v25 = vmul.f32 %v1905_v48, %v1905_v48 }
 0x127   :  { %v1106_v34 = vadd.f32 %v1105_v30, %v1043_v27  ;;  %v974_v35 = vadd.f32 %v973_v29, %v1833_v43  ;;  %v1057_v30 = vmul.f32 %v1911_v63, %v1911_v63 }
 0x129   :  { %v975_v37 = vadd.f32 %v974_v35, %v1839_v50  ;;  %v1107_v39 = vadd.f32 %v1106_v34, %v1044_v31 }
 0x12b   :  { %v976_v47 = vadd.f32 %v1831_v41, %v975_v37  ;;  %v1108_v49 = vadd.f32 %v1107_v39, %v1045_v38  ;;  %v1050_v41 = vmul.f32 %v1849_v56, %v1849_v56  ;;  %v1060_v38 = vmul.f32 %v1929_v13, %v1929_v13 }
 0x12d   :  { %v1109_v53 = vadd.f32 %v1108_v49, %v1046_v42  ;;  %v977_v57 = vadd.f32 %v1835_v45, %v976_v47  ;;  %v1051_v45 = vmul.f32 %v1859_v2, %v1859_v2  ;;  %v1061_v47 = vmul.f32 %v1935_v28, %v1935_v28 }
 0x12f   :  { %v978_v43 = vadd.f32 %v977_v57, %v1857_v61  ;;  %v1110_v59 = vadd.f32 %v1109_v53, %v1047_v51 }
 0x131   :  { %v1111_v50 = vadd.f32 %v1110_v59, %v1048_v58  ;;  %v979_v60 = vadd.f32 %v978_v43, %v1863_v9  ;;  %v1064_v43 = vmul.f32 %v1953_v44, %v1953_v44 }
 0x133   :  { %v980_v3 = vadd.f32 %v1849_v56, %v979_v60  ;;  %v1112_v4 = vadd.f32 %v1111_v50, %v1049_v1  ;;  %v1054_v56 = vmul.f32 %v1873_v16, %v1873_v16  ;;  %v1065_v50 = vmul.f32 %v1959_v62, %v1959_v62 }
 0x135   :  { %v1113_v6 = vadd.f32 %v1112_v4, %v1050_v41  ;;  %v981_v10 = vadd.f32 %v1859_v2, %v980_v3  ;;  %v1055_v2 = vmul.f32 %v1883_v26, %v1883_v26  ;;  %v1068_v4 = vmul.f32 %v1977_v15, %v1977_v15 }
 0x137   :  { %v982_v61 = vadd.f32 %v981_v10, %v1881_v21  ;;  %v1114_v12 = vadd.f32 %v1113_v6, %v1051_v45  ;;  %v1069_v10 = vmul.f32 %v1983_v32, %v1983_v32 }
 0x139   :  { %v1115_v14 = vadd.f32 %v1114_v12, %v1052_v5  ;;  %v983_v9 = vadd.f32 %v982_v61, %v1887_v33 }
 0x13b   :  { %v984_v18 = vadd.f32 %v1873_v16, %v983_v9  ;;  %v1116_v20 = vadd.f32 %v1115_v14, %v1053_v17  ;;  %v1058_v16 = vmul.f32 %v1897_v40, %v1897_v40  ;;  %v1072_v9 = vmul.f32 %v2001_v55, %v2001_v55 }
 0x13d   :  { %v1117_v22 = vadd.f32 %v1116_v20, %v1054_v56  ;;  %v985_v24 = vadd.f32 %v1883_v26, %v984_v18  ;;  %v1059_v26 = vmul.f32 %v1907_v54, %v1907_v54  ;;  %v1073_v18 = vmul.f32 %v2007_v11, %v2007_v11 }
 0x13f   :  { %v986_v21 = vadd.f32 %v985_v24, %v1905_v48  ;;  %v1118_v27 = vadd.f32 %v1117_v22, %v1055_v2 }
 0x141   :  { %v1119_v29 = vadd.f32 %v1118_v27, %v1056_v25  ;;  %v987_v33 = vadd.f32 %v986_v21, %v1911_v63 }
 0x143   :  { %v988_v31 = vadd.f32 %v1897_v40, %v987_v33  ;;  %v1120_v34 = vadd.f32 %v1119_v29, %v1057_v30  ;;  %v1062_v40 = vmul.f32 %v1921_v7, %v1921_v7 }
 0x145   :  { %v1121_v35 = vadd.f32 %v1120_v34, %v1058_v16  ;;  %v989_v37 = vadd.f32 %v1907_v54, %v988_v31  ;;  %v1063_v54 = vmul.f32 %v1931_v19, %v1931_v19 }
 0x147   :  { %v990_v48 = vadd.f32 %v989_v37, %v1929_v13  ;;  %v1122_v39 = vadd.f32 %v1121_v35, %v1059_v26 }
 0x149   :  { %v1123_v42 = vadd.f32 %v1122_v39, %v1060_v38  ;;  %v991_v63 = vadd.f32 %v990_v48, %v1935_v28 }
 0x14b   :  { %v992_v49 = vadd.f32 %v1921_v7, %v991_v63  ;;  %v1124_v51 = vadd.f32 %v1123_v42, %v1061_v47  ;;  %v1066_v7 = vmul.f32 %v1945_v36, %v1945_v36 }
 0x14d   :  { %v1125_v53 = vadd.f32 %v1124_v51, %v1062_v40  ;;  %v993_v57 = vadd.f32 %v1931_v19, %v992_v49  ;;  %v1067_v19 = vmul.f32 %v1955_v52, %v1955_v52 }
 0x14f   :  { %v994_v13 = vadd.f32 %v993_v57, %v1953_v44  ;;  %v1126_v58 = vadd.f32 %v1125_v53, %v1063_v54 }
 0x151   :  { %v1127_v59 = vadd.f32 %v1126_v58, %v1064_v43  ;;  %v995_v28 = vadd.f32 %v994_v13, %v1959_v62 }
 0x153   :  { %v996_v60 = vadd.f32 %v1945_v36, %v995_v28  ;;  %v1128_v1 = vadd.f32 %v1127_v59, %v1065_v50  ;;  %v1070_v36 = vmul.f32 %v1969_v8, %v1969_v8 }
 0x155   :  { %v1129_v41 = vadd.f32 %v1128_v1, %v1066_v7  ;;  %v997_v3 = vadd.f32 %v1955_v52, %v996_v60  ;;  %v1071_v52 = vmul.f32 %v1979_v23, %v1979_v23 }
 0x157   :  { %v998_v44 = vadd.f32 %v997_v3, %v1977_v15  ;;  %v1130_v45 = vadd.f32 %v1129_v41, %v1067_v19 }
 0x159   :  { %v1131_v6 = vadd.f32 %v1130_v45, %v1068_v4  ;;  %v999_v62 = vadd.f32 %v998_v44, %v1983_v32 }
 0x15b   :  { %v1000_v61 = vadd.f32 %v1969_v8, %v999_v62  ;;  %v1132_v5 = vadd.f32 %v1131_v6, %v1069_v10  ;;  %v1074_v8 = vmul.f32 %v1993_v46, %v1993_v46 }
 0x15d   :  { %v1133_v12 = vadd.f32 %v1132_v5, %v1070_v36  ;;  %v1001_v14 = vadd.f32 %v1979_v23, %v1000_v61  ;;  %v1075_v23 = vmul.f32 %v2003_v0, %v2003_v0 }
 0x15f   :  { %v1002_v15 = vadd.f32 %v1001_v14, %v2001_v55  ;;  %v1134_v17 = vadd.f32 %v1133_v12, %v1071_v52 }
 0x161   :  { %v1135_v56 = vadd.f32 %v1134_v17, %v1072_v9  ;;  %v1003_v32 = vadd.f32 %v1002_v15, %v2007_v11 }
 0x163   :  { %v1004_v20 = vadd.f32 %v1993_v46, %v1003_v32  ;;  %v1136_v2 = vadd.f32 %v1135_v56, %v1073_v18 }
 0x165   :  { %v1005_v22 = vadd.f32 %v2003_v0, %v1004_v20  ;;  %v1137_v24 = vadd.f32 %v1136_v2, %v1074_v8 }
 0x167   :  { %v1006_v55 = vrot.slane %v1005_v22, 4  ;;  %v1138_v21 = vadd.f32 %v1137_v24, %v1075_v23 }
 0x169   :  { %v1007_v25 = vadd.f32 %v1006_v55, %v1005_v22  ;;  %v1139_v27 = vrot.slane %v1138_v21, 4 }
 0x16b   :  { %v1008_v29 = vrot.slane %v1007_v25, 2  ;;  %v1140_v33 = vadd.f32 %v1139_v27, %v1138_v21 }
 0x16d   :  { %v1009_v30 = vadd.f32 %v1008_v29, %v1007_v25  ;;  %v1141_v11 = vrot.slane %v1140_v33, 2 }
 0x16f   :  { %v1010_v16 = vrot.slane %v1009_v30, 1  ;;  %v1142_v31 = vadd.f32 %v1141_v11, %v1140_v33 }
 0x171   :  { %v1143_v34 = vrot.slane %v1142_v31, 1  ;;  %v1011_v46 = vadd.f32 %v1010_v16, %v1009_v30 }
 0x173   :  { %v1144_v26 = vadd.f32 %v1143_v34, %v1142_v31 }
 0x175   :  { %v1146_v35 = vsel %vm1145_vm0, %v1011_v46, %v1144_v26 }
 0x176   :  { %1147 = vst [vmem:[%s2125_s3] sm:$0x3] %v1146_v35 }

// kernel: bottleneck_forward.10
= control target key start
LH: loop header
LB: loop body
LE: loop exit
PB: predicated region body
PF: predicated region fallthrough
CT: control target
= control target key end

     0   :  { %vm357_vm0 = vcmask 1040384   ;;  %s660_s3 = inlined_call_operand.vmem [shape: bf16[128,128], index: 3, kind: input, shape index: {}]   ;;  %s661_s0 = inlined_call_operand.vmem [shape: bf16[128,128], index: 0, kind: input, shape index: {}]   ;;  %s662_s1 = inlined_call_operand.vmem [shape: f32[1,128], index: 1, kind: input, shape index: {}]   ;;  %s663_s2 = inlined_call_operand.vmem [shape: f32[1,128], index: 2, kind: input, shape index: {}]   ;;  %s664_s4 = inlined_call_operand.vmem [shape: f32[128,128], index: 4, kind: output, shape index: {0}]   ;;  %s665_s5 = inlined_call_operand.vmem [shape: f32[1,2,128], index: 5, kind: output, shape index: {1}]  }
   0x1   :  { %v481_v0 = vld [vmem:[%s660_s3 + $0x38] sm:$0xff]   ;;  %v482_v1 = vld [vmem:[%s660_s3 + $0x30] sm:$0xff]   ;;  %v483_v2 = vld [vmem:[%s660_s3 + $0x28] sm:$0xff]  }
   0x2   :  { %433 = vmatprep.subr.bf16.mxu0 %v481_v0  ;;  %465 = vmatprep.subr.bf16.mxu1 %v481_v0  ;;  %v484_v3 = vld [vmem:[%s660_s3 + $0x20] sm:$0xff]   ;;  %v410_v8 = vld [vmem:[%s661_s0 + $0x8] sm:$0xff]   ;;  %v411_v9 = vld [vmem:[%s661_s0 + $0x10] sm:$0xff]  }
   0x3   :  { %434 = vmatpush3.bf16.msra.mxu0 %v481_v0  ;;  %473 = vmatpush3.bf16.msra.mxu1 %v481_v0  ;;  %v379_v4 = vld [vmem:[%s661_s0] sm:$0xff]   ;;  %v384_v11 = vunpack.c.l.bf16 %v410_v8  ;;  %v385_v14 = vunpack.c.h.bf16 %v410_v8  ;;  %v485_v16 = vld [vmem:[%s660_s3 + $0x18] sm:$0xff]   ;;  %v388_v17 = vunpack.c.l.bf16 %v411_v9  ;;  %v389_v21 = vunpack.c.h.bf16 %v411_v9  ;;  %v414_v27 = vld [vmem:[%s661_s0 + $0x28] sm:$0xff]  }
   0x4   :  { %435 = vmatprep.subr.bf16.mxu0 %v482_v1  ;;  %466 = vmatprep.subr.bf16.mxu1 %v482_v1  ;;  %v537_v5 = vld [vmem:[%s662_s1] ss:$0 sm:$0xff]  ;;  %v380_v6 = vunpack.c.l.bf16 %v379_v4  ;;  %v381_v7 = vunpack.c.h.bf16 %v379_v4  ;;  %v412_v22 = vld [vmem:[%s661_s0 + $0x18] sm:$0xff]   ;;  %v486_v28 = vld [vmem:[%s660_s3 + $0x10] sm:$0xff]   ;;  %v400_v38 = vunpack.c.l.bf16 %v414_v27  ;;  %v401_v42 = vunpack.c.h.bf16 %v414_v27 }
   0x5   :  { %v548_v10 = vld [vmem:[%s663_s2] ss:$0 sm:$0xff]  ;;  %v61_v20 = vmul.f32 %v384_v11, %v537_v5  ;;  %v62_v26 = vmul.f32 %v385_v14, %v537_v5  ;;  %v63_v29 = vmul.f32 %v388_v17, %v537_v5  ;;  %v415_v30 = vld [vmem:[%s661_s0 + $0x30] sm:$0xff]   ;;  %v392_v32 = vunpack.c.l.bf16 %v412_v22  ;;  %v416_v39 = vld [vmem:[%s661_s0 + $0x38] sm:$0xff]  }
   0x6   :  { %v59_v12 = vmul.f32 %v380_v6, %v537_v5  ;;  %v60_v13 = vmul.f32 %v381_v7, %v537_v5  ;;  %v413_v15 = vld [vmem:[%s661_s0 + $0x20] sm:$0xff]   ;;  %v393_v33 = vunpack.c.h.bf16 %v412_v22  ;;  %v64_v36 = vmul.f32 %v389_v21, %v537_v5  ;;  %v487_v44 = vld [vmem:[%s660_s3 + $0x8] sm:$0xff]  }
   0x7   :  { %436 = vmatpush3.bf16.msra.mxu0 %v482_v1  ;;  %474 = vmatpush3.bf16.msra.mxu1 %v482_v1  ;;  %v396_v23 = vunpack.c.l.bf16 %v413_v15  ;;  %v397_v34 = vunpack.c.h.bf16 %v413_v15  ;;  %v84_v35 = vadd.f32 %v548_v10, %v61_v20  ;;  %v85_v40 = vadd.f32 %v548_v10, %v62_v26  ;;  %v488_v61 = vld [vmem:[%s660_s3] sm:$0xff]  }
   0x8   :  { %437 = vmatprep.subr.bf16.mxu0 %v483_v2  ;;  %467 = vmatprep.subr.bf16.mxu1 %v483_v2  ;;  %v82_v18 = vadd.f32 %v548_v10, %v59_v12  ;;  %v83_v19 = vadd.f32 %v548_v10, %v60_v13  ;;  %v404_v43 = vunpack.c.l.bf16 %v415_v30  ;;  %v86_v45 = vadd.f32 %v548_v10, %v63_v29 }
   0x9   :  { %v67_v37 = vmul.f32 %v396_v23, %v537_v5  ;;  %v68_v41 = vmul.f32 %v397_v34, %v537_v5  ;;  %v69_v47 = vmul.f32 %v400_v38, %v537_v5  ;;  %v405_v48 = vunpack.c.h.bf16 %v415_v30 }
   0xa   :  { %v98_v24 = vmax.f32 %v82_v18, 0.0  ;;  %v99_v25 = vmax.f32 %v83_v19, 0.0  ;;  %v70_v50 = vmul.f32 %v401_v42, %v537_v5  ;;  %v71_v51 = vmul.f32 %v404_v43, %v537_v5 }
   0xb   :  { %438 = vmatpush3.bf16.msra.mxu0 %v483_v2  ;;  %475 = vmatpush3.bf16.msra.mxu1 %v483_v2  ;;  %v90_v46 = vadd.f32 %v548_v10, %v67_v37  ;;  %v91_v49 = vadd.f32 %v548_v10, %v68_v41  ;;  %v408_v52 = vunpack.c.l.bf16 %v416_v39  ;;  %v92_v54 = vadd.f32 %v548_v10, %v69_v47 }
   0xc   :  { %439 = vmatprep.subr.bf16.mxu0 %v484_v3  ;;  %468 = vmatprep.subr.bf16.mxu1 %v484_v3  ;;  %v114_v31 = vpack.c.bf16 %v99_v25, %v98_v24  ;;  %v72_v55 = vmul.f32 %v405_v48, %v537_v5  ;;  %v409_v56 = vunpack.c.h.bf16 %v416_v39  ;;  %v87_v57 = vadd.f32 %v548_v10, %v64_v36 }
   0xd   :  { %v106_v53 = vmax.f32 %v90_v46, 0.0  ;;  %v107_v58 = vmax.f32 %v91_v49, 0.0  ;;  %v93_v59 = vadd.f32 %v548_v10, %v70_v50  ;;  %v94_v60 = vadd.f32 %v548_v10, %v71_v51 }
   0xe   :  { %449 = vmatprep.mubr.bf16.mxu0 %v114_v31  ;;  %v65_v62 = vmul.f32 %v392_v32, %v537_v5  ;;  %v95_v63 = vadd.f32 %v548_v10, %v72_v55  ;;  %v100_v0 = vmax.f32 %v84_v35, 0.0  ;;  %v101_v1 = vmax.f32 %v85_v40, 0.0 }
   0xf   :  { %440 = vmatpush3.bf16.msra.mxu0 %v484_v3  ;;  %476 = vmatpush3.bf16.msra.mxu1 %v484_v3  ;;  %v66_v2 = vmul.f32 %v393_v33, %v537_v5  ;;  %v118_v3 = vpack.c.bf16 %v107_v58, %v106_v53  ;;  %v108_v4 = vmax.f32 %v92_v54, 0.0  ;;  %v109_v6 = vmax.f32 %v93_v59, 0.0 }
  0x10   :  { %441 = vmatprep.subr.bf16.mxu0 %v485_v16  ;;  %469 = vmatprep.subr.bf16.mxu1 %v485_v16  ;;  %v73_v7 = vmul.f32 %v408_v52, %v537_v5  ;;  %v74_v8 = vmul.f32 %v409_v56, %v537_v5  ;;  %v102_v9 = vmax.f32 %v86_v45, 0.0  ;;  %v103_v11 = vmax.f32 %v87_v57, 0.0 }
  0x11   :  { %v110_v12 = vmax.f32 %v94_v60, 0.0  ;;  %v111_v13 = vmax.f32 %v95_v63, 0.0  ;;  %v88_v14 = vadd.f32 %v548_v10, %v65_v62  ;;  %v89_v15 = vadd.f32 %v548_v10, %v66_v2  ;;  %457 = vmatprep.mubr.bf16.mxu1 %v118_v3 }
  0x12   :  { %v119_v17 = vpack.c.bf16 %v109_v6, %v108_v4  ;;  %v96_v18 = vadd.f32 %v548_v10, %v73_v7  ;;  %v97_v19 = vadd.f32 %v548_v10, %v74_v8  ;;  %v116_v5 = vpack.c.bf16 %v103_v11, %v102_v9 }
  0x13   :  { %442 = vmatpush3.bf16.msra.mxu0 %v485_v16  ;;  %477 = vmatpush3.bf16.msra.mxu1 %v485_v16  ;;  %v115_v16 = vpack.c.bf16 %v101_v1, %v100_v0  ;;  %v120_v20 = vpack.c.bf16 %v111_v13, %v110_v12  ;;  %v104_v21 = vmax.f32 %v88_v14, 0.0  ;;  %v105_v22 = vmax.f32 %v89_v15, 0.0 }
  0x14   :  { %443 = vmatprep.subr.bf16.mxu0 %v486_v28  ;;  %470 = vmatprep.subr.bf16.mxu1 %v486_v28  ;;  %v112_v23 = vmax.f32 %v96_v18, 0.0  ;;  %v113_v24 = vmax.f32 %v97_v19, 0.0 }
  0x15   :  { %v117_v25 = vpack.c.bf16 %v105_v22, %v104_v21 }
  0x16   :  { %v121_v26 = vpack.c.bf16 %v113_v24, %v112_v23 }
  0x17   :  { %444 = vmatpush3.bf16.msra.mxu0 %v486_v28  ;;  %478 = vmatpush3.bf16.msra.mxu1 %v486_v28 }
  0x18   :  { %445 = vmatprep.subr.bf16.mxu0 %v487_v44  ;;  %471 = vmatprep.subr.bf16.mxu1 %v487_v44 }
  0x1b   :  { %446 = vmatpush3.bf16.msra.mxu0 %v487_v44  ;;  %479 = vmatpush3.bf16.msra.mxu1 %v487_v44 }
  0x1c   :  { %447 = vmatprep.subr.bf16.mxu0 %v488_v61  ;;  %472 = vmatprep.subr.bf16.mxu1 %v488_v61 }
  0x1f   :  { %448 = vmatpush3.bf16.msra.mxu0 %v488_v61  ;;  %480 = vmatpush3.bf16.msra.mxu1 %v488_v61 }
  0x22   :  { %450 = vmatmul.mubr.bf16.vlgmr.msra.gmra.mxu0 %v115_v16  ;;  %458 = vmatmul.mubr.bf16.vlgmr.msra.gmra.mxu1 %v119_v17 }
  0x23   :  { %453 = vmatprep.mubr.bf16.mxu0 %v116_v5  ;;  %461 = vmatprep.mubr.bf16.mxu1 %v120_v20 }
  0x2a   :  { %454 = vmatmul.mubr.bf16.gmra.mxu0 %v117_v25  ;;  %462 = vmatmul.mubr.bf16.gmra.mxu1 %v121_v26 }
  0xe2   :  { %v451_v27 = vpop.f32.mrf.mxu0  ;;  %v459_v28 = vpop.f32.mrf.mxu1 }
  0xe3   :  { %285 = vst [vmem:[%s664_s4 + $0x10] sm:$0xff] %v451_v27  ;;  %293 = vst [vmem:[%s664_s4 + $0x50] sm:$0xff] %v459_v28  ;;  %v322_v39 = vmul.f32 %v451_v27, %v451_v27  ;;  %v330_v6 = vmul.f32 %v459_v28, %v459_v28 }
  0xe4   :  { %v220_v10 = vpop.f32.mrf.mxu0  ;;  %v252_v29 = vpop.f32.mrf.mxu1 }
  0xe5   :  { %283 = vst [vmem:[%s664_s4] sm:$0xff] %v220_v10  ;;  %291 = vst [vmem:[%s664_s4 + $0x40] sm:$0xff] %v252_v29  ;;  %v320_v34 = vmul.f32 %v220_v10, %v220_v10  ;;  %v328_v63 = vmul.f32 %v252_v29, %v252_v29 }
  0xe6   :  { %v452_v30 = vpop.f32.mrf.mxu0  ;;  %v460_v31 = vpop.f32.mrf.mxu1 }
  0xe7   :  { %286 = vst [vmem:[%s664_s4 + $0x18] sm:$0xff] %v452_v30  ;;  %294 = vst [vmem:[%s664_s4 + $0x58] sm:$0xff] %v460_v31  ;;  %v323_v44 = vmul.f32 %v452_v30, %v452_v30  ;;  %v331_v9 = vmul.f32 %v460_v31, %v460_v31 }
  0xe8   :  { %v223_v32 = vpop.f32.mrf.mxu0  ;;  %v255_v33 = vpop.f32.mrf.mxu1 }
  0xe9   :  { %284 = vst [vmem:[%s664_s4 + $0x8] sm:$0xff] %v223_v32  ;;  %v299_v35 = vadd.f32 %v223_v32, %v220_v10  ;;  %v321_v36 = vmul.f32 %v223_v32, %v223_v32  ;;  %292 = vst [vmem:[%s664_s4 + $0x48] sm:$0xff] %v255_v33  ;;  %v329_v3 = vmul.f32 %v255_v33, %v255_v33 }
  0xea   :  { %v455_v37 = vpop.f32.mrf.mxu0  ;;  %v463_v38 = vpop.f32.mrf.mxu1 }
  0xeb   :  { %v300_v40 = vadd.f32 %v451_v27, %v299_v35  ;;  %v336_v41 = vadd.f32 %v321_v36, %v320_v34  ;;  %289 = vst [vmem:[%s664_s4 + $0x30] sm:$0xff] %v455_v37  ;;  %297 = vst [vmem:[%s664_s4 + $0x70] sm:$0xff] %v463_v38  ;;  %v326_v57 = vmul.f32 %v455_v37, %v455_v37 }
  0xec   :  { %v236_v42 = vpop.f32.mrf.mxu0  ;;  %v268_v43 = vpop.f32.mrf.mxu1  ;;  %v334_v19 = vmul.f32 %v463_v38, %v463_v38 }
  0xed   :  { %v337_v45 = vadd.f32 %v336_v41, %v322_v39  ;;  %287 = vst [vmem:[%s664_s4 + $0x20] sm:$0xff] %v236_v42  ;;  %v301_v46 = vadd.f32 %v452_v30, %v300_v40  ;;  %295 = vst [vmem:[%s664_s4 + $0x60] sm:$0xff] %v268_v43  ;;  %v324_v50 = vmul.f32 %v236_v42, %v236_v42 }
  0xee   :  { %v456_v47 = vpop.f32.mrf.mxu0  ;;  %v464_v48 = vpop.f32.mrf.mxu1  ;;  %v332_v14 = vmul.f32 %v268_v43, %v268_v43 }
  0xef   :  { %v302_v49 = vadd.f32 %v301_v46, %v236_v42  ;;  %v338_v51 = vadd.f32 %v337_v45, %v323_v44  ;;  %290 = vst [vmem:[%s664_s4 + $0x38] sm:$0xff] %v456_v47  ;;  %298 = vst [vmem:[%s664_s4 + $0x78] sm:$0xff] %v464_v48  ;;  %v327_v60 = vmul.f32 %v456_v47, %v456_v47 }
  0xf0   :  { %v239_v52 = vpop.f32.mrf.mxu0  ;;  %v271_v53 = vpop.f32.mrf.mxu1  ;;  %v335_v21 = vmul.f32 %v464_v48, %v464_v48 }
  0xf1   :  { %v339_v54 = vadd.f32 %v338_v51, %v324_v50  ;;  %288 = vst [vmem:[%s664_s4 + $0x28] sm:$0xff] %v239_v52  ;;  %v303_v55 = vadd.f32 %v302_v49, %v239_v52  ;;  %v325_v56 = vmul.f32 %v239_v52, %v239_v52  ;;  %296 = vst [vmem:[%s664_s4 + $0x68] sm:$0xff] %v271_v53 }
  0xf2   :  { %v333_v18 = vmul.f32 %v271_v53, %v271_v53 }
  0xf3   :  { %v304_v58 = vadd.f32 %v455_v37, %v303_v55  ;;  %v340_v59 = vadd.f32 %v339_v54, %v325_v56 }
  0xf5   :  { %v305_v61 = vadd.f32 %v456_v47, %v304_v58  ;;  %v341_v62 = vadd.f32 %v340_v59, %v326_v57 }
  0xf7   :  { %v342_v0 = vadd.f32 %v341_v62, %v327_v60  ;;  %v306_v1 = vadd.f32 %v305_v61, %v252_v29 }
  0xf9   :  { %v307_v2 = vadd.f32 %v306_v1, %v255_v33  ;;  %v343_v4 = vadd.f32 %v342_v0, %v328_v63 }
  0xfb   :  { %v308_v7 = vadd.f32 %v459_v28, %v307_v2  ;;  %v344_v8 = vadd.f32 %v343_v4, %v329_v3 }
  0xfd   :  { %v345_v11 = vadd.f32 %v344_v8, %v330_v6  ;;  %v309_v12 = vadd.f32 %v460_v31, %v308_v7 }
  0xff   :  { %v310_v13 = vadd.f32 %v309_v12, %v268_v43  ;;  %v346_v15 = vadd.f32 %v345_v11, %v331_v9 }
 0x101   :  { %v347_v16 = vadd.f32 %v346_v15, %v332_v14  ;;  %v311_v17 = vadd.f32 %v310_v13, %v271_v53 }
 0x103   :  { %v312_v5 = vadd.f32 %v463_v38, %v311_v17  ;;  %v348_v20 = vadd.f32 %v347_v16, %v333_v18 }
 0x105   :  { %v313_v22 = vadd.f32 %v464_v48, %v312_v5  ;;  %v349_v23 = vadd.f32 %v348_v20, %v334_v19 }
 0x107   :  { %v314_v24 = vrot.slane %v313_v22, 4  ;;  %v350_v25 = vadd.f32 %v349_v23, %v335_v21 }
 0x109   :  { %v315_v26 = vadd.f32 %v314_v24, %v313_v22  ;;  %v351_v27 = vrot.slane %v350_v25, 4 }
 0x10b   :  { %v316_v28 = vrot.slane %v315_v26, 2  ;;  %v352_v10 = vadd.f32 %v351_v27, %v350_v25 }
 0x10d   :  { %v317_v29 = vadd.f32 %v316_v28, %v315_v26  ;;  %v353_v30 = vrot.slane %v352_v10, 2 }
 0x10f   :  { %v318_v31 = vrot.slane %v317_v29, 1  ;;  %v354_v32 = vadd.f32 %v353_v30, %v352_v10 }
 0x111   :  { %v355_v33 = vrot.slane %v354_v32, 1  ;;  %v319_v34 = vadd.f32 %v318_v31, %v317_v29 }
 0x113   :  { %v356_v35 = vadd.f32 %v355_v33, %v354_v32 }
 0x115   :  { %v358_v36 = vsel %vm357_vm0, %v319_v34, %v356_v35 }
 0x116   :  { %359 = vst [vmem:[%s665_s5] sm:$0x3] %v358_v36 }

// kernel: bottleneck_forward.11
= control target key start
LH: loop header
LB: loop body
LE: loop exit
PB: predicated region body
PF: predicated region fallthrough
CT: control target
= control target key end

     0   :  { %s493_s0 = inlined_call_operand.vmem [shape: f32[128,128], index: 0, kind: input, shape index: {}]   ;;  %s494_s1 = inlined_call_operand.vmem [shape: f32[1,128], index: 1, kind: input, shape index: {}]   ;;  %s495_s2 = inlined_call_operand.vmem [shape: f32[1,128], index: 2, kind: input, shape index: {}]   ;;  %s496_s3 = inlined_call_operand.vmem [shape: bf16[128,128], index: 3, kind: input, shape index: {}]   ;;  %s497_s4 = inlined_call_operand.vmem [shape: f32[1,128], index: 4, kind: input, shape index: {}]   ;;  %s498_s5 = inlined_call_operand.vmem [shape: f32[1,128], index: 5, kind: input, shape index: {}]   ;;  %s499_s6 = inlined_call_operand.hbm [shape: f32[128,128], index: 6, kind: output, shape index: {}]  }
   0x1   :  { %v233_v0 = vld [vmem:[%s496_s3] sm:$0xff]   ;;  %v103_v9 = vld [vmem:[%s493_s0 + $0x8] sm:$0xff]  ;;  %v104_v11 = vld [vmem:[%s493_s0 + $0x10] sm:$0xff] }
   0x2   :  { %v340_v1 = vld [vmem:[%s497_s4] ss:$0 sm:$0xff]  ;;  %v234_v3 = vunpack.c.l.bf16 %v233_v0  ;;  %v235_v7 = vunpack.c.h.bf16 %v233_v0  ;;  %v264_v10 = vld [vmem:[%s496_s3 + $0x8] sm:$0xff]   ;;  %v105_v16 = vld [vmem:[%s493_s0 + $0x18] sm:$0xff] }
   0x3   :  { %v345_v2 = vld [vmem:[%s498_s5] ss:$0 sm:$0xff]  ;;  %v238_v15 = vunpack.c.l.bf16 %v264_v10  ;;  %v265_v17 = vld [vmem:[%s496_s3 + $0x10] sm:$0xff]   ;;  %v239_v20 = vunpack.c.h.bf16 %v264_v10  ;;  %v107_v27 = vld [vmem:[%s493_s0 + $0x28] sm:$0xff] }
   0x4   :  { %v102_v4 = vld [vmem:[%s493_s0] sm:$0xff]  ;;  %v63_v12 = vmul.f32 %v234_v3, %v340_v1  ;;  %v64_v13 = vmul.f32 %v235_v7, %v340_v1  ;;  %v242_v31 = vunpack.c.l.bf16 %v265_v17  ;;  %v243_v38 = vunpack.c.h.bf16 %v265_v17  ;;  %v266_v40 = vld [vmem:[%s496_s3 + $0x18] sm:$0xff]   ;;  %v108_v41 = vld [vmem:[%s493_s0 + $0x30] sm:$0xff] }
   0x5   :  { %v353_v5 = vld [vmem:[%s494_s1] ss:$0 sm:$0xff]  ;;  %v65_v26 = vmul.f32 %v238_v15, %v340_v1  ;;  %v66_v29 = vmul.f32 %v239_v20, %v340_v1  ;;  %v109_v46 = vld [vmem:[%s493_s0 + $0x38] sm:$0xff] }
   0x6   :  { %v358_v6 = vld [vmem:[%s495_s2] ss:$0 sm:$0xff]  ;;  %v125_v8 = vmul.f32 %v353_v5, %v102_v4  ;;  %v126_v14 = vmul.f32 %v353_v5, %v103_v9  ;;  %v127_v19 = vmul.f32 %v353_v5, %v104_v11  ;;  %v128_v21 = vmul.f32 %v353_v5, %v105_v16 }
   0x7   :  { %v106_v22 = vld [vmem:[%s493_s0 + $0x20] sm:$0xff]  ;;  %v86_v23 = vadd.f32 %v345_v2, %v63_v12  ;;  %v87_v24 = vadd.f32 %v345_v2, %v64_v13  ;;  %v88_v34 = vadd.f32 %v345_v2, %v65_v26  ;;  %v89_v36 = vadd.f32 %v345_v2, %v66_v29 }
   0x8   :  { %v148_v18 = vadd.f32 %v358_v6, %v125_v8  ;;  %v149_v25 = vadd.f32 %v358_v6, %v126_v14  ;;  %v150_v28 = vadd.f32 %v358_v6, %v127_v19  ;;  %v151_v30 = vadd.f32 %v358_v6, %v128_v21 }
   0x9   :  { %v129_v35 = vmul.f32 %v353_v5, %v106_v22  ;;  %v67_v37 = vmul.f32 %v242_v31, %v340_v1  ;;  %v130_v39 = vmul.f32 %v353_v5, %v107_v27 }
   0xa   :  { %v164_v32 = vadd.f32 %v148_v18, %v86_v23  ;;  %v165_v33 = vadd.f32 %v149_v25, %v87_v24  ;;  %v166_v44 = vadd.f32 %v150_v28, %v88_v34 }
   0xb   :  { %v152_v45 = vadd.f32 %v358_v6, %v129_v35 }
   0xc   :  { %v180_v42 = vmax.f32 %v164_v32, 0.0  ;;  %v181_v43 = vmax.f32 %v165_v33, 0.0 }
   0xd   :  { %11 = vsyncpa [#allocation3], 0  ;;  %v167_v47 = vadd.f32 %v151_v30, %v89_v36  ;;  %v90_v48 = vadd.f32 %v345_v2, %v67_v37  ;;  %v68_v49 = vmul.f32 %v243_v38, %v340_v1  ;;  %v153_v50 = vadd.f32 %v358_v6, %v130_v39  ;;  %v267_v51 = vld [vmem:[%s496_s3 + $0x20] sm:$0xff]   ;;  %v111_v3 = vld [vmem:[%s493_s0 + $0x48] sm:$0xff] }
   0xe   :  { %196 = vst [vmem:[#allocation2] sm:$0xff] %v180_v42  ;;  %197 = vst [vmem:[#allocation2 + $0x8] sm:$0xff] %v181_v43  ;;  %v182_v52 = vmax.f32 %v166_v44, 0.0  ;;  %v246_v53 = vunpack.c.l.bf16 %v266_v40  ;;  %v131_v54 = vmul.f32 %v353_v5, %v108_v41  ;;  %v247_v55 = vunpack.c.h.bf16 %v266_v40  ;;  %v110_v56 = vld [vmem:[%s493_s0 + $0x40] sm:$0xff]  ;;  %v268_v4 = vld [vmem:[%s496_s3 + $0x28] sm:$0xff]  }
   0xf   :  { %v183_v57 = vmax.f32 %v167_v47, 0.0  ;;  %v168_v58 = vadd.f32 %v152_v45, %v90_v48  ;;  %v91_v59 = vadd.f32 %v345_v2, %v68_v49  ;;  %v132_v60 = vmul.f32 %v353_v5, %v109_v46  ;;  %v112_v15 = vld [vmem:[%s493_s0 + $0x50] sm:$0xff]  ;;  %v113_v24 = vld [vmem:[%s493_s0 + $0x58] sm:$0xff]  ;;  %v114_v30 = vld [vmem:[%s493_s0 + $0x60] sm:$0xff] }
  0x10   :  { %198 = vst [vmem:[#allocation2 + $0x10] sm:$0xff] %v182_v52  ;;  %v69_v61 = vmul.f32 %v246_v53, %v340_v1  ;;  %v154_v62 = vadd.f32 %v358_v6, %v131_v54  ;;  %v70_v63 = vmul.f32 %v247_v55, %v340_v1  ;;  %v250_v0 = vunpack.c.l.bf16 %v267_v51  ;;  %v269_v29 = vld [vmem:[%s496_s3 + $0x30] sm:$0xff]   ;;  %v115_v39 = vld [vmem:[%s493_s0 + $0x68] sm:$0xff]  ;;  %v270_v44 = vld [vmem:[%s496_s3 + $0x38] sm:$0xff]  }
  0x11   :  { %199 = vst [vmem:[#allocation2 + $0x18] sm:$0xff] %v183_v57  ;;  %v184_v7 = vmax.f32 %v168_v58, 0.0  ;;  %v169_v8 = vadd.f32 %v153_v50, %v91_v59  ;;  %v155_v9 = vadd.f32 %v358_v6, %v132_v60  ;;  %v133_v10 = vmul.f32 %v353_v5, %v110_v56  ;;  %v116_v49 = vld [vmem:[%s493_s0 + $0x70] sm:$0xff]  ;;  %v117_v54 = vld [vmem:[%s493_s0 + $0x78] sm:$0xff]  ;;  %s296_s0 = smov [#allocation2]  }
  0x12   :  { %v92_v11 = vadd.f32 %v345_v2, %v69_v61  ;;  %v93_v12 = vadd.f32 %v345_v2, %v70_v63  ;;  %v71_v13 = vmul.f32 %v250_v0, %v340_v1  ;;  %v251_v14 = vunpack.c.h.bf16 %v267_v51  ;;  %s217_s20 = sshll.u32 %s296_s0, 4  ;;  %s218_s20 = int_to_ptr.vmem [resolvable:$true] %s217_s20 }
  0x13   :  { %200 = vst [vmem:[#allocation2 + $0x20] sm:$0xff] %v184_v7  ;;  %v185_v16 = vmax.f32 %v169_v8, 0.0  ;;  %v156_v17 = vadd.f32 %v358_v6, %v133_v10  ;;  %v134_v18 = vmul.f32 %v353_v5, %v111_v3  ;;  %v254_v19 = vunpack.c.l.bf16 %v268_v4  ;;  %s274_s21 = scalar_lea.vmem %s218_s20, 2048  ;;  %p279_p1 = scmp.lt.s32.totalorder %s218_s20, %s218_s20 }
  0x14   :  { %v170_v20 = vadd.f32 %v154_v62, %v92_v11  ;;  %v171_v21 = vadd.f32 %v155_v9, %v93_v12  ;;  %v94_v22 = vadd.f32 %v345_v2, %v71_v13  ;;  %v72_v23 = vmul.f32 %v251_v14, %v340_v1  ;;  %p275_p0 = scmp.ne.s32.totalorder %s218_s20, %s274_s21  ;;  %p280_p2 = scmp.lt.s32.totalorder %s274_s21, %s274_s21 }
  0x15   :  { %201 = vst [vmem:[#allocation2 + $0x28] sm:$0xff] %v185_v16  ;;  %v157_v25 = vadd.f32 %v358_v6, %v134_v18  ;;  %v73_v26 = vmul.f32 %v254_v19, %v340_v1  ;;  %v135_v27 = vmul.f32 %v353_v5, %v112_v15  ;;  %v255_v28 = vunpack.c.h.bf16 %v268_v4 }
  0x16   :  { %v186_v31 = vmax.f32 %v170_v20, 0.0  ;;  %v187_v32 = vmax.f32 %v171_v21, 0.0  ;;  %v172_v33 = vadd.f32 %v156_v17, %v94_v22  ;;  %v95_v34 = vadd.f32 %v345_v2, %v72_v23  ;;  %p281_p3 = por %p280_p2, %p279_p1 }
  0x17   :  { %v96_v35 = vadd.f32 %v345_v2, %v73_v26  ;;  %v158_v36 = vadd.f32 %v358_v6, %v135_v27  ;;  %v74_v37 = vmul.f32 %v255_v28, %v340_v1  ;;  %v136_v38 = vmul.f32 %v353_v5, %v113_v24 }
  0x18   :  { %202 = vst [vmem:[#allocation2 + $0x30] sm:$0xff] %v186_v31  ;;  %203 = vst [vmem:[#allocation2 + $0x38] sm:$0xff] %v187_v32  ;;  %v188_v40 = vmax.f32 %v172_v33, 0.0  ;;  %v173_v41 = vadd.f32 %v157_v25, %v95_v34  ;;  %v258_v42 = vunpack.c.l.bf16 %v269_v29  ;;  %v137_v43 = vmul.f32 %v353_v5, %v114_v30  ;;  %p282_p4 = pnand %p281_p3, %p275_p0 }
  0x19   :  { %v174_v45 = vadd.f32 %v158_v36, %v96_v35  ;;  %v97_v46 = vadd.f32 %v345_v2, %v74_v37  ;;  %v159_v47 = vadd.f32 %v358_v6, %v136_v38  ;;  %v259_v48 = vunpack.c.h.bf16 %v269_v29 }
  0x1a   :  { %204 = vst [vmem:[#allocation2 + $0x40] sm:$0xff] %v188_v40  ;;  %v189_v50 = vmax.f32 %v173_v41, 0.0  ;;  %v75_v51 = vmul.f32 %v258_v42, %v340_v1  ;;  %v160_v52 = vadd.f32 %v358_v6, %v137_v43  ;;  %v138_v53 = vmul.f32 %v353_v5, %v115_v39 }
  0x1b   :  { %v190_v55 = vmax.f32 %v174_v45, 0.0  ;;  %v175_v56 = vadd.f32 %v159_v47, %v97_v46  ;;  %v76_v57 = vmul.f32 %v259_v48, %v340_v1  ;;  %v262_v58 = vunpack.c.l.bf16 %v270_v44 }
  0x1c   :  { %205 = vst [vmem:[#allocation2 + $0x48] sm:$0xff] %v189_v50  ;;  %v98_v59 = vadd.f32 %v345_v2, %v75_v51  ;;  %v161_v60 = vadd.f32 %v358_v6, %v138_v53  ;;  %v139_v61 = vmul.f32 %v353_v5, %v116_v49  ;;  %v263_v62 = vunpack.c.h.bf16 %v270_v44 }
  0x1d   :  { %206 = vst [vmem:[#allocation2 + $0x50] sm:$0xff] %v190_v55  ;;  %v191_v63 = vmax.f32 %v175_v56, 0.0  ;;  %v99_v0 = vadd.f32 %v345_v2, %v76_v57  ;;  %v77_v3 = vmul.f32 %v262_v58, %v340_v1  ;;  %v140_v4 = vmul.f32 %v353_v5, %v117_v54 }
  0x1e   :  { %v176_v7 = vadd.f32 %v160_v52, %v98_v59  ;;  %v162_v8 = vadd.f32 %v358_v6, %v139_v61  ;;  %v78_v9 = vmul.f32 %v263_v62, %v340_v1 }
  0x1f   :  { %207 = vst [vmem:[#allocation2 + $0x58] sm:$0xff] %v191_v63  ;;  %v177_v10 = vadd.f32 %v161_v60, %v99_v0  ;;  %v100_v11 = vadd.f32 %v345_v2, %v77_v3  ;;  %v163_v12 = vadd.f32 %v358_v6, %v140_v4 }
  0x20   :  { %v192_v13 = vmax.f32 %v176_v7, 0.0  ;;  %v101_v14 = vadd.f32 %v345_v2, %v78_v9 }
  0x21   :  { %v193_v15 = vmax.f32 %v177_v10, 0.0  ;;  %v178_v16 = vadd.f32 %v162_v8, %v100_v11 }
  0x22   :  { %208 = vst [vmem:[#allocation2 + $0x60] sm:$0xff] %v192_v13  ;;  %v179_v5 = vadd.f32 %v163_v12, %v101_v14 }
  0x23   :  { %209 = vst [vmem:[#allocation2 + $0x68] sm:$0xff] %v193_v15  ;;  %v194_v17 = vmax.f32 %v178_v16, 0.0 }
  0x24   :  { %v195_v18 = vmax.f32 %v179_v5, 0.0 }
  0x25   :  { %210 = vst [vmem:[#allocation2 + $0x70] sm:$0xff] %v194_v17 }
  0x26   :  { %211 = vst [vmem:[#allocation2 + $0x78] sm:$0xff] %v195_v18 }
  0x27   :  { %285 = shalt.err (!%p282_p4)
}
  0x28   :  { %s297_s22 = smov 128   ;;  %s298_s23 = smov 8  }
  0x29   :  { %223 = dma.vmem_to_hbm [thread:$0]  %s218_s20, 2048, %s499_s6, [#allocation3], %s297_s22, %s297_s22, %s298_s23  }
  0x2a   :  { %294 = dma.done.wait [#allocation3], 2048  }
  0x2b   :  { %295 = vsyncadd [#allocation3], 4294965248 }
  0x2c   :  { %227 = vsyncpa [#allocation3], 1 }

// kernel: bottleneck_forward.9
= control target key start
LH: loop header
LB: loop body
LE: loop exit
PB: predicated region body
PF: predicated region fallthrough
CT: control target
= control target key end

     0   :  { %vm377_vm0 = vcmask 1040384   ;;  %s658_s1 = inlined_call_operand.vmem [shape: bf16[128,128], index: 1, kind: input, shape index: {}]   ;;  %s659_s0 = inlined_call_operand.vmem [shape: bf16[128,128], index: 0, kind: input, shape index: {}]   ;;  %s660_s2 = inlined_call_operand.vmem [shape: bf16[128,128], index: 2, kind: output, shape index: {0}]   ;;  %s661_s3 = inlined_call_operand.vmem [shape: f32[1,2,128], index: 3, kind: output, shape index: {1}]  }
   0x1   :  { %v547_v0 = vld [vmem:[%s658_s1 + $0x38] sm:$0xff]   ;;  %v548_v1 = vld [vmem:[%s658_s1 + $0x30] sm:$0xff]   ;;  %v549_v2 = vld [vmem:[%s658_s1 + $0x28] sm:$0xff]  }
   0x2   :  { %499 = vmatprep.subr.bf16.mxu0 %v547_v0  ;;  %531 = vmatprep.subr.bf16.mxu1 %v547_v0  ;;  %v550_v3 = vld [vmem:[%s658_s1 + $0x20] sm:$0xff]   ;;  %v551_v5 = vld [vmem:[%s658_s1 + $0x18] sm:$0xff]   ;;  %v552_v7 = vld [vmem:[%s658_s1 + $0x10] sm:$0xff]  }
   0x3   :  { %500 = vmatpush3.bf16.msra.mxu0 %v547_v0  ;;  %539 = vmatpush3.bf16.msra.mxu1 %v547_v0  ;;  %v555_v4 = vld [vmem:[%s659_s0] sm:$0xff]   ;;  %v553_v8 = vld [vmem:[%s658_s1 + $0x8] sm:$0xff]   ;;  %v557_v12 = vld [vmem:[%s659_s0 + $0x10] sm:$0xff]  }
   0x4   :  { %501 = vmatprep.subr.bf16.mxu0 %v548_v1  ;;  %532 = vmatprep.subr.bf16.mxu1 %v548_v1  ;;  %v559_v6 = vld [vmem:[%s659_s0 + $0x20] sm:$0xff]   ;;  %v556_v10 = vld [vmem:[%s659_s0 + $0x8] sm:$0xff]   ;;  %v561_v13 = vld [vmem:[%s659_s0 + $0x30] sm:$0xff]  }
   0x5   :  { %515 = vmatprep.mubr.bf16.mxu0 %v555_v4  ;;  %523 = vmatprep.mubr.bf16.mxu1 %v559_v6  ;;  %v554_v9 = vld [vmem:[%s658_s1] sm:$0xff]   ;;  %v560_v11 = vld [vmem:[%s659_s0 + $0x28] sm:$0xff]   ;;  %v558_v14 = vld [vmem:[%s659_s0 + $0x18] sm:$0xff]  }
   0x6   :  { %v562_v15 = vld [vmem:[%s659_s0 + $0x38] sm:$0xff]  }
   0x7   :  { %502 = vmatpush3.bf16.msra.mxu0 %v548_v1  ;;  %540 = vmatpush3.bf16.msra.mxu1 %v548_v1 }
   0x8   :  { %503 = vmatprep.subr.bf16.mxu0 %v549_v2  ;;  %533 = vmatprep.subr.bf16.mxu1 %v549_v2 }
   0xb   :  { %504 = vmatpush3.bf16.msra.mxu0 %v549_v2  ;;  %541 = vmatpush3.bf16.msra.mxu1 %v549_v2 }
   0xc   :  { %505 = vmatprep.subr.bf16.mxu0 %v550_v3  ;;  %534 = vmatprep.subr.bf16.mxu1 %v550_v3 }
   0xf   :  { %506 = vmatpush3.bf16.msra.mxu0 %v550_v3  ;;  %542 = vmatpush3.bf16.msra.mxu1 %v550_v3 }
  0x10   :  { %507 = vmatprep.subr.bf16.mxu0 %v551_v5  ;;  %535 = vmatprep.subr.bf16.mxu1 %v551_v5 }
  0x13   :  { %508 = vmatpush3.bf16.msra.mxu0 %v551_v5  ;;  %543 = vmatpush3.bf16.msra.mxu1 %v551_v5 }
  0x14   :  { %509 = vmatprep.subr.bf16.mxu0 %v552_v7  ;;  %536 = vmatprep.subr.bf16.mxu1 %v552_v7 }
  0x17   :  { %510 = vmatpush3.bf16.msra.mxu0 %v552_v7  ;;  %544 = vmatpush3.bf16.msra.mxu1 %v552_v7 }
  0x18   :  { %511 = vmatprep.subr.bf16.mxu0 %v553_v8  ;;  %537 = vmatprep.subr.bf16.mxu1 %v553_v8 }
  0x1b   :  { %512 = vmatpush3.bf16.msra.mxu0 %v553_v8  ;;  %545 = vmatpush3.bf16.msra.mxu1 %v553_v8 }
  0x1c   :  { %513 = vmatprep.subr.bf16.mxu0 %v554_v9  ;;  %538 = vmatprep.subr.bf16.mxu1 %v554_v9 }
  0x1f   :  { %514 = vmatpush3.bf16.msra.mxu0 %v554_v9  ;;  %546 = vmatpush3.bf16.msra.mxu1 %v554_v9 }
  0x22   :  { %516 = vmatmul.mubr.bf16.vlgmr.msra.gmra.mxu0 %v556_v10  ;;  %524 = vmatmul.mubr.bf16.vlgmr.msra.gmra.mxu1 %v560_v11 }
  0x23   :  { %519 = vmatprep.mubr.bf16.mxu0 %v557_v12  ;;  %527 = vmatprep.mubr.bf16.mxu1 %v561_v13 }
  0x2a   :  { %520 = vmatmul.mubr.bf16.gmra.mxu0 %v558_v14  ;;  %528 = vmatmul.mubr.bf16.gmra.mxu1 %v562_v15 }
  0xe2   :  { %v517_v16 = vpop.f32.mrf.mxu0  ;;  %v525_v17 = vpop.f32.mrf.mxu1 }
  0xe3   :  { %v342_v33 = vmul.f32 %v517_v16, %v517_v16  ;;  %v350_v3 = vmul.f32 %v525_v17, %v525_v17 }
  0xe4   :  { %v176_v18 = vpop.f32.mrf.mxu0  ;;  %v208_v19 = vpop.f32.mrf.mxu1 }
  0xe5   :  { %v340_v24 = vmul.f32 %v176_v18, %v176_v18  ;;  %v348_v61 = vmul.f32 %v208_v19, %v208_v19 }
  0xe6   :  { %v518_v20 = vpop.f32.mrf.mxu0  ;;  %v526_v21 = vpop.f32.mrf.mxu1 }
  0xe7   :  { %v444_v22 = vpack.c.bf16 %v518_v20, %v517_v16  ;;  %v464_v23 = vpack.c.bf16 %v526_v21, %v525_v17  ;;  %v343_v38 = vmul.f32 %v518_v20, %v518_v20  ;;  %v351_v6 = vmul.f32 %v526_v21, %v526_v21 }
  0xe8   :  { %v179_v25 = vpop.f32.mrf.mxu0  ;;  %v211_v26 = vpop.f32.mrf.mxu1 }
  0xe9   :  { %476 = vst [vmem:[%s660_s2 + $0x8] sm:$0xff] %v444_v22   ;;  %v439_v27 = vpack.c.bf16 %v179_v25, %v176_v18  ;;  %v319_v28 = vadd.f32 %v179_v25, %v176_v18  ;;  %v341_v29 = vmul.f32 %v179_v25, %v179_v25  ;;  %480 = vst [vmem:[%s660_s2 + $0x28] sm:$0xff] %v464_v23  }
  0xea   :  { %v459_v30 = vpack.c.bf16 %v211_v26, %v208_v19  ;;  %v521_v31 = vpop.f32.mrf.mxu0  ;;  %v529_v32 = vpop.f32.mrf.mxu1  ;;  %v349_v1 = vmul.f32 %v211_v26, %v211_v26 }
  0xeb   :  { %440 = vst [vmem:[%s660_s2] sm:$0xff] %v439_v27   ;;  %v320_v34 = vadd.f32 %v517_v16, %v319_v28  ;;  %v356_v35 = vadd.f32 %v341_v29, %v340_v24  ;;  %v346_v55 = vmul.f32 %v521_v31, %v521_v31  ;;  %v354_v15 = vmul.f32 %v529_v32, %v529_v32 }
  0xec   :  { %479 = vst [vmem:[%s660_s2 + $0x20] sm:$0xff] %v459_v30   ;;  %v192_v36 = vpop.f32.mrf.mxu0  ;;  %v224_v37 = vpop.f32.mrf.mxu1 }
  0xed   :  { %v357_v39 = vadd.f32 %v356_v35, %v342_v33  ;;  %v321_v40 = vadd.f32 %v518_v20, %v320_v34  ;;  %v344_v44 = vmul.f32 %v192_v36, %v192_v36  ;;  %v352_v10 = vmul.f32 %v224_v37, %v224_v37 }
  0xee   :  { %v522_v41 = vpop.f32.mrf.mxu0  ;;  %v530_v42 = vpop.f32.mrf.mxu1 }
  0xef   :  { %v322_v43 = vadd.f32 %v321_v40, %v192_v36  ;;  %v358_v45 = vadd.f32 %v357_v39, %v343_v38  ;;  %v454_v46 = vpack.c.bf16 %v522_v41, %v521_v31  ;;  %v474_v48 = vpack.c.bf16 %v530_v42, %v529_v32 }
  0xf0   :  { %v195_v47 = vpop.f32.mrf.mxu0  ;;  %v227_v49 = vpop.f32.mrf.mxu1  ;;  %v347_v58 = vmul.f32 %v522_v41, %v522_v41  ;;  %v355_v20 = vmul.f32 %v530_v42, %v530_v42 }
  0xf1   :  { %v359_v50 = vadd.f32 %v358_v45, %v344_v44  ;;  %478 = vst [vmem:[%s660_s2 + $0x18] sm:$0xff] %v454_v46   ;;  %v449_v51 = vpack.c.bf16 %v195_v47, %v192_v36  ;;  %v323_v52 = vadd.f32 %v322_v43, %v195_v47  ;;  %v345_v53 = vmul.f32 %v195_v47, %v195_v47 }
  0xf2   :  { %482 = vst [vmem:[%s660_s2 + $0x38] sm:$0xff] %v474_v48   ;;  %v469_v54 = vpack.c.bf16 %v227_v49, %v224_v37  ;;  %v353_v14 = vmul.f32 %v227_v49, %v227_v49 }
  0xf3   :  { %477 = vst [vmem:[%s660_s2 + $0x10] sm:$0xff] %v449_v51   ;;  %v324_v56 = vadd.f32 %v521_v31, %v323_v52  ;;  %v360_v57 = vadd.f32 %v359_v50, %v345_v53 }
  0xf4   :  { %481 = vst [vmem:[%s660_s2 + $0x30] sm:$0xff] %v469_v54  }
  0xf5   :  { %v325_v59 = vadd.f32 %v522_v41, %v324_v56  ;;  %v361_v60 = vadd.f32 %v360_v57, %v346_v55 }
  0xf7   :  { %v362_v62 = vadd.f32 %v361_v60, %v347_v58  ;;  %v326_v63 = vadd.f32 %v325_v59, %v208_v19 }
  0xf9   :  { %v327_v0 = vadd.f32 %v326_v63, %v211_v26  ;;  %v363_v2 = vadd.f32 %v362_v62, %v348_v61 }
  0xfb   :  { %v328_v4 = vadd.f32 %v525_v17, %v327_v0  ;;  %v364_v5 = vadd.f32 %v363_v2, %v349_v1 }
  0xfd   :  { %v365_v7 = vadd.f32 %v364_v5, %v350_v3  ;;  %v329_v8 = vadd.f32 %v526_v21, %v328_v4 }
  0xff   :  { %v330_v9 = vadd.f32 %v329_v8, %v224_v37  ;;  %v366_v11 = vadd.f32 %v365_v7, %v351_v6 }
 0x101   :  { %v367_v12 = vadd.f32 %v366_v11, %v352_v10  ;;  %v331_v13 = vadd.f32 %v330_v9, %v227_v49 }
 0x103   :  { %v332_v16 = vadd.f32 %v529_v32, %v331_v13  ;;  %v368_v18 = vadd.f32 %v367_v12, %v353_v14 }
 0x105   :  { %v333_v19 = vadd.f32 %v530_v42, %v332_v16  ;;  %v369_v22 = vadd.f32 %v368_v18, %v354_v15 }
 0x107   :  { %v334_v23 = vrot.slane %v333_v19, 4  ;;  %v370_v24 = vadd.f32 %v369_v22, %v355_v20 }
 0x109   :  { %v335_v25 = vadd.f32 %v334_v23, %v333_v19  ;;  %v371_v17 = vrot.slane %v370_v24, 4 }
 0x10b   :  { %v336_v26 = vrot.slane %v335_v25, 2  ;;  %v372_v27 = vadd.f32 %v371_v17, %v370_v24 }
 0x10d   :  { %v337_v28 = vadd.f32 %v336_v26, %v335_v25  ;;  %v373_v21 = vrot.slane %v372_v27, 2 }
 0x10f   :  { %v338_v29 = vrot.slane %v337_v28, 1  ;;  %v374_v30 = vadd.f32 %v373_v21, %v372_v27 }
 0x111   :  { %v375_v31 = vrot.slane %v374_v30, 1  ;;  %v339_v33 = vadd.f32 %v338_v29, %v337_v28 }
 0x113   :  { %v376_v34 = vadd.f32 %v375_v31, %v374_v30 }
 0x115   :  { %v378_v35 = vsel %vm377_vm0, %v339_v33, %v376_v34 }
 0x116   :  { %379 = vst [vmem:[%s661_s3] sm:$0x3] %v378_v35 }

// kernel: bottleneck_forward.8
= control target key start
LH: loop header
LB: loop body
LE: loop exit
PB: predicated region body
PF: predicated region fallthrough
CT: control target
= control target key end

     0   :  { %s3143_s12 = smov 0   ;;  %s3145_s13 = smov 0   ;;  %s3562_s0 = inlined_call_operand.vmem [shape: bf16[2,4,9,9,128], index: 0, kind: input, shape index: {}]   ;;  %s3563_s1 = inlined_call_operand.vmem [shape: bf16[9,128,128], index: 1, kind: input, shape index: {}]   ;;  %s3564_s2 = inlined_call_operand.vmem [shape: bf16[128,128], index: 2, kind: output, shape index: {0}]   ;;  %s3565_s3 = inlined_call_operand.vmem [shape: f32[2,2,128], index: 3, kind: output, shape index: {1}]  }
   0x1   :  { %s3147_s14 = smov 0  }
   0x2 LB: > { %s26_s15 = sadd.s32 1, %s3117_s13  ;;  %p2284_p0 = scmp.ge.s32.totalorder %s3121_s14, 1  ;;  %s3121_s14 = sphi %s3147_s14, %s14_s14   ;;  %s3117_s13 = sphi %s3145_s13, %s3584_s13   ;;  %s3113_s12 = sphi %s3143_s12, %s3583_s12  }
   0x3   : > { %p28_p1 = scmp.ge.s32.totalorder %s26_s15, 2  ;;  %p156_p2 = scmp.lt.s32.totalorder %s3121_s14, 3 }
   0x5   : > { %s3586_s15 = smov (%p28_p1, %s26_s15), 0  ;;  %p157_p3 = pnand %p2284_p0, %p156_p2 }
   0x7   : > { %160 = sbr.rel (%p157_p3) target bundleno = 404 (0x194), region = 28 }
   0xc   : > { %v3003_v0 = vld [vmem:[%s3563_s1 + $0x78] sm:$0xff]   ;;  %p186_p4 = scmp.lt.s32.totalorder %s3113_s12, 1  ;;  %v3005_v2 = vld [vmem:[%s3563_s1 + $0x70] sm:$0xff]   ;;  %v3007_v4 = vld [vmem:[%s3563_s1 + $0x68] sm:$0xff]   ;;  %vm552_vm0 = vsmask.f32 3328 }
   0xd   : > { %v3004_v1 = vld [vmem:[%s3563_s1 + $0x38] sm:$0xff]   ;;  %2746 = vmatprep.subr.bf16.mxu0 %v3003_v0  ;;  %v3006_v3 = vld [vmem:[%s3563_s1 + $0x30] sm:$0xff]   ;;  %v3008_v5 = vld [vmem:[%s3563_s1 + $0x28] sm:$0xff]   ;;  %vm553_vm1 = vsmask.f32 7440  ;;  %s2286_s10 = sshll.u32 %s3113_s12, 3 }
   0xe   : > { %2770 = vmatprep.subr.bf16.mxu1 %v3004_v1  ;;  %2747 = vmatpush3.bf16.msra.mxu0 %v3003_v0  ;;  %s3183_s28 = scalar_select %p186_p4, %s3113_s12, 1  ;;  %v3009_v6 = vld [vmem:[%s3563_s1 + $0x60] sm:$0xff]   ;;  %v3011_v8 = vld [vmem:[%s3563_s1 + $0x58] sm:$0xff]   ;;  %v3013_v10 = vld [vmem:[%s3563_s1 + $0x50] sm:$0xff]   ;;  %vm2152_vm3 = vcmask 1040384  }
   0xf   : > { %2771 = vmatpush3.bf16.msra.mxu1 %v3004_v1  ;;  %2748 = vmatprep.subr.bf16.mxu0 %v3005_v2  ;;  %v3010_v7 = vld [vmem:[%s3563_s1 + $0x20] sm:$0xff]   ;;  %v3012_v9 = vld [vmem:[%s3563_s1 + $0x18] sm:$0xff]   ;;  %v3014_v11 = vld [vmem:[%s3563_s1 + $0x10] sm:$0xff]   ;;  %p3533_p5 = scmp.lt.s32.totalorder %s2286_s10, 15 }
  0x10   : > { %2772 = vmatprep.subr.bf16.mxu1 %v3006_v3  ;;  %s2978_s6 = smul.u32 288, %s3183_s28  ;;  %v3015_v14 = vld [vmem:[%s3563_s1 + $0x48] sm:$0xff]   ;;  %v3017_v16 = vld [vmem:[%s3563_s1 + $0x40] sm:$0xff]   ;;  %v3023_v19 = vld [vmem:[%s3563_s1 + $0xb8] sm:$0xff]   ;;  %s2288_s20 = sshll.u32 %s3183_s28, 1 }
  0x11   : > { %v3016_v15 = vld [vmem:[%s3563_s1 + $0x8] sm:$0xff]   ;;  %v3018_v17 = vld [vmem:[%s3563_s1] sm:$0xff]   ;;  %v3024_v20 = vld [vmem:[%s3563_s1 + $0xf8] sm:$0xff]   ;;  %s3588_s10 = smov (!%p3533_p5, %s2286_s10), 15  ;;  %s203_s23 = scalar_lea.vmem %s3565_s3, %s2288_s20 }
  0x12   : > { %2749 = vmatpush3.bf16.msra.mxu0 %v3005_v2  ;;  %s3201_s17 = scalar_lea.vmem %s3562_s0, %s2978_s6  ;;  %v3025_v22 = vld [vmem:[%s3563_s1 + $0xb0] sm:$0xff]   ;;  %v3027_v26 = vld [vmem:[%s3563_s1 + $0xa8] sm:$0xff]   ;;  %v3029_v28 = vld [vmem:[%s3563_s1 + $0xa0] sm:$0xff]   ;;  %s2287_s12 = sshll.u32 %s3588_s10, 2 }
  0x13   : > { %2773 = vmatpush3.bf16.msra.mxu1 %v3006_v3  ;;  %2750 = vmatprep.subr.bf16.mxu0 %v3007_v4  ;;  %v3019_v12 = vld [vmem:[%s3201_s17 + $0x48] ss:$8 sps:$4 sm:$0xff]   ;;  %v3021_v18 = vld [vmem:[%s3201_s17 + $0x58] ss:$8 sps:$4 sm:$0xff]   ;;  %v537_v33 = vld [vmem:[%s3201_s17 + $0x4] sm:$0x1]  ;;  %s196_s19 = scalar_lea.vmem %s3564_s2, %s2287_s12 }
  0x14   : > { %2774 = vmatprep.subr.bf16.mxu1 %v3008_v5  ;;  %v3020_v13 = vld [vmem:[%s3201_s17] ss:$8 sps:$4 sm:$0xff]   ;;  %2762 = vmatprep.mubr.bf16.mxu0 %v3019_v12  ;;  %v3022_v21 = vld [vmem:[%s3201_s17 + $0x10] ss:$8 sps:$4 sm:$0xff]   ;;  %v539_v35 = vld [vmem:[%s3201_s17 + $0xc] sm:$0x1] }
  0x15   : > { %2786 = vmatprep.mubr.bf16.mxu1 %v3020_v13  ;;  %v3026_v23 = vld [vmem:[%s3563_s1 + $0xf0] sm:$0xff]   ;;  %v3034_v25 = vld [vmem:[%s3201_s17 + $0x20] ss:$8 sps:$4 sm:$0xff]   ;;  %v3031_v36 = vld [vmem:[%s3563_s1 + $0x98] sm:$0xff]   ;;  %v565_v39 = vshll.u32 %v537_v33, 16  ;;  %v579_v44 = vshll.u32 %v539_v35, 16 }
  0x16   : > { %2751 = vmatpush3.bf16.msra.mxu0 %v3007_v4  ;;  %v3033_v24 = vld [vmem:[%s3201_s17 + $0x68] ss:$8 sps:$4 sm:$0xff]   ;;  %v3035_v29 = vld [vmem:[%s3201_s17 + $0x78] ss:$8 sps:$4 sm:$0xff]   ;;  %v541_v45 = vld [vmem:[%s3201_s17 + $0x14] sm:$0x1] }
  0x17   : > { %2775 = vmatpush3.bf16.msra.mxu1 %v3008_v5  ;;  %2752 = vmatprep.subr.bf16.mxu0 %v3009_v6  ;;  %v3028_v27 = vld [vmem:[%s3563_s1 + $0xe8] sm:$0xff]   ;;  %v3030_v30 = vld [vmem:[%s3563_s1 + $0xe0] sm:$0xff]   ;;  %v3036_v31 = vld [vmem:[%s3201_s17 + $0x30] ss:$8 sps:$4 sm:$0xff]   ;;  %v567_v49 = vrot.slane %v565_v39, 5  ;;  %v581_v53 = vrot.slane %v579_v44, 5 }
  0x18   : > { %2776 = vmatprep.subr.bf16.mxu1 %v3010_v7  ;;  %v536_v32 = vld [vmem:[%s3201_s17] sm:$0xf]  ;;  %v538_v34 = vld [vmem:[%s3201_s17 + $0x8] sm:$0xf]  ;;  %v540_v41 = vld [vmem:[%s3201_s17 + $0x10] sm:$0xf] }
  0x19   : > { %v556_v37 = vshrl.u32 %v536_v32, 16  ;;  %v559_v38 = vshll.u32 %v536_v32, 16  ;;  %v570_v40 = vshrl.u32 %v538_v34, 16  ;;  %v3032_v42 = vld [vmem:[%s3563_s1 + $0xd8] sm:$0xff]   ;;  %v573_v43 = vshll.u32 %v538_v34, 16  ;;  %v3037_v60 = vld [vmem:[%s3563_s1 + $0x90] sm:$0xff]   ;;  %vm3272_vm2 = vmor %vm552_vm0, %vm553_vm1 }
  0x1a   : > { %2753 = vmatpush3.bf16.msra.mxu0 %v3009_v6  ;;  %v542_v46 = vld [vmem:[%s3201_s17 + $0x18] sm:$0xf]  ;;  %v543_v51 = vld [vmem:[%s3201_s17 + $0x1c] sm:$0x1]  ;;  %v584_v54 = vshrl.u32 %v540_v41, 16  ;;  %v587_v55 = vshll.u32 %v540_v41, 16 }
  0x1b   : > { %2777 = vmatpush3.bf16.msra.mxu1 %v3010_v7  ;;  %2754 = vmatprep.subr.bf16.mxu0 %v3011_v8  ;;  %v558_v47 = vrot.slane %v556_v37, 4  ;;  %v561_v48 = vrot.slane %v559_v38, 5  ;;  %v572_v50 = vrot.slane %v570_v40, 4  ;;  %v575_v52 = vrot.slane %v573_v43, 5  ;;  %v3043_v2 = vld [vmem:[%s3201_s17 + $0x90] ss:$8 sps:$4 sm:$0xff]  }
  0x1c   : > { %2778 = vmatprep.subr.bf16.mxu1 %v3012_v9  ;;  %v593_v57 = vshll.u32 %v541_v45, 16  ;;  %v598_v58 = vshrl.u32 %v542_v46, 16  ;;  %v601_v59 = vshll.u32 %v542_v46, 16  ;;  %v586_v63 = vrot.slane %v584_v54, 4  ;;  %v3038_v3 = vld [vmem:[%s3563_s1 + $0xd0] sm:$0xff]   ;;  %v3039_v12 = vld [vmem:[%s3563_s1 + $0x88] sm:$0xff]  }
  0x1d   : > { %v562_v56 = vor.u32 %v561_v48, %v558_v47  ;;  %v576_v62 = vor.u32 %v575_v52, %v572_v50  ;;  %v589_v0 = vrot.slane %v587_v55, 5  ;;  %v607_v1 = vshll.u32 %v543_v51, 16  ;;  %v548_v32 = vld [vmem:[%s3201_s17 + $0x30] sm:$0xf]  ;;  %v550_v41 = vld [vmem:[%s3201_s17 + $0x38] sm:$0xf] }
  0x1e   : > { %2755 = vmatpush3.bf16.msra.mxu0 %v3011_v8  ;;  %v600_v5 = vrot.slane %v598_v58, 4  ;;  %v603_v6 = vrot.slane %v601_v59, 5  ;;  %v640_v37 = vshrl.u32 %v548_v32, 16  ;;  %v551_v45 = vld [vmem:[%s3201_s17 + $0x3c] sm:$0x1]  ;;  %v654_v50 = vshrl.u32 %v550_v41, 16 }
  0x1f   : > { %2779 = vmatpush3.bf16.msra.mxu1 %v3012_v9  ;;  %2756 = vmatprep.subr.bf16.mxu0 %v3013_v10  ;;  %v563_v4 = vrot.slane %v562_v56, 4  ;;  %v577_v7 = vrot.slane %v576_v62, 4  ;;  %v590_v8 = vor.u32 %v589_v0, %v586_v63  ;;  %v3280_v9 = vrot.slane %v593_v57, 5  ;;  %v3044_v52 = vld [vmem:[%s3563_s1 + $0x138] sm:$0xff]   ;;  %v3046_v56 = vld [vmem:[%s3201_s17 + $0xa0] ss:$8 sps:$4 sm:$0xff]  }
  0x20   : > { %2780 = vmatprep.subr.bf16.mxu1 %v3014_v11  ;;  %v642_v46 = vrot.slane %v640_v37, 4  ;;  %v657_v51 = vshll.u32 %v550_v41, 16  ;;  %v663_v54 = vshll.u32 %v551_v45, 16  ;;  %v3045_v55 = vld [vmem:[%s3563_s1 + $0x178] sm:$0xff]   ;;  %v656_v59 = vrot.slane %v654_v50, 4 }
  0x21   : > { %v582_v13 = vsel %vm3272_vm2, %v577_v7, %v581_v53  ;;  %v3048_v7 = vld [vmem:[%s3563_s1 + $0x170] sm:$0xff]   ;;  %v2442_v41 = vld [vmem:[%s3201_s17 + $0xa4] sm:$0x1] }
  0x22   : > { %2757 = vmatpush3.bf16.msra.mxu0 %v3013_v10  ;;  %v568_v10 = vsel %vm3272_vm2, %v563_v4, %v567_v49 }
  0x23   : > { %2781 = vmatpush3.bf16.msra.mxu1 %v3014_v11  ;;  %2758 = vmatprep.subr.bf16.mxu0 %v3015_v14  ;;  %v604_v11 = vor.u32 %v603_v6, %v600_v5  ;;  %v665_v5 = vrot.slane %v663_v54, 5  ;;  %v3051_v6 = vld [vmem:[%s3201_s17 + $0xb0] ss:$8 sps:$4 sm:$0xff]  }
  0x24   : > { %2782 = vmatprep.subr.bf16.mxu1 %v3016_v15 }
  0x26   : > { %2759 = vmatpush3.bf16.msra.mxu0 %v3015_v14  ;;  %v591_v14 = vrot.slane %v590_v8, 4 }
  0x27   : > { %2783 = vmatpush3.bf16.msra.mxu1 %v3016_v15  ;;  %2760 = vmatprep.subr.bf16.mxu0 %v3017_v16  ;;  %v609_v15 = vrot.slane %v607_v1, 5  ;;  %v3047_v1 = vld [vmem:[%s3563_s1 + $0x130] sm:$0xff]  }
  0x28   : > { %2784 = vmatprep.subr.bf16.mxu1 %v3018_v17 }
  0x2a   : > { %2761 = vmatpush3.bf16.msra.mxu0 %v3017_v16  ;;  %v3040_v16 = vld [vmem:[%s3563_s1 + $0xc8] sm:$0xff]  }
  0x2b   : > { %2785 = vmatpush3.bf16.msra.mxu1 %v3018_v17  ;;  %2794 = vmatprep.subr.bf16.mxu0 %v3023_v19  ;;  %v2353_v17 = vcombine.low %v568_v10, %v582_v13  ;;  %v3049_v10 = vld [vmem:[%s3563_s1 + $0x128] sm:$0xff]  }
  0x2c   : > { %2818 = vmatprep.subr.bf16.mxu1 %v3024_v20  ;;  %v3050_v13 = vld [vmem:[%s3563_s1 + $0x168] sm:$0xff]  }
  0x2d   : > { %2763 = vmatmul.mubr.bf16.vlgmr.msra.gmra.mxu0 %v3021_v18  ;;  %v605_v18 = vrot.slane %v604_v11, 4 }
  0x2e   : > { %2787 = vmatmul.mubr.bf16.vlgmr.msra.gmra.mxu1 %v3022_v21  ;;  %2795 = vmatpush3.bf16.msra.mxu0 %v3023_v19  ;;  %v544_v19 = vld [vmem:[%s3201_s17 + $0x20] sm:$0xf] }
  0x2f   : > { %2819 = vmatpush3.bf16.msra.mxu1 %v3024_v20  ;;  %2796 = vmatprep.subr.bf16.mxu0 %v3025_v22  ;;  %v545_v20 = vld [vmem:[%s3201_s17 + $0x24] sm:$0x1] }
  0x30   : > { %2820 = vmatprep.subr.bf16.mxu1 %v3026_v23  ;;  %2766 = vmatprep.mubr.bf16.mxu0 %v3033_v24  ;;  %v3041_v21 = vld [vmem:[%s3563_s1 + $0x80] sm:$0xff]   ;;  %v547_v24 = vld [vmem:[%s3201_s17 + $0x2c] sm:$0x1] }
  0x31   : > { %2790 = vmatprep.mubr.bf16.mxu1 %v3034_v25  ;;  %v612_v25 = vshrl.u32 %v544_v19, 16  ;;  %v635_v35 = vshll.u32 %v547_v24, 16  ;;  %v2440_v24 = vld [vmem:[%s3201_s17 + $0x9c] sm:$0x1] }
  0x32   : > { %2797 = vmatpush3.bf16.msra.mxu0 %v3025_v22  ;;  %v596_v22 = vsel %vm3272_vm2, %v591_v14, %v3280_v9 }
  0x33   : > { %2821 = vmatpush3.bf16.msra.mxu1 %v3026_v23  ;;  %2798 = vmatprep.subr.bf16.mxu0 %v3027_v26  ;;  %v546_v23 = vld [vmem:[%s3201_s17 + $0x28] sm:$0xf]  ;;  %v614_v33 = vrot.slane %v612_v25, 4  ;;  %v637_v44 = vrot.slane %v635_v35, 5 }
  0x34   : > { %2822 = vmatprep.subr.bf16.mxu1 %v3028_v27 }
  0x35   : > { %2767 = vmatmul.mubr.bf16.gmra.mxu0 %v3035_v29  ;;  %v621_v29 = vshll.u32 %v545_v20, 16  ;;  %v3056_v20 = vld [vmem:[%s3563_s1 + $0x158] sm:$0xff]  }
  0x36   : > { %2799 = vmatpush3.bf16.msra.mxu0 %v3027_v26  ;;  %2791 = vmatmul.mubr.bf16.gmra.mxu1 %v3036_v31  ;;  %v615_v26 = vshll.u32 %v544_v19, 16  ;;  %v629_v31 = vshll.u32 %v546_v23, 16  ;;  %v3063_v19 = vld [vmem:[%s3201_s17 + $0xd8] ss:$8 sps:$4 sm:$0xff]  }
  0x37   : > { %2823 = vmatpush3.bf16.msra.mxu1 %v3028_v27  ;;  %2800 = vmatprep.subr.bf16.mxu0 %v3029_v28  ;;  %v3042_v27 = vld [vmem:[%s3563_s1 + $0xc0] sm:$0xff]   ;;  %v623_v38 = vrot.slane %v621_v29, 5 }
  0x38   : > { %2824 = vmatprep.subr.bf16.mxu1 %v3030_v30  ;;  %2834 = vmatprep.mubr.bf16.mxu1 %v3043_v2  ;;  %v617_v34 = vrot.slane %v615_v26, 5  ;;  %v631_v40 = vrot.slane %v629_v31, 5  ;;  %v3057_v31 = vld [vmem:[%s3563_s1 + $0x110] sm:$0xff]  }
  0x39   : > { %2810 = vmatprep.mubr.bf16.mxu0 %v2353_v17  ;;  %v3054_v17 = vld [vmem:[%s3563_s1 + $0x160] sm:$0xff]  }
  0x3a   : > { %2801 = vmatpush3.bf16.msra.mxu0 %v3029_v28  ;;  %v610_v28 = vsel %vm3272_vm2, %v605_v18, %v609_v15  ;;  %v618_v43 = vor.u32 %v617_v34, %v614_v33  ;;  %v3052_v15 = vld [vmem:[%s3201_s17 + $0xc0] ss:$8 sps:$4 sm:$0xff]   ;;  %v3055_v18 = vld [vmem:[%s3563_s1 + $0x118] sm:$0xff]   ;;  %v3058_v34 = vld [vmem:[%s3563_s1 + $0x150] sm:$0xff]  }
  0x3b   : > { %2825 = vmatpush3.bf16.msra.mxu1 %v3030_v30  ;;  %2802 = vmatprep.subr.bf16.mxu0 %v3031_v36  ;;  %v626_v30 = vshrl.u32 %v546_v23, 16  ;;  %v2354_v62 = vcombine.low %v596_v22, %v610_v28  ;;  %v2438_v22 = vld [vmem:[%s3201_s17 + $0x94] sm:$0x1]  ;;  %v2439_v23 = vld [vmem:[%s3201_s17 + $0x98] sm:$0xf] }
  0x3c   : > { %2826 = vmatprep.subr.bf16.mxu1 %v3032_v42  ;;  %v619_v53 = vrot.slane %v618_v43, 4  ;;  %v1198_v28 = vshrl.u32 %v2439_v23, 16  ;;  %v1201_v29 = vshll.u32 %v2439_v23, 16  ;;  %v2443_v43 = vld [vmem:[%s3201_s17 + $0xa8] sm:$0xf] }
  0x3d   : > { %v628_v39 = vrot.slane %v626_v30, 4  ;;  %v1207_v30 = vshll.u32 %v2440_v24, 16  ;;  %v1229_v50 = vshll.u32 %v2443_v43, 16  ;;  %v2450_v24 = vld [vmem:[%s3201_s17 + $0xc4] sm:$0x1] }
  0x3e   : > { %2803 = vmatpush3.bf16.msra.mxu0 %v3031_v36  ;;  %v549_v36 = vld [vmem:[%s3201_s17 + $0x34] sm:$0x1]  ;;  %v624_v63 = vsel %vm3272_vm2, %v619_v53, %v623_v38  ;;  %v1203_v37 = vrot.slane %v1201_v29, 5  ;;  %v2451_v29 = vld [vmem:[%s3201_s17 + $0xc8] sm:$0xf] }
  0x3f   : > { %2827 = vmatpush3.bf16.msra.mxu1 %v3032_v42  ;;  %2804 = vmatprep.subr.bf16.mxu0 %v3037_v60  ;;  %v643_v42 = vshll.u32 %v548_v32, 16  ;;  %v649_v47 = vshll.u32 %v549_v36, 16  ;;  %v632_v48 = vor.u32 %v631_v40, %v628_v39  ;;  %v1200_v36 = vrot.slane %v1198_v28, 4  ;;  %v2441_v40 = vld [vmem:[%s3201_s17 + $0xa0] sm:$0xf] }
  0x40   : > { %2828 = vmatprep.subr.bf16.mxu1 %v3038_v3  ;;  %v1209_v38 = vrot.slane %v1207_v30, 5  ;;  %v1212_v45 = vshrl.u32 %v2441_v40, 16 }
  0x41   : > { %v645_v49 = vrot.slane %v643_v42, 5  ;;  %v633_v57 = vrot.slane %v632_v48, 4  ;;  %v651_v0 = vrot.slane %v649_v47, 5  ;;  %v1204_v42 = vor.u32 %v1203_v37, %v1200_v36  ;;  %v3068_v37 = vld [vmem:[%s3563_s1 + $0x1f0] sm:$0xff]  }
  0x42   : > { %2805 = vmatpush3.bf16.msra.mxu0 %v3037_v60  ;;  %v659_v60 = vrot.slane %v657_v51, 5  ;;  %v1221_v48 = vshll.u32 %v2442_v41, 16  ;;  %v1282_v41 = vshrl.u32 %v2451_v29, 16 }
  0x43   : > { %2829 = vmatpush3.bf16.msra.mxu1 %v3038_v3  ;;  %2806 = vmatprep.subr.bf16.mxu0 %v3039_v12  ;;  %v646_v58 = vor.u32 %v645_v49, %v642_v46  ;;  %v638_v2 = vsel %vm3272_vm2, %v633_v57, %v637_v44  ;;  %v2444_v44 = vld [vmem:[%s3201_s17 + $0xac] sm:$0x1]  ;;  %v1215_v46 = vshll.u32 %v2441_v40, 16  ;;  %v1226_v49 = vshrl.u32 %v2443_v43, 16 }
  0x44   : > { %2830 = vmatprep.subr.bf16.mxu1 %v3040_v16  ;;  %v660_v4 = vor.u32 %v659_v60, %v656_v59  ;;  %v2355_v8 = vcombine.low %v624_v63, %v638_v2  ;;  %v1205_v51 = vrot.slane %v1204_v42, 4  ;;  %v1235_v54 = vshll.u32 %v2444_v44, 16  ;;  %v3060_v59 = vld [vmem:[%s3563_s1 + $0x148] sm:$0xff]  }
  0x45   : > { %v647_v3 = vrot.slane %v646_v58, 4  ;;  %v1217_v53 = vrot.slane %v1215_v46, 5  ;;  %v1228_v57 = vrot.slane %v1226_v49, 4  ;;  %v1231_v58 = vrot.slane %v1229_v50, 5  ;;  %v3071_v49 = vld [vmem:[%s3563_s1 + $0x1a8] sm:$0xff]  }
  0x46   : > { %2807 = vmatpush3.bf16.msra.mxu0 %v3039_v12  ;;  %v661_v9 = vrot.slane %v660_v4, 4  ;;  %v1210_v60 = vsel %vm3272_vm2, %v1205_v51, %v1209_v38  ;;  %v1223_v63 = vrot.slane %v1221_v48, 5  ;;  %v1237_v2 = vrot.slane %v1235_v54, 5 }
  0x47   : > { %2831 = vmatpush3.bf16.msra.mxu1 %v3040_v16  ;;  %2808 = vmatprep.subr.bf16.mxu0 %v3041_v21  ;;  %v652_v11 = vsel %vm3272_vm2, %v647_v3, %v651_v0  ;;  %v3053_v16 = vld [vmem:[%s3563_s1 + $0x120] sm:$0xff]   ;;  %v1277_v40 = vshll.u32 %v2450_v24, 16  ;;  %v1285_v43 = vshll.u32 %v2451_v29, 16  ;;  %v1284_v48 = vrot.slane %v1282_v41, 4  ;;  %v2561_v24 = vld [vmem:[%s3201_s17 + $0x28] sm:$0xf] }
  0x48   : > { %2832 = vmatprep.subr.bf16.mxu1 %v3042_v27  ;;  %v666_v12 = vsel %vm3272_vm2, %v661_v9, %v665_v5  ;;  %v3061_v3 = vld [vmem:[%s3563_s1 + $0x100] sm:$0xff]   ;;  %v3065_v9 = vld [vmem:[%s3563_s1 + $0x1b8] sm:$0xff]   ;;  %v3088_v41 = vld [vmem:[%s3563_s1 + $0x230] sm:$0xff]  }
  0x49   : > { %v2356_v14 = vcombine.low %v652_v11, %v666_v12  ;;  %v3062_v5 = vld [vmem:[%s3563_s1 + $0x140] sm:$0xff]   ;;  %v2446_v11 = vld [vmem:[%s3201_s17 + $0xb4] sm:$0x1]  ;;  %v2447_v12 = vld [vmem:[%s3201_s17 + $0xb8] sm:$0xf]  ;;  %v1279_v51 = vrot.slane %v1277_v40, 5 }
  0x4a   : > { %2809 = vmatpush3.bf16.msra.mxu0 %v3041_v21  ;;  %v2437_v21 = vld [vmem:[%s3201_s17 + $0x90] sm:$0xf] }
  0x4b   : > { %2833 = vmatpush3.bf16.msra.mxu1 %v3042_v27  ;;  %2842 = vmatprep.subr.bf16.mxu0 %v3044_v52  ;;  %v1184_v25 = vshrl.u32 %v2437_v21, 16  ;;  %v1187_v26 = vshll.u32 %v2437_v21, 16  ;;  %v1193_v27 = vshll.u32 %v2438_v22, 16  ;;  %v1254_v21 = vshrl.u32 %v2447_v12, 16 }
  0x4c   : > { %2866 = vmatprep.subr.bf16.mxu1 %v3045_v55  ;;  %v1257_v22 = vshll.u32 %v2447_v12, 16  ;;  %v3081_v12 = vld [vmem:[%s3563_s1 + $0x180] sm:$0xff]  }
  0x4d   : > { %2811 = vmatmul.mubr.bf16.vlgmr.msra.gmra.mxu0 %v2354_v62  ;;  %v1186_v32 = vrot.slane %v1184_v25, 4  ;;  %v1189_v33 = vrot.slane %v1187_v26, 5  ;;  %v1195_v35 = vrot.slane %v1193_v27, 5 }
  0x4e   : > { %2835 = vmatmul.mubr.bf16.vlgmr.msra.gmra.mxu1 %v3046_v56  ;;  %2843 = vmatpush3.bf16.msra.mxu0 %v3044_v52  ;;  %v1214_v52 = vrot.slane %v1212_v45, 4  ;;  %v3069_v45 = vld [vmem:[%s3201_s17 + $0xf8] ss:$8 sps:$4 sm:$0xff]  }
  0x4f   : > { %2867 = vmatpush3.bf16.msra.mxu1 %v3045_v55  ;;  %2844 = vmatprep.subr.bf16.mxu0 %v3047_v1  ;;  %v1190_v39 = vor.u32 %v1189_v33, %v1186_v32  ;;  %v3059_v55 = vld [vmem:[%s3563_s1 + $0x108] sm:$0xff]   ;;  %v1256_v32 = vrot.slane %v1254_v21, 4  ;;  %v1259_v33 = vrot.slane %v1257_v22, 5  ;;  %v3084_v21 = vld [vmem:[%s3201_s17 + $0x18] ss:$8 sps:$4 sm:$0xff]  }
  0x50   : > { %2868 = vmatprep.subr.bf16.mxu1 %v3048_v7  ;;  %2814 = vmatprep.mubr.bf16.mxu0 %v2355_v8  ;;  %v1218_v62 = vor.u32 %v1217_v53, %v1214_v52  ;;  %v2445_v8 = vld [vmem:[%s3201_s17 + $0xb0] sm:$0xf]  ;;  %v1287_v52 = vrot.slane %v1285_v43, 5  ;;  %v3086_v22 = vld [vmem:[%s3563_s1 + $0x238] sm:$0xff]  }
  0x51   : > { %2838 = vmatprep.mubr.bf16.mxu1 %v3051_v6  ;;  %v1191_v47 = vrot.slane %v1190_v39, 4  ;;  %v1260_v42 = vor.u32 %v1259_v33, %v1256_v32  ;;  %v2564_v33 = vld [vmem:[%s3201_s17 + $0x34] sm:$0x1] }
  0x52   : > { %2845 = vmatpush3.bf16.msra.mxu0 %v3047_v1  ;;  %v1232_v1 = vor.u32 %v1231_v58, %v1228_v57  ;;  %v1219_v4 = vrot.slane %v1218_v62, 4  ;;  %v1288_v58 = vor.u32 %v1287_v52, %v1284_v48 }
  0x53   : > { %2869 = vmatpush3.bf16.msra.mxu1 %v3048_v7  ;;  %2846 = vmatprep.subr.bf16.mxu0 %v3049_v10  ;;  %v1196_v56 = vsel %vm3272_vm2, %v1191_v47, %v1195_v35  ;;  %v2452_v35 = vld [vmem:[%s3201_s17 + $0xcc] sm:$0x1]  ;;  %v1261_v50 = vrot.slane %v1260_v42, 4 }
  0x54   : > { %2870 = vmatprep.subr.bf16.mxu1 %v3050_v13  ;;  %v2469_v0 = vcombine.low %v1196_v56, %v1210_v60  ;;  %v1233_v6 = vrot.slane %v1232_v1, 4  ;;  %v1224_v7 = vsel %vm3272_vm2, %v1219_v4, %v1223_v63  ;;  %v1291_v44 = vshll.u32 %v2452_v35, 16  ;;  %v3070_v56 = vld [vmem:[%s3201_s17 + $0x108] ss:$8 sps:$4 sm:$0xff]   ;;  %v3073_v1 = vld [vmem:[%s3563_s1 + $0x1a0] sm:$0xff]  }
  0x55   : > { %2815 = vmatmul.mubr.bf16.gmra.mxu0 %v2356_v14  ;;  %v3066_v14 = vld [vmem:[%s3563_s1 + $0x1f8] sm:$0xff]   ;;  %v1289_v63 = vrot.slane %v1288_v58, 4  ;;  %v3083_v4 = vld [vmem:[%s3201_s17 + $0x8] ss:$8 sps:$4 sm:$0xff]   ;;  %v1872_v35 = vshll.u32 %v2561_v24, 16 }
  0x56   : > { %2847 = vmatpush3.bf16.msra.mxu0 %v3049_v10  ;;  %2839 = vmatmul.mubr.bf16.gmra.mxu1 %v3052_v15  ;;  %v1238_v10 = vsel %vm3272_vm2, %v1233_v6, %v1237_v2  ;;  %v3085_v6 = vld [vmem:[%s3201_s17 + $0x50] ss:$8 sps:$4 sm:$0xff]   ;;  %v3091_v58 = vld [vmem:[%s3563_s1 + $0x228] sm:$0xff]  }
  0x57   : > { %2871 = vmatpush3.bf16.msra.mxu1 %v3050_v13  ;;  %2848 = vmatprep.subr.bf16.mxu0 %v3053_v16  ;;  %v2448_v13 = vld [vmem:[%s3201_s17 + $0xbc] sm:$0x1]  ;;  %v2470_v15 = vcombine.low %v1224_v7, %v1238_v10  ;;  %v3079_v10 = vld [vmem:[%s3563_s1 + $0x188] sm:$0xff]  }
  0x58   : > { %2872 = vmatprep.subr.bf16.mxu1 %v3054_v17  ;;  %2858 = vmatprep.mubr.bf16.mxu0 %v3063_v19  ;;  %v2449_v19 = vld [vmem:[%s3201_s17 + $0xc0] sm:$0xf]  ;;  %v1263_v23 = vshll.u32 %v2448_v13, 16  ;;  %v3076_v7 = vld [vmem:[%s3563_s1 + $0x1d8] sm:$0xff]  }
  0x59   : > { %2882 = vmatprep.mubr.bf16.mxu1 %v2469_v0  ;;  %v1268_v25 = vshrl.u32 %v2449_v19, 16  ;;  %v1271_v30 = vshll.u32 %v2449_v19, 16  ;;  %v3082_v13 = vld [vmem:[%s3563_s1 + $0x1c0] sm:$0xff]  }
  0x5a   : > { %2849 = vmatpush3.bf16.msra.mxu0 %v3053_v16  ;;  %v1240_v16 = vshrl.u32 %v2445_v8, 16 }
  0x5b   : > { %2873 = vmatpush3.bf16.msra.mxu1 %v3054_v17  ;;  %2850 = vmatprep.subr.bf16.mxu0 %v3055_v18  ;;  %v1243_v17 = vshll.u32 %v2445_v8, 16  ;;  %v1270_v36 = vrot.slane %v1268_v25, 4  ;;  %v1273_v39 = vrot.slane %v1271_v30, 5  ;;  %v3077_v8 = vld [vmem:[%s3563_s1 + $0x190] sm:$0xff]   ;;  %v2562_v25 = vld [vmem:[%s3201_s17 + $0x2c] sm:$0x1] }
  0x5c   : > { %2874 = vmatprep.subr.bf16.mxu1 %v3056_v20  ;;  %v1242_v26 = vrot.slane %v1240_v16, 4  ;;  %v2555_v16 = vld [vmem:[%s3201_s17 + $0x10] sm:$0xf] }
  0x5d   : > { %v1245_v27 = vrot.slane %v1243_v17, 5  ;;  %v1274_v47 = vor.u32 %v1273_v39, %v1270_v36  ;;  %v2556_v17 = vld [vmem:[%s3201_s17 + $0x14] sm:$0x1]  ;;  %v2563_v30 = vld [vmem:[%s3201_s17 + $0x30] sm:$0xf] }
  0x5e   : > { %2851 = vmatpush3.bf16.msra.mxu0 %v3055_v18  ;;  %v1249_v18 = vshll.u32 %v2446_v11, 16  ;;  %v3080_v11 = vld [vmem:[%s3563_s1 + $0x1c8] sm:$0xff]   ;;  %v1836_v32 = vshll.u32 %v2556_v17, 16  ;;  %v1883_v39 = vshrl.u32 %v2563_v30, 16  ;;  %v1886_v40 = vshll.u32 %v2563_v30, 16 }
  0x5f   : > { %2875 = vmatpush3.bf16.msra.mxu1 %v3056_v20  ;;  %2852 = vmatprep.subr.bf16.mxu0 %v3057_v31  ;;  %v3064_v20 = vld [vmem:[%s3201_s17 + $0xe8] ss:$8 sps:$4 sm:$0xff]   ;;  %v1246_v38 = vor.u32 %v1245_v27, %v1242_v26  ;;  %v1275_v54 = vrot.slane %v1274_v47, 4 }
  0x60   : > { %2876 = vmatprep.subr.bf16.mxu1 %v3058_v34  ;;  %v1251_v28 = vrot.slane %v1249_v18, 5  ;;  %v3087_v36 = vld [vmem:[%s3201_s17 + $0x60] ss:$8 sps:$4 sm:$0xff]   ;;  %v1885_v48 = vrot.slane %v1883_v39, 4 }
  0x61   : > { %v1247_v46 = vrot.slane %v1246_v38, 4  ;;  %v1280_v62 = vsel %vm3272_vm2, %v1275_v54, %v1279_v51  ;;  %v1878_v38 = vshll.u32 %v2562_v25, 16 }
  0x62   : > { %2853 = vmatpush3.bf16.msra.mxu0 %v3057_v31  ;;  %v3067_v31 = vld [vmem:[%s3563_s1 + $0x1b0] sm:$0xff]  }
  0x63   : > { %2877 = vmatpush3.bf16.msra.mxu1 %v3058_v34  ;;  %2854 = vmatprep.subr.bf16.mxu0 %v3059_v55  ;;  %v1265_v34 = vrot.slane %v1263_v23, 5  ;;  %v1252_v53 = vsel %vm3272_vm2, %v1247_v46, %v1251_v28  ;;  %v1830_v23 = vshll.u32 %v2555_v16, 16  ;;  %v3089_v46 = vld [vmem:[%s3201_s17 + $0x28] ss:$8 sps:$4 sm:$0xff]  }
  0x64   : > { %2878 = vmatprep.subr.bf16.mxu1 %v3060_v59 }
  0x65   : > { %v1266_v57 = vsel %vm3272_vm2, %v1261_v50, %v1265_v34  ;;  %v1869_v34 = vshrl.u32 %v2561_v24, 16  ;;  %v3092_v50 = vld [vmem:[%s3201_s17 + $0x70] ss:$8 sps:$4 sm:$0xff]  }
  0x66   : > { %2855 = vmatpush3.bf16.msra.mxu0 %v3059_v55  ;;  %v1293_v55 = vrot.slane %v1291_v44, 5  ;;  %v2471_v60 = vcombine.low %v1252_v53, %v1266_v57  ;;  %v1874_v44 = vrot.slane %v1872_v35, 5  ;;  %v1838_v53 = vrot.slane %v1836_v32, 5  ;;  %v2568_v32 = vld [vmem:[%s3201_s17 + $0x44] sm:$0x1] }
  0x67   : > { %2879 = vmatpush3.bf16.msra.mxu1 %v3060_v59  ;;  %2856 = vmatprep.subr.bf16.mxu0 %v3061_v3  ;;  %v3072_v59 = vld [vmem:[%s3563_s1 + $0x1e8] sm:$0xff]   ;;  %v1871_v43 = vrot.slane %v1869_v34, 4 }
  0x68   : > { %2880 = vmatprep.subr.bf16.mxu1 %v3062_v5  ;;  %v1294_v0 = vsel %vm3272_vm2, %v1289_v63, %v1293_v55  ;;  %v1880_v55 = vrot.slane %v1878_v38, 5 }
  0x69   : > { %v2472_v2 = vcombine.low %v1280_v62, %v1294_v0  ;;  %v1875_v54 = vor.u32 %v1874_v44, %v1871_v43  ;;  %v3090_v62 = vld [vmem:[%s3201_s17 + $0x38] ss:$8 sps:$4 sm:$0xff]  }
  0x6a   : > { %2857 = vmatpush3.bf16.msra.mxu0 %v3061_v3  ;;  %v3074_v3 = vld [vmem:[%s3563_s1 + $0x1e0] sm:$0xff]  }
  0x6b   : > { %2881 = vmatpush3.bf16.msra.mxu1 %v3062_v5  ;;  %2890 = vmatprep.subr.bf16.mxu0 %v3065_v9  ;;  %v3075_v5 = vld [vmem:[%s3563_s1 + $0x198] sm:$0xff]  }
  0x6c   : > { %2914 = vmatprep.subr.bf16.mxu1 %v3066_v14 }
  0x6d   : > { %2859 = vmatmul.mubr.bf16.vlgmr.msra.gmra.mxu0 %v3064_v20  ;;  %v1827_v20 = vshrl.u32 %v2555_v16, 16 }
  0x6e   : > { %2883 = vmatmul.mubr.bf16.vlgmr.msra.gmra.mxu1 %v2470_v15  ;;  %2891 = vmatpush3.bf16.msra.mxu0 %v3065_v9  ;;  %v3078_v9 = vld [vmem:[%s3563_s1 + $0x1d0] sm:$0xff]   ;;  %v2554_v15 = vld [vmem:[%s3201_s17 + $0xc] sm:$0x1] }
  0x6f   : > { %2915 = vmatpush3.bf16.msra.mxu1 %v3066_v14  ;;  %2892 = vmatprep.subr.bf16.mxu0 %v3067_v31  ;;  %v2553_v14 = vld [vmem:[%s3201_s17 + $0x8] sm:$0xf]  ;;  %v1822_v28 = vshll.u32 %v2554_v15, 16  ;;  %v1829_v29 = vrot.slane %v1827_v20, 4  ;;  %v3095_v15 = vld [vmem:[%s3563_s1 + $0x218] sm:$0xff]   ;;  %v3096_v20 = vld [vmem:[%s3563_s1 + $0x210] sm:$0xff]  }
  0x70   : > { %2916 = vmatprep.subr.bf16.mxu1 %v3068_v37  ;;  %2862 = vmatprep.mubr.bf16.mxu0 %v3069_v45  ;;  %v1813_v18 = vshrl.u32 %v2553_v14, 16  ;;  %v1816_v19 = vshll.u32 %v2553_v14, 16  ;;  %v1892_v45 = vshll.u32 %v2564_v33, 16 }
  0x71   : > { %2886 = vmatprep.mubr.bf16.mxu1 %v2471_v60  ;;  %v1824_v47 = vrot.slane %v1822_v28, 5 }
  0x72   : > { %2893 = vmatpush3.bf16.msra.mxu0 %v3067_v31  ;;  %v1815_v26 = vrot.slane %v1813_v18, 4  ;;  %v1818_v27 = vrot.slane %v1816_v19, 5  ;;  %v1832_v31 = vrot.slane %v1830_v23, 5  ;;  %v1894_v57 = vrot.slane %v1892_v45, 5 }
  0x73   : > { %2917 = vmatpush3.bf16.msra.mxu1 %v3068_v37  ;;  %2894 = vmatprep.subr.bf16.mxu0 %v3071_v49 }
  0x74   : > { %2918 = vmatprep.subr.bf16.mxu1 %v3072_v59  ;;  %v1819_v37 = vor.u32 %v1818_v27, %v1815_v26  ;;  %v1833_v42 = vor.u32 %v1832_v31, %v1829_v29  ;;  %v2560_v26 = vld [vmem:[%s3201_s17 + $0x24] sm:$0x1]  ;;  %v2566_v31 = vld [vmem:[%s3201_s17 + $0x3c] sm:$0x1] }
  0x75   : > { %2863 = vmatmul.mubr.bf16.gmra.mxu0 %v3070_v56  ;;  %v1906_v39 = vshll.u32 %v2566_v31, 16 }
  0x76   : > { %2895 = vmatpush3.bf16.msra.mxu0 %v3071_v49  ;;  %2887 = vmatmul.mubr.bf16.gmra.mxu1 %v2472_v2  ;;  %v1888_v49 = vrot.slane %v1886_v40, 5  ;;  %v1820_v51 = vrot.slane %v1819_v37, 4  ;;  %v1834_v52 = vrot.slane %v1833_v42, 4  ;;  %v3097_v37 = vld [vmem:[%s3563_s1 + $0x208] sm:$0xff]  }
  0x77   : > { %2919 = vmatpush3.bf16.msra.mxu1 %v3072_v59  ;;  %2896 = vmatprep.subr.bf16.mxu0 %v3073_v1  ;;  %v1876_v59 = vrot.slane %v1875_v54, 4 }
  0x78   : > { %2920 = vmatprep.subr.bf16.mxu1 %v3074_v3  ;;  %2906 = vmatprep.mubr.bf16.mxu0 %v3083_v4  ;;  %v1889_v56 = vor.u32 %v1888_v49, %v1885_v48  ;;  %v1825_v63 = vsel %vm3272_vm2, %v1820_v51, %v1824_v47  ;;  %v1839_v0 = vsel %vm3272_vm2, %v1834_v52, %v1838_v53  ;;  %v3094_v4 = vld [vmem:[%s3563_s1 + $0x220] sm:$0xff]   ;;  %v1908_v48 = vrot.slane %v1906_v39, 5 }
  0x79   : > { %2930 = vmatprep.mubr.bf16.mxu1 %v3085_v6  ;;  %v1881_v2 = vsel %vm3272_vm2, %v1876_v59, %v1880_v55  ;;  %v2559_v6 = vld [vmem:[%s3201_s17 + $0x20] sm:$0xf] }
  0x7a   : > { %2897 = vmatpush3.bf16.msra.mxu0 %v3073_v1  ;;  %v1890_v60 = vrot.slane %v1889_v56, 4  ;;  %v3093_v1 = vld [vmem:[%s3201_s17 + $0x80] ss:$8 sps:$4 sm:$0xff]   ;;  %v1858_v14 = vshll.u32 %v2559_v6, 16 }
  0x7b   : > { %2921 = vmatpush3.bf16.msra.mxu1 %v3074_v3  ;;  %2898 = vmatprep.subr.bf16.mxu0 %v3075_v5 }
  0x7c   : > { %2922 = vmatprep.subr.bf16.mxu1 %v3076_v7  ;;  %v1895_v3 = vsel %vm3272_vm2, %v1890_v60, %v1894_v57  ;;  %v1860_v25 = vrot.slane %v1858_v14, 5 }
  0x7e   : > { %2899 = vmatpush3.bf16.msra.mxu0 %v3075_v5  ;;  %v2557_v5 = vld [vmem:[%s3201_s17 + $0x18] sm:$0xf] }
  0x7f   : > { %2923 = vmatpush3.bf16.msra.mxu1 %v3076_v7  ;;  %2900 = vmatprep.subr.bf16.mxu0 %v3077_v8  ;;  %v2585_v7 = vcombine.low %v1825_v63, %v1839_v0 }
  0x80   : > { %2924 = vmatprep.subr.bf16.mxu1 %v3078_v9 }
  0x82   : > { %2901 = vmatpush3.bf16.msra.mxu0 %v3077_v8  ;;  %v2565_v8 = vld [vmem:[%s3201_s17 + $0x38] sm:$0xf] }
  0x83   : > { %2925 = vmatpush3.bf16.msra.mxu1 %v3078_v9  ;;  %2902 = vmatprep.subr.bf16.mxu0 %v3079_v10  ;;  %v2567_v9 = vld [vmem:[%s3201_s17 + $0x40] sm:$0xf]  ;;  %v1897_v16 = vshrl.u32 %v2565_v8, 16  ;;  %v1900_v17 = vshll.u32 %v2565_v8, 16 }
  0x84   : > { %2926 = vmatprep.subr.bf16.mxu1 %v3080_v11  ;;  %v1911_v18 = vshrl.u32 %v2567_v9, 16  ;;  %v1914_v19 = vshll.u32 %v2567_v9, 16 }
  0x85   : > { %v1899_v27 = vrot.slane %v1897_v16, 4  ;;  %v1902_v28 = vrot.slane %v1900_v17, 5 }
  0x86   : > { %2903 = vmatpush3.bf16.msra.mxu0 %v3079_v10  ;;  %v2587_v10 = vcombine.low %v1881_v2, %v1895_v3  ;;  %v1913_v29 = vrot.slane %v1911_v18, 4  ;;  %v1916_v30 = vrot.slane %v1914_v19, 5 }
  0x87   : > { %2927 = vmatpush3.bf16.msra.mxu1 %v3080_v11  ;;  %2904 = vmatprep.subr.bf16.mxu0 %v3081_v12  ;;  %v1841_v11 = vshrl.u32 %v2557_v5, 16  ;;  %v1903_v38 = vor.u32 %v1902_v28, %v1899_v27 }
  0x88   : > { %2928 = vmatprep.subr.bf16.mxu1 %v3082_v13  ;;  %v1917_v40 = vor.u32 %v1916_v30, %v1913_v29 }
  0x89   : > { %v1904_v47 = vrot.slane %v1903_v38, 4 }
  0x8a   : > { %2905 = vmatpush3.bf16.msra.mxu0 %v3081_v12  ;;  %v1844_v12 = vshll.u32 %v2557_v5, 16  ;;  %v1918_v49 = vrot.slane %v1917_v40, 4 }
  0x8b   : > { %2929 = vmatpush3.bf16.msra.mxu1 %v3082_v13  ;;  %2938 = vmatprep.subr.bf16.mxu0 %v3086_v22  ;;  %v1855_v13 = vshrl.u32 %v2559_v6, 16  ;;  %v1909_v53 = vsel %vm3272_vm2, %v1904_v47, %v1908_v48 }
  0x8c   : > { %2962 = vmatprep.subr.bf16.mxu1 %v3086_v22  ;;  %v1846_v23 = vrot.slane %v1844_v12, 5 }
  0x8d   : > { %2907 = vmatmul.mubr.bf16.vlgmr.msra.gmra.mxu0 %v3084_v21  ;;  %v2558_v21 = vld [vmem:[%s3201_s17 + $0x1c] sm:$0x1]  ;;  %v1857_v24 = vrot.slane %v1855_v13, 4 }
  0x8e   : > { %2931 = vmatmul.mubr.bf16.vlgmr.msra.gmra.mxu1 %v3087_v36  ;;  %2939 = vmatpush3.bf16.msra.mxu0 %v3086_v22  ;;  %v1850_v34 = vshll.u32 %v2558_v21, 16  ;;  %v1864_v36 = vshll.u32 %v2560_v26, 16 }
  0x8f   : > { %2970 = vmatpush3.bf16.msra.mxu1 %v3086_v22  ;;  %2940 = vmatprep.subr.bf16.mxu0 %v3088_v41  ;;  %v1843_v22 = vrot.slane %v1841_v11, 4  ;;  %v1861_v35 = vor.u32 %v1860_v25, %v1857_v24 }
  0x90   : > { %2963 = vmatprep.subr.bf16.mxu1 %v3088_v41  ;;  %2910 = vmatprep.mubr.bf16.mxu0 %v3089_v46  ;;  %v1852_v43 = vrot.slane %v1850_v34, 5  ;;  %v1866_v45 = vrot.slane %v1864_v36, 5  ;;  %v3098_v46 = vld [vmem:[%s3563_s1 + $0x200] sm:$0xff]  }
  0x91   : > { %2934 = vmatprep.mubr.bf16.mxu1 %v3092_v50  ;;  %v1847_v33 = vor.u32 %v1846_v23, %v1843_v22  ;;  %v1862_v44 = vrot.slane %v1861_v35, 4 }
  0x92   : > { %2941 = vmatpush3.bf16.msra.mxu0 %v3088_v41 }
  0x93   : > { %2971 = vmatpush3.bf16.msra.mxu1 %v3088_v41  ;;  %2942 = vmatprep.subr.bf16.mxu0 %v3091_v58  ;;  %v1920_v41 = vshll.u32 %v2568_v32, 16  ;;  %v1848_v42 = vrot.slane %v1847_v33, 4  ;;  %v1867_v52 = vsel %vm3272_vm2, %v1862_v44, %v1866_v45 }
  0x94   : > { %2964 = vmatprep.subr.bf16.mxu1 %v3091_v58 }
  0x95   : > { %2911 = vmatmul.mubr.bf16.gmra.mxu0 %v3090_v62  ;;  %v1922_v50 = vrot.slane %v1920_v41, 5  ;;  %v1853_v51 = vsel %vm3272_vm2, %v1848_v42, %v1852_v43 }
  0x96   : > { %2943 = vmatpush3.bf16.msra.mxu0 %v3091_v58  ;;  %2935 = vmatmul.mubr.bf16.gmra.mxu1 %v3093_v1  ;;  %v2586_v55 = vcombine.low %v1853_v51, %v1867_v52 }
  0x97   : > { %2972 = vmatpush3.bf16.msra.mxu1 %v3091_v58  ;;  %2944 = vmatprep.subr.bf16.mxu0 %v3094_v4  ;;  %v1923_v54 = vsel %vm3272_vm2, %v1918_v49, %v1922_v50 }
  0x98   : > { %2965 = vmatprep.subr.bf16.mxu1 %v3094_v4  ;;  %2954 = vmatprep.mubr.bf16.mxu0 %v2585_v7  ;;  %v2588_v56 = vcombine.low %v1909_v53, %v1923_v54 }
  0x99   : > { %2958 = vmatprep.mubr.bf16.mxu1 %v2587_v10 }
  0x9a   : > { %2945 = vmatpush3.bf16.msra.mxu0 %v3094_v4 }
  0x9b   : > { %2973 = vmatpush3.bf16.msra.mxu1 %v3094_v4  ;;  %2946 = vmatprep.subr.bf16.mxu0 %v3095_v15 }
  0x9c   : > { %2966 = vmatprep.subr.bf16.mxu1 %v3095_v15 }
  0x9e   : > { %2947 = vmatpush3.bf16.msra.mxu0 %v3095_v15 }
  0x9f   : > { %2974 = vmatpush3.bf16.msra.mxu1 %v3095_v15  ;;  %2948 = vmatprep.subr.bf16.mxu0 %v3096_v20 }
  0xa0   : > { %2967 = vmatprep.subr.bf16.mxu1 %v3096_v20 }
  0xa2   : > { %2949 = vmatpush3.bf16.msra.mxu0 %v3096_v20 }
  0xa3   : > { %2975 = vmatpush3.bf16.msra.mxu1 %v3096_v20  ;;  %2950 = vmatprep.subr.bf16.mxu0 %v3097_v37 }
  0xa4   : > { %2968 = vmatprep.subr.bf16.mxu1 %v3097_v37 }
  0xa6   : > { %2951 = vmatpush3.bf16.msra.mxu0 %v3097_v37 }
  0xa7   : > { %2976 = vmatpush3.bf16.msra.mxu1 %v3097_v37  ;;  %2952 = vmatprep.subr.bf16.mxu0 %v3098_v46 }
  0xa8   : > { %2969 = vmatprep.subr.bf16.mxu1 %v3098_v46 }
  0xaa   : > { %2953 = vmatpush3.bf16.msra.mxu0 %v3098_v46 }
  0xab   : > { %2977 = vmatpush3.bf16.msra.mxu1 %v3098_v46 }
  0xad   : > { %2955 = vmatmul.mubr.bf16.vlgmr.msra.gmra.mxu0 %v2586_v55 }
  0xae   : > { %2959 = vmatmul.mubr.bf16.vlgmr.msra.gmra.mxu1 %v2588_v56 }
  0xed   : > { %v2764_v57 = vpop.f32.mrf.mxu0 }
  0xee   : > { %v2788_v58 = vpop.f32.mrf.mxu1 }
  0xef   : > { %v368_v59 = vpop.f32.mrf.mxu0  ;;  %v514_v49 = vadd.f32 %v2788_v58, %v2764_v57 }
  0xf0   : > { %v505_v60 = vpop.f32.mrf.mxu1 }
  0xf1   : > { %v2765_v62 = vpop.f32.mrf.mxu0  ;;  %v506_v50 = vadd.f32 %v505_v60, %v368_v59 }
  0xf2   : > { %v2789_v63 = vpop.f32.mrf.mxu1 }
  0xf3   : > { %v371_v0 = vpop.f32.mrf.mxu0  ;;  %v517_v51 = vadd.f32 %v2789_v63, %v2765_v62 }
  0xf4   : > { %v508_v1 = vpop.f32.mrf.mxu1 }
  0xf5   : > { %v2768_v2 = vpop.f32.mrf.mxu0  ;;  %v509_v55 = vadd.f32 %v508_v1, %v371_v0 }
  0xf6   : > { %v2792_v3 = vpop.f32.mrf.mxu1 }
  0xf7   : > { %v384_v4 = vpop.f32.mrf.mxu0  ;;  %v530_v52 = vadd.f32 %v2792_v3, %v2768_v2 }
  0xf8   : > { %v521_v61 = vpop.f32.mrf.mxu1 }
  0xf9   : > { %v2769_v5 = vpop.f32.mrf.mxu0 }
  0xfa   : > { %v2793_v6 = vpop.f32.mrf.mxu1 }
  0xfb   : > { %v387_v7 = vpop.f32.mrf.mxu0  ;;  %v533_v53 = vadd.f32 %v2793_v6, %v2769_v5 }
  0xfc   : > { %v524_v8 = vpop.f32.mrf.mxu1 }
 0x10d   : > { %v2812_v9 = vpop.f32.mrf.mxu0 }
 0x10e   : > { %v2836_v10 = vpop.f32.mrf.mxu1  ;;  %v815_v56 = vadd.f32 %v2812_v9, %v514_v49 }
 0x10f   : > { %v782_v11 = vpop.f32.mrf.mxu0 }
 0x110   : > { %v955_v12 = vpop.f32.mrf.mxu1  ;;  %v988_v62 = vadd.f32 %v2836_v10, %v815_v56 }
 0x111   : > { %v2813_v13 = vpop.f32.mrf.mxu0 }
 0x112   : > { %v2837_v14 = vpop.f32.mrf.mxu1 }
 0x113   : > { %v785_v15 = vpop.f32.mrf.mxu0 }
 0x114   : > { %v958_v16 = vpop.f32.mrf.mxu1  ;;  %v814_v57 = vadd.f32 %v785_v15, %v509_v55 }
 0x115   : > { %v2816_v17 = vpop.f32.mrf.mxu0 }
 0x116   : > { %v2840_v18 = vpop.f32.mrf.mxu1  ;;  %v987_v0 = vadd.f32 %v958_v16, %v814_v57 }
 0x117   : > { %v798_v19 = vpop.f32.mrf.mxu0 }
 0x118   : > { %v971_v20 = vpop.f32.mrf.mxu1 }
 0x119   : > { %v2817_v21 = vpop.f32.mrf.mxu0 }
 0x11a   : > { %v2841_v22 = vpop.f32.mrf.mxu1 }
 0x11b   : > { %v801_v23 = vpop.f32.mrf.mxu0 }
 0x11c   : > { %v974_v24 = vpop.f32.mrf.mxu1 }
 0x12d   : > { %v2860_v25 = vpop.f32.mrf.mxu0 }
 0x12e   : > { %v3518_v26 = vpop.f32.mrf.mxu1  ;;  %v1161_v1 = vadd.f32 %v2860_v25, %v988_v62 }
 0x12f   : > { %3568 = vst [vmem:[#allocation2_spill] sm:$0xff] %v3518_v26  ;;  %v1128_v27 = vpop.f32.mrf.mxu0  ;;  %v522_v26 = vadd.f32 %v521_v61, %v384_v4 }
 0x130   : > { %v1410_v28 = vpop.f32.mrf.mxu1 }
 0x131   : > { %v2861_v29 = vpop.f32.mrf.mxu0  ;;  %v817_v58 = vadd.f32 %v798_v19, %v522_v26 }
 0x132   : > { %v2885_v30 = vpop.f32.mrf.mxu1 }
 0x133   : > { %v1131_v31 = vpop.f32.mrf.mxu0 }
 0x134   : > { %v3520_v32 = vpop.f32.mrf.mxu1  ;;  %v1160_v15 = vadd.f32 %v1131_v31, %v987_v0 }
 0x135   : > { %3569 = vst [vmem:[#allocation3_spill] sm:$0xff] %v3520_v32  ;;  %v2864_v33 = vpop.f32.mrf.mxu0  ;;  %v816_v32 = vadd.f32 %v2813_v13, %v517_v51  ;;  %v990_v13 = vadd.f32 %v971_v20, %v817_v58 }
 0x136   : > { %v2888_v34 = vpop.f32.mrf.mxu1 }
 0x137   : > { %v1144_v35 = vpop.f32.mrf.mxu0  ;;  %v989_v2 = vadd.f32 %v2837_v14, %v816_v32  ;;  %v3576_v14 = vld [vmem:[#allocation2_spill] sm:$0xff] }
 0x138   : > { %v3522_v36 = vpop.f32.mrf.mxu1  ;;  %v1163_v10 = vadd.f32 %v1144_v35, %v990_v13 }
 0x139   : > { %3570 = vst [vmem:[#allocation4_spill] sm:$0xff] %v3522_v36  ;;  %v2865_v37 = vpop.f32.mrf.mxu0  ;;  %v813_v36 = vadd.f32 %v782_v11, %v506_v50  ;;  %v1162_v11 = vadd.f32 %v2861_v29, %v989_v2 }
 0x13a   : > { %v2889_v38 = vpop.f32.mrf.mxu1 }
 0x13b   : > { %v1147_v39 = vpop.f32.mrf.mxu0  ;;  %v986_v63 = vadd.f32 %v955_v12, %v813_v36  ;;  %v1444_v19 = vadd.f32 %v2885_v30, %v1162_v11 }
 0x13c   : > { %v1429_v40 = vpop.f32.mrf.mxu1 }
 0x13d   : > { %v1159_v9 = vadd.f32 %v1128_v27, %v986_v63 }
 0x13f   : > { %v1441_v16 = vadd.f32 %v1410_v28, %v1159_v9 }
 0x140   : > { %v3578_v31 = vld [vmem:[#allocation4_spill] sm:$0xff] }
 0x141   : > { %v1445_v32 = vadd.f32 %v3578_v31, %v1163_v10 }
 0x14d   : > { %v2908_v41 = vpop.f32.mrf.mxu0 }
 0x14e   : > { %v3524_v42 = vpop.f32.mrf.mxu1 }
 0x14f   : > { %3571 = vst [vmem:[#allocation5_spill] sm:$0xff] %v3524_v42  ;;  %v1584_v43 = vpop.f32.mrf.mxu0 }
 0x150   : > { %v3526_v44 = vpop.f32.mrf.mxu1  ;;  %v1615_v26 = vadd.f32 %v1584_v43, %v1441_v16 }
 0x151   : > { %3572 = vst [vmem:[#allocation6_spill] sm:$0xff] %v3526_v44  ;;  %v2909_v45 = vpop.f32.mrf.mxu0  ;;  %v525_v44 = vadd.f32 %v524_v8, %v387_v7 }
 0x152   : > { %v3528_v46 = vpop.f32.mrf.mxu1  ;;  %v1618_v27 = vadd.f32 %v2909_v45, %v1444_v19 }
 0x153   : > { %3573 = vst [vmem:[#allocation7_spill] sm:$0xff] %v3528_v46  ;;  %v1587_v47 = vpop.f32.mrf.mxu0  ;;  %v819_v46 = vadd.f32 %v2816_v17, %v530_v52  ;;  %v818_v59 = vadd.f32 %v801_v23, %v525_v44  ;;  %v3577_v23 = vld [vmem:[#allocation3_spill] sm:$0xff] }
 0x154   : > { %v3530_v48 = vpop.f32.mrf.mxu1 }
 0x155   : > { %3574 = vst [vmem:[#allocation8_spill] sm:$0xff] %v3530_v48  ;;  %v2912_v54 = vpop.f32.mrf.mxu0  ;;  %v820_v48 = vadd.f32 %v2817_v21, %v533_v53  ;;  %v992_v5 = vadd.f32 %v2840_v18, %v819_v46  ;;  %v991_v4 = vadd.f32 %v974_v24, %v818_v59  ;;  %v1443_v18 = vadd.f32 %v3576_v14, %v1161_v1 }
 0x156   : > { %v2936_v42 = vpop.f32.mrf.mxu1  ;;  %v1442_v24 = vadd.f32 %v3577_v23, %v1160_v15  ;;  %v3579_v44 = vld [vmem:[#allocation5_spill] sm:$0xff] }
 0x157   : > { %v1600_v60 = vpop.f32.mrf.mxu0  ;;  %v993_v6 = vadd.f32 %v2841_v22, %v820_v48  ;;  %v1165_v61 = vadd.f32 %v2864_v33, %v992_v5  ;;  %v1164_v12 = vadd.f32 %v1147_v39, %v991_v4  ;;  %v1617_v25 = vadd.f32 %v2908_v41, %v1443_v18 }
 0x158   : > { %v1773_v3 = vpop.f32.mrf.mxu1  ;;  %v1616_v39 = vadd.f32 %v1587_v47, %v1442_v24  ;;  %v1619_v30 = vadd.f32 %v1600_v60, %v1445_v32  ;;  %v3580_v48 = vld [vmem:[#allocation6_spill] sm:$0xff] }
 0x159   : > { %v1166_v7 = vadd.f32 %v2865_v37, %v993_v6  ;;  %v2913_v8 = vpop.f32.mrf.mxu0  ;;  %v1447_v21 = vadd.f32 %v2888_v34, %v1165_v61  ;;  %v1446_v33 = vadd.f32 %v1429_v40, %v1164_v12  ;;  %v1790_v46 = vadd.f32 %v3579_v44, %v1617_v25 }
 0x15a   : > { %v2937_v17 = vpop.f32.mrf.mxu1  ;;  %v1788_v41 = vadd.f32 %v3580_v48, %v1615_v26  ;;  %v3581_v43 = vld [vmem:[#allocation7_spill] sm:$0xff]  ;;  %v1792_v57 = vadd.f32 %v1773_v3, %v1619_v30 }
 0x15b   : > { %v1448_v22 = vadd.f32 %v2889_v38, %v1166_v7  ;;  %v1603_v20 = vpop.f32.mrf.mxu0  ;;  %v1621_v35 = vadd.f32 %v2912_v54, %v1447_v21  ;;  %v1791_v45 = vadd.f32 %v3581_v43, %v1618_v27 }
 0x15c   : > { %v1776_v29 = vpop.f32.mrf.mxu1  ;;  %v1620_v34 = vadd.f32 %v1603_v20, %v1446_v33  ;;  %v3582_v40 = vld [vmem:[#allocation8_spill] sm:$0xff] }
 0x15d   : > { %v1622_v36 = vadd.f32 %v2913_v8, %v1448_v22  ;;  %v1794_v50 = vadd.f32 %v2936_v42, %v1621_v35  ;;  %v1789_v53 = vadd.f32 %v3582_v40, %v1616_v39 }
 0x15e   : > { %v1793_v58 = vadd.f32 %v1776_v29, %v1620_v34 }
 0x15f   : > { %v1795_v51 = vadd.f32 %v2937_v17, %v1622_v36 }
 0x16d   : > { %v2956_v37 = vpop.f32.mrf.mxu0 }
 0x16e   : > { %v2960_v28 = vpop.f32.mrf.mxu1  ;;  %v2072_v54 = vadd.f32 %v2956_v37, %v1790_v46 }
 0x16f   : > { %v2039_v38 = vpop.f32.mrf.mxu0  ;;  %v2076_v59 = vadd.f32 %v2960_v28, %v1794_v50 }
 0x170   : > { %v2055_v49 = vpop.f32.mrf.mxu1  ;;  %v2070_v55 = vadd.f32 %v2039_v38, %v1788_v41  ;;  %v2133_v4 = vmul.f32 %v2072_v54, %v2072_v54 }
 0x171   : > { %v2957_v52 = vpop.f32.mrf.mxu0  ;;  %v2074_v5 = vadd.f32 %v2055_v49, %v1792_v57  ;;  %v2137_v21 = vmul.f32 %v2076_v59, %v2076_v59 }
 0x172   : > { %v2073_v47 = vadd.f32 %v2957_v52, %v1791_v45  ;;  %v2961_v56 = vpop.f32.mrf.mxu1  ;;  %v2131_v1 = vmul.f32 %v2070_v55, %v2070_v55 }
 0x173   : > { %v2077_v60 = vadd.f32 %v2961_v56, %v1795_v51  ;;  %v2042_v62 = vpop.f32.mrf.mxu0  ;;  %v2135_v10 = vmul.f32 %v2074_v5, %v2074_v5 }
 0x174   : > { %v2623_v63 = vpack.c.bf16 %v2073_v47, %v2072_v54  ;;  %v2071_v2 = vadd.f32 %v2042_v62, %v1789_v53  ;;  %v2058_v42 = vpop.f32.mrf.mxu1  ;;  %v2134_v8 = vmul.f32 %v2073_v47, %v2073_v47 }
 0x175   : > { %v2633_v6 = vpack.c.bf16 %v2077_v60, %v2076_v59  ;;  %v2075_v0 = vadd.f32 %v2058_v42, %v1793_v58  ;;  %v2138_v23 = vmul.f32 %v2077_v60, %v2077_v60 }
 0x176   : > { %2635 = vst [vmem:[%s196_s19 + $0x8] sm:$0xff] %v2623_v63   ;;  %v2618_v9 = vpack.c.bf16 %v2071_v2, %v2070_v55  ;;  %v2118_v11 = vadd.f32 %v2071_v2, %v2070_v55  ;;  %v2132_v13 = vmul.f32 %v2071_v2, %v2071_v2 }
 0x177   : > { %2637 = vst [vmem:[%s196_s19 + $0x18] sm:$0xff] %v2633_v6   ;;  %v2628_v3 = vpack.c.bf16 %v2075_v0, %v2074_v5  ;;  %v2136_v16 = vmul.f32 %v2075_v0, %v2075_v0 }
 0x178   : > { %2619 = vst [vmem:[%s196_s19] sm:$0xff] %v2618_v9   ;;  %v2119_v61 = vadd.f32 %v2118_v11, %v2072_v54  ;;  %v2139_v7 = vadd.f32 %v2132_v13, %v2131_v1 }
 0x179   : > { %2636 = vst [vmem:[%s196_s19 + $0x10] sm:$0xff] %v2628_v3  }
 0x17a   : > { %v2140_v15 = vadd.f32 %v2139_v7, %v2133_v4  ;;  %v2120_v17 = vadd.f32 %v2119_v61, %v2073_v47 }
 0x17c   : > { %v2121_v12 = vadd.f32 %v2120_v17, %v2074_v5  ;;  %v2141_v14 = vadd.f32 %v2140_v15, %v2134_v8 }
 0x17e   : > { %v2122_v18 = vadd.f32 %v2121_v12, %v2075_v0  ;;  %v2142_v19 = vadd.f32 %v2141_v14, %v2135_v10 }
 0x180   : > { %v2123_v22 = vadd.f32 %v2122_v18, %v2076_v59  ;;  %v2143_v20 = vadd.f32 %v2142_v19, %v2136_v16 }
 0x182   : > { %v2124_v24 = vadd.f32 %v2123_v22, %v2077_v60  ;;  %v2144_v25 = vadd.f32 %v2143_v20, %v2137_v21 }
 0x184   : > { %v2125_v26 = vrot.slane %v2124_v24, 4  ;;  %v2145_v27 = vadd.f32 %v2144_v25, %v2138_v23 }
 0x186   : > { %v2126_v29 = vadd.f32 %v2125_v26, %v2124_v24  ;;  %v2146_v31 = vrot.slane %v2145_v27, 4 }
 0x188   : > { %v2127_v32 = vrot.slane %v2126_v29, 2  ;;  %v2147_v33 = vadd.f32 %v2146_v31, %v2145_v27 }
 0x18a   : > { %v2128_v35 = vadd.f32 %v2127_v32, %v2126_v29  ;;  %v2148_v36 = vrot.slane %v2147_v33, 2 }
 0x18c   : > { %v2129_v37 = vrot.slane %v2128_v35, 1  ;;  %v2149_v39 = vadd.f32 %v2148_v36, %v2147_v33 }
 0x18e   : > { %v2150_v28 = vrot.slane %v2149_v39, 1  ;;  %v2130_v30 = vadd.f32 %v2129_v37, %v2128_v35 }
 0x190   : > { %v2151_v34 = vadd.f32 %v2150_v28, %v2149_v39 }
 0x192   : > { %v2153_v38 = vsel %vm2152_vm3, %v2130_v30, %v2151_v34 }
 0x193   : > { %2154 = vst [vmem:[%s203_s23] sm:$0x3] %v2153_v38 }
 0x194 PF: > { %s14_s14 = sadd.s32 1, %s3121_s14   ;;  %s3583_s12 = smov %s3117_s13 }
 0x195   : > { %p11_p6 = scmp.ge.s32.totalorder %s14_s14, 4   ;;  %s3584_s13 = smov %s3586_s15 }
 0x197   :  { %13 = sbr.rel (!%p11_p6) target bundleno = 2 (0x2), region = 84 }

</bundles_post_ra>
